<compile_context>
chip_gen: v5e
topology: v5e:2x2
jax: 0.10.0
libtpu: 0.0.40
codegen_flags: <defaults>
</compile_context>

<pallas_src>
import functools

import jax
import jax.numpy as jnp
from jax.experimental import pallas as pl
from jax.experimental.pallas import tpu as pltpu

ACTION_DIM = 2
ENVIRONMENT_DIM = 20
ROBOT_DIM = 4
STATE_DIM = ENVIRONMENT_DIM + ROBOT_DIM  # 24

H1 = 800
H2 = 600

# lane-padded sizes (multiples of 128) for unmasked vector ops / clean MXU tiles
H1P = 896
H2P = 640
OUTP = 128


# --------------------------------------------------------------------------- kernel

def actor_kernel(s_ref, w1_ref, b1_ref, w2_ref, b2_ref, w3_ref, b3_ref, o_ref):
    # layer 1: (tb, 24) @ (24, 896) + (1, 896) -> relu
    x = s_ref[...].astype(jnp.bfloat16)
    h1 = jnp.dot(x, w1_ref[...], preferred_element_type=jnp.float32)
    h1 = jnp.maximum(h1 + b1_ref[...], 0.0).astype(jnp.bfloat16)
    # layer 2: (tb, 896) @ (896, 640) + (1, 640) -> relu
    h2 = jnp.dot(h1, w2_ref[...], preferred_element_type=jnp.float32)
    h2 = jnp.maximum(h2 + b2_ref[...], 0.0).astype(jnp.bfloat16)
    # layer 3: (tb, 640) @ (640, 128) + (1, 128) -> tanh  (columns >= 2 are zero padding)
    a = jnp.dot(h2, w3_ref[...], preferred_element_type=jnp.float32)
    o_ref[...] = jnp.tanh(a + b3_ref[...]).astype(o_ref.dtype)


# ------------------------------------------------------------------ tile / vmem policy

def _device_kind() -> str:
    try:
        return jax.devices()[0].device_kind.lower()
    except Exception:  # pragma: no cover - defensive, unknown backends
        return ""


def _default_batch_tile(kind: str) -> int:
    # v5e: MXU work per 256-row tile is already ~1.8us -> step overhead <20%; bigger
    # tiles only inflate f32 intermediates through its single vst slot / 16 MiB default.
    if "v5e" in kind or "v5 lite" in kind or "v5lite" in kind:
        return 256
    # v6e / v7x / v5p: amortize ~0.35us per-step overhead.
    if "v6" in kind or "v5p" in kind or "7" in kind or "v4" in kind:
        return 1024
    return 512


def _num_tensorcores(kind: str) -> int:
    # chips whose "parallel" grid axis shards across 2 TensorCores
    if "7x" in kind or "v4" in kind or "v5p" in kind:
        return 2
    return 1


def _pick_tile(B: int, tb: int, n_cores: int) -> int:
    """Clamp/8-align the batch tile; on multi-TC chips guarantee >= n_cores grid steps."""
    tb = min(tb, B)
    if tb < B:
        tb = max(8, (tb // 8) * 8)
    if n_cores > 1 and B > 8 * n_cores:
        per_core = -(-B // n_cores)          # ceil(B / n_cores)
        per_core = -(-per_core // 8) * 8     # round up to 8
        tb = min(tb, per_core)
    return max(1, tb)


def _vmem_budget_bytes(tb: int) -> int:
    # double-buffered resident weights (bf16) + biases (f32)
    w_bytes = 2 * ((STATE_DIM * H1P + H1P * H2P + H2P * OUTP) * 2
                   + (H1P + H2P + OUTP) * 4)
    # double-buffered input/output tiles (f32)
    io_bytes = 2 * tb * (STATE_DIM * 4 + OUTP * 4)
    # in-kernel intermediates: f32 pre-activations + bf16 copies of h1/h2
    inter_bytes = tb * (H1P * (4 + 2) + H2P * (4 + 2))
    est = w_bytes + io_bytes + inter_bytes
    # 2x headroom for compiler temps; keep within v7x's 64 MiB physical VMEM.
    return min(max(32 << 20, 2 * est + (8 << 20)), 56 << 20)


# ----------------------------------------------------------------------------- wrapper

@functools.partial(jax.jit, static_argnames=("tb",))
def _actor_forward_impl(s, kparams, *, tb):
    B, D = s.shape
    assert D == STATE_DIM

    Bp = pl.cdiv(B, tb) * tb
    if Bp != B:
        s = jnp.pad(s, ((0, Bp - B), (0, 0)))
    grid = (Bp // tb,)

    w1, b1 = kparams["w1"], kparams["b1"]  # (24, 896) bf16, (1, 896) f32
    w2, b2 = kparams["w2"], kparams["b2"]  # (896, 640) bf16, (1, 640) f32
    w3, b3 = kparams["w3"], kparams["b3"]  # (640, 128) bf16, (1, 128) f32

    # Constant index_map: weights/biases are fetched once and stay resident in VMEM.
    full = lambda shape: pl.BlockSpec(shape, lambda i: (0, 0))

    out = pl.pallas_call(
        actor_kernel,
        out_shape=jax.ShapeDtypeStruct((Bp, OUTP), jnp.float32),
        grid_spec=pltpu.PrefetchScalarGridSpec(
            num_scalar_prefetch=0,
            grid=grid,
            in_specs=[
                pl.BlockSpec((tb, STATE_DIM), lambda i: (i, 0)),
                full(w1.shape), full(b1.shape),
                full(w2.shape), full(b2.shape),
                full(w3.shape), full(b3.shape),
            ],
            out_specs=pl.BlockSpec((tb, OUTP), lambda i: (i, 0)),
        ),
        compiler_params=pltpu.CompilerParams(
            # batch axis is embarrassingly parallel -> megacore/2-TC shardable
            dimension_semantics=("parallel",),
            vmem_limit_bytes=_vmem_budget_bytes(tb),
        ),
    )(s, w1, b1, w2, b2, w3, b3)

    return out[:B, :ACTION_DIM]


def actor_forward(s, kparams, *, tb=None):
    """s: (B, STATE_DIM) f32; kparams: prepared (padded, transposed, bf16) params."""
    B = s.shape[0]
    kind = _device_kind()
    if tb is None:
        tb = _default_batch_tile(kind)
    tb = _pick_tile(B, int(tb), _num_tensorcores(kind))
    return _actor_forward_impl(s, kparams, tb=tb)


# -------------------------------------------------------------------------- parameters

def init_params(key):
    """PyTorch nn.Linear default init: U(-1/sqrt(fan_in), +); weights stored (out, in)."""
    def linear(key, fan_in, fan_out):
        kw, kb = jax.random.split(key)
        bound = 1.0 / jnp.sqrt(jnp.float32(fan_in))
        w = jax.random.uniform(kw, (fan_out, fan_in), jnp.float32, -bound, bound)
        b = jax.random.uniform(kb, (fan_out,), jnp.float32, -bound, bound)
        return w, b

    k1, k2, k3 = jax.random.split(key, 3)
    w1, b1 = linear(k1, STATE_DIM, H1)
    w2, b2 = linear(k2, H1, H2)
    w3, b3 = linear(k3, H2, ACTION_DIM)
    return {"w1": w1, "b1": b1, "w2": w2, "b2": b2, "w3": w3, "b3": b3}


def prepare_params(p):
    """Transpose to (in, out), zero-pad to lane multiples, cast weights to bf16.
    Zero-padded columns give 0 pre-activation -> ReLU(0)=0 / tanh(0)=0, so the
    semantics of the original f32 module are preserved (up to bf16 weight precision)."""
    def prep(w, b, in_p, out_p):
        wt = jnp.zeros((in_p, out_p), jnp.float32).at[: w.shape[1], : w.shape[0]].set(w.T)
        bp = jnp.zeros((1, out_p), jnp.float32).at[0, : b.shape[0]].set(b)
        return wt.astype(jnp.bfloat16), bp

    w1, b1 = prep(p["w1"], p["b1"], STATE_DIM, H1P)
    w2, b2 = prep(p["w2"], p["b2"], H1P, H2P)
    w3, b3 = prep(p["w3"], p["b3"], H2P, OUTP)
    return {"w1": w1, "b1": b1, "w2": w2, "b2": b2, "w3": w3, "b3": b3}


# -------------------------------------------------------------------------- references

def actor_ref_f32(s, p):
    """Pure f32 reference matching the PyTorch module exactly."""
    h1 = jnp.maximum(s @ p["w1"].T + p["b1"], 0.0)
    h2 = jnp.maximum(h1 @ p["w2"].T + p["b2"], 0.0)
    return jnp.tanh(h2 @ p["w3"].T + p["b3"])


def actor_ref_mixed(s, kp):
    """Pure-JAX reference with the same bf16-in / f32-accumulate precision as the kernel."""
    x = s.astype(jnp.bfloat16)
    h1 = jnp.maximum(jnp.dot(x, kp["w1"], preferred_element_type=jnp.float32) + kp["b1"], 0.0)
    h1 = h1.astype(jnp.bfloat16)
    h2 = jnp.maximum(jnp.dot(h1, kp["w2"], preferred_element_type=jnp.float32) + kp["b2"], 0.0)
    h2 = h2.astype(jnp.bfloat16)
    a = jnp.tanh(jnp.dot(h2, kp["w3"], preferred_element_type=jnp.float32) + kp["b3"])
    return a[:, :ACTION_DIM]


# --------------------------------------------------------------------------------- main

if __name__ == "__main__":
    key = jax.random.PRNGKey(0)
    kp, ks = jax.random.split(key)

    raw = init_params(kp)
    kparams = prepare_params(raw)

    batch = 40  # small; deliberately not a tile multiple to exercise the padding path
    s = jax.random.normal(ks, (batch, STATE_DIM), jnp.float32)

    # generation-tuned default tile (whole batch or split across TCs)
    out = jax.block_until_ready(actor_forward(s, kparams))
    # explicit multi-step grid path (tb=16 -> batch padded to 48, 3 grid steps)
    out_tiled = jax.block_until_ready(actor_forward(s, kparams, tb=16))
    # forced 2-way split path (what a 2-TensorCore chip would pick for this batch)
    out_split = jax.block_until_ready(_actor_forward_impl(s, kparams, tb=24))

    ref_mixed = actor_ref_mixed(s, kparams)
    ref_f32 = actor_ref_f32(s, raw)

    assert out.shape == (batch, ACTION_DIM)
    assert jnp.allclose(out, ref_mixed, atol=1e-3, rtol=1e-3), "mismatch vs mixed-precision ref"
    assert jnp.allclose(out_tiled, ref_mixed, atol=1e-3, rtol=1e-3), "tiled grid mismatch"
    assert jnp.allclose(out_split, ref_mixed, atol=1e-3, rtol=1e-3), "split grid mismatch"
    assert jnp.allclose(out, ref_f32, atol=7e-2, rtol=7e-2), "drifted too far from f32 ref"

    print("KERNEL_OK")
</pallas_src>

<mosaic_0001>
module attributes {stable_mosaic.version = 11 : i64} {
  func.func @actor_kernel(%arg0: i32, %arg1: memref<40x24xf32, #tpu.memory_space<vmem>>, %arg2: memref<24x896xbf16, #tpu.memory_space<vmem>>, %arg3: memref<1x896xf32, #tpu.memory_space<vmem>>, %arg4: memref<896x640xbf16, #tpu.memory_space<vmem>>, %arg5: memref<1x640xf32, #tpu.memory_space<vmem>>, %arg6: memref<640x128xbf16, #tpu.memory_space<vmem>>, %arg7: memref<1x128xf32, #tpu.memory_space<vmem>>, %arg8: memref<40x128xf32, #tpu.memory_space<vmem>>) attributes {dimension_semantics = [#tpu.dimension_semantics<parallel>], iteration_bounds = array<i64: 1>, scalar_prefetch = 0 : i64, scratch_operands = 0 : i64, tpu.core_type = #tpu.core_type<tc>, window_params = [{transform_indices = @transform_0, window_bounds = array<i64: 40, 24>}, {pipeline_mode = #tpu.pipeline_mode<synchronous>, transform_indices = @transform_1, window_bounds = array<i64: 24, 896>}, {pipeline_mode = #tpu.pipeline_mode<synchronous>, transform_indices = @transform_2, window_bounds = array<i64: 1, 896>}, {pipeline_mode = #tpu.pipeline_mode<synchronous>, transform_indices = @transform_3, window_bounds = array<i64: 896, 640>}, {pipeline_mode = #tpu.pipeline_mode<synchronous>, transform_indices = @transform_4, window_bounds = array<i64: 1, 640>}, {pipeline_mode = #tpu.pipeline_mode<synchronous>, transform_indices = @transform_5, window_bounds = array<i64: 640, 128>}, {pipeline_mode = #tpu.pipeline_mode<synchronous>, transform_indices = @transform_6, window_bounds = array<i64: 1, 128>}, {transform_indices = @transform_7, window_bounds = array<i64: 40, 128>}]} {
    %c0 = arith.constant 0 : index
    %c0_0 = arith.constant 0 : index
    %0 = vector.load %arg1[%c0, %c0_0] : memref<40x24xf32, #tpu.memory_space<vmem>>, vector<40x24xf32>
    %1 = arith.truncf %0 : vector<40x24xf32> to vector<40x24xbf16>
    %c0_1 = arith.constant 0 : index
    %c0_2 = arith.constant 0 : index
    %2 = vector.load %arg2[%c0_1, %c0_2] : memref<24x896xbf16, #tpu.memory_space<vmem>>, vector<24x896xbf16>
    %cst = arith.constant dense<0.000000e+00> : vector<40x896xf32>
    %3 = tpu.matmul %1, %2, %cst {dimension_numbers = #tpu.dot_dimension_numbers<[1], [0], [0], [1], [0, 0, 1, 1], [], []>} : vector<40x24xbf16>, vector<24x896xbf16>, vector<40x896xf32> -> vector<40x896xf32>
    %c0_3 = arith.constant 0 : index
    %c0_4 = arith.constant 0 : index
    %4 = vector.load %arg3[%c0_3, %c0_4] : memref<1x896xf32, #tpu.memory_space<vmem>>, vector<1x896xf32>
    %5 = vector.broadcast %4 : vector<1x896xf32> to vector<40x896xf32>
    %6 = arith.addf %3, %5 : vector<40x896xf32>
    %cst_5 = arith.constant 0.000000e+00 : f32
    %7 = vector.broadcast %cst_5 : f32 to vector<40x896xf32>
    %8 = arith.maximumf %6, %7 : vector<40x896xf32>
    %9 = arith.truncf %8 : vector<40x896xf32> to vector<40x896xbf16>
    %c0_6 = arith.constant 0 : index
    %c0_7 = arith.constant 0 : index
    %10 = vector.load %arg4[%c0_6, %c0_7] : memref<896x640xbf16, #tpu.memory_space<vmem>>, vector<896x640xbf16>
    %cst_8 = arith.constant dense<0.000000e+00> : vector<40x640xf32>
    %11 = tpu.matmul %9, %10, %cst_8 {dimension_numbers = #tpu.dot_dimension_numbers<[1], [0], [0], [1], [0, 0, 1, 1], [], []>} : vector<40x896xbf16>, vector<896x640xbf16>, vector<40x640xf32> -> vector<40x640xf32>
    %c0_9 = arith.constant 0 : index
    %c0_10 = arith.constant 0 : index
    %12 = vector.load %arg5[%c0_9, %c0_10] : memref<1x640xf32, #tpu.memory_space<vmem>>, vector<1x640xf32>
    %13 = vector.broadcast %12 : vector<1x640xf32> to vector<40x640xf32>
    %14 = arith.addf %11, %13 : vector<40x640xf32>
    %cst_11 = arith.constant 0.000000e+00 : f32
    %15 = vector.broadcast %cst_11 : f32 to vector<40x640xf32>
    %16 = arith.maximumf %14, %15 : vector<40x640xf32>
    %17 = arith.truncf %16 : vector<40x640xf32> to vector<40x640xbf16>
    %c0_12 = arith.constant 0 : index
    %c0_13 = arith.constant 0 : index
    %18 = vector.load %arg6[%c0_12, %c0_13] : memref<640x128xbf16, #tpu.memory_space<vmem>>, vector<640x128xbf16>
    %cst_14 = arith.constant dense<0.000000e+00> : vector<40x128xf32>
    %19 = tpu.matmul %17, %18, %cst_14 {dimension_numbers = #tpu.dot_dimension_numbers<[1], [0], [0], [1], [0, 0, 1, 1], [], []>} : vector<40x640xbf16>, vector<640x128xbf16>, vector<40x128xf32> -> vector<40x128xf32>
    %c0_15 = arith.constant 0 : index
    %c0_16 = arith.constant 0 : index
    %20 = vector.load %arg7[%c0_15, %c0_16] : memref<1x128xf32, #tpu.memory_space<vmem>>, vector<1x128xf32>
    %21 = vector.broadcast %20 : vector<1x128xf32> to vector<40x128xf32>
    %22 = arith.addf %19, %21 : vector<40x128xf32>
    %23 = math.tanh %22 : vector<40x128xf32>
    %c0_17 = arith.constant 0 : index
    %c0_18 = arith.constant 0 : index
    %24 = vector.load %arg8[%c0_17, %c0_18] : memref<40x128xf32, #tpu.memory_space<vmem>>, vector<40x128xf32>
    tpu.vector_store %arg8[%c0_17, %c0_18], %23 {strides = array<i32>} : memref<40x128xf32, #tpu.memory_space<vmem>>, vector<40x128xf32>,
    return
  }
  func.func @transform_0(%arg0: i32) -> (i32, i32) {
    %c0_i32 = arith.constant 0 : i32
    %c0_i32_0 = arith.constant 0 : i32
    return %arg0, %c0_i32 : i32, i32
  }
  func.func @transform_1(%arg0: i32) -> (i32, i32) {
    %c0_i32 = arith.constant 0 : i32
    %c0_i32_0 = arith.constant 0 : i32
    %c0_i32_1 = arith.constant 0 : i32
    return %c0_i32, %c0_i32_0 : i32, i32
  }
  func.func @transform_2(%arg0: i32) -> (i32, i32) {
    %c0_i32 = arith.constant 0 : i32
    %c0_i32_0 = arith.constant 0 : i32
    %c0_i32_1 = arith.constant 0 : i32
    return %c0_i32, %c0_i32_0 : i32, i32
  }
  func.func @transform_3(%arg0: i32) -> (i32, i32) {
    %c0_i32 = arith.constant 0 : i32
    %c0_i32_0 = arith.constant 0 : i32
    %c0_i32_1 = arith.constant 0 : i32
    return %c0_i32, %c0_i32_0 : i32, i32
  }
  func.func @transform_4(%arg0: i32) -> (i32, i32) {
    %c0_i32 = arith.constant 0 : i32
    %c0_i32_0 = arith.constant 0 : i32
    %c0_i32_1 = arith.constant 0 : i32
    return %c0_i32, %c0_i32_0 : i32, i32
  }
  func.func @transform_5(%arg0: i32) -> (i32, i32) {
    %c0_i32 = arith.constant 0 : i32
    %c0_i32_0 = arith.constant 0 : i32
    %c0_i32_1 = arith.constant 0 : i32
    return %c0_i32, %c0_i32_0 : i32, i32
  }
  func.func @transform_6(%arg0: i32) -> (i32, i32) {
    %c0_i32 = arith.constant 0 : i32
    %c0_i32_0 = arith.constant 0 : i32
    %c0_i32_1 = arith.constant 0 : i32
    return %c0_i32, %c0_i32_0 : i32, i32
  }
  func.func @transform_7(%arg0: i32) -> (i32, i32) {
    %c0_i32 = arith.constant 0 : i32
    %c0_i32_0 = arith.constant 0 : i32
    return %arg0, %c0_i32 : i32, i32
  }
}

</mosaic_0001>

<bundles_post_ra>
// kernel: _actor_forward_impl.1
= control target key start
LH: loop header
LB: loop body
LE: loop exit
PB: predicated region body
PF: predicated region fallthrough
CT: control target
= control target key end

     0   :  { %12 = vsyncpa [#allocation3], 0  ;;  %s5938_s0 = inlined_call_operand.vmem [shape: f32[40,24], index: 0, kind: input, shape index: {}]   ;;  %s5939_s1 = inlined_call_operand.hbm [shape: bf16[24,896], index: 1, kind: input, shape index: {}]   ;;  %s5940_s2 = inlined_call_operand.hbm [shape: f32[1,896], index: 2, kind: input, shape index: {}]   ;;  %s5941_s3 = inlined_call_operand.hbm [shape: bf16[896,640], index: 3, kind: input, shape index: {}]   ;;  %s5942_s4 = inlined_call_operand.hbm [shape: f32[1,640], index: 4, kind: input, shape index: {}]   ;;  %s5943_s5 = inlined_call_operand.hbm [shape: bf16[640,128], index: 5, kind: input, shape index: {}]   ;;  %s5944_s6 = inlined_call_operand.hbm [shape: f32[1,128], index: 6, kind: input, shape index: {}]   ;;  %s5945_s7 = inlined_call_operand.vmem [shape: f32[40,128], index: 7, kind: output, shape index: {}]  }
   0x1   :  { %13 = vsyncpa [#allocation5], 0 }
   0x2   :  { %14 = vsyncpa [#allocation8], 0  ;;  %s36_s26 = sshll.u32 %s5940_s2, 4  ;;  %s37_s26 = int_to_ptr.hbm [resolvable:$true] %s36_s26 }
   0x3   :  { %15 = vsyncpa [#allocation11], 0  ;;  %s5394_s27 = smov [#allocation4]   ;;  %s60_s8 = sshll.u32 %s5942_s4, 4  ;;  %s61_s8 = int_to_ptr.hbm [resolvable:$true] %s60_s8 }
   0x4   :  { %s38_s28 = sshll.u32 %s5394_s27, 4  ;;  %s5395_s9 = smov [#allocation7]   ;;  %s39_s28 = int_to_ptr.vmem [resolvable:$true] %s38_s28 }
   0x5   :  { %41 = dma.hbm_to_vmem [thread:$0]  %s37_s26, 112, %s39_s28, [#allocation5]  }
   0x6   :  { %s62_s10 = sshll.u32 %s5395_s9, 4  ;;  %s22_s13 = sshll.u32 %s5939_s1, 4  ;;  %s63_s10 = int_to_ptr.vmem [resolvable:$true] %s62_s10  ;;  %s23_s13 = int_to_ptr.hbm [resolvable:$true] %s22_s13 }
   0x7   :  { %65 = dma.hbm_to_vmem [thread:$0]  %s61_s8, 80, %s63_s10, [#allocation8]  }
   0x8   :  { %s5396_s2 = smov [#allocation2]   ;;  %s46_s17 = sshll.u32 %s5941_s3, 4  ;;  %s47_s17 = int_to_ptr.hbm [resolvable:$true] %s46_s17 }
   0x9   :  { %s24_s14 = sshll.u32 %s5396_s2, 4  ;;  %s5397_s18 = smov 448   ;;  %s25_s14 = int_to_ptr.vmem [resolvable:$true] %s24_s14 }
   0xa   :  { %s5398_s4 = smov 28   ;;  %s5399_s19 = smov [#allocation6]  }
   0xb   :  { %30 = dma.hbm_to_vmem [thread:$0]  %s23_s13, 1344, %s25_s14, [#allocation3], %s5397_s18, %s5397_s18, %s5398_s4  }
   0xc   :  { %s48_s20 = sshll.u32 %s5399_s19, 4  ;;  %s5400_s21 = smov 320   ;;  %s49_s20 = int_to_ptr.vmem [resolvable:$true] %s48_s20 }
   0xd   :  { %s5401_s22 = smov 20   ;;  %s70_s24 = sshll.u32 %s5943_s5, 4  ;;  %s71_s24 = int_to_ptr.hbm [resolvable:$true] %s70_s24 }
   0xe   :  { %54 = dma.hbm_to_vmem [thread:$0]  %s47_s17, 35840, %s49_s20, [#allocation5], %s5400_s21, %s5400_s21, %s5401_s22  }
   0xf   :  { %s5402_s25 = smov [#allocation9]   ;;  %s84_s28 = sshll.u32 %s5944_s6, 4  ;;  %s85_s28 = int_to_ptr.hbm [resolvable:$true] %s84_s28 }
  0x10   :  { %s72_s26 = sshll.u32 %s5402_s25, 4  ;;  %s5403_s29 = smov 64   ;;  %s73_s26 = int_to_ptr.vmem [resolvable:$true] %s72_s26 }
  0x11   :  { %s5404_s30 = smov 4   ;;  %s5405_s8 = smov [#allocation10]  }
  0x12   :  { %78 = dma.hbm_to_vmem [thread:$0]  %s71_s24, 5120, %s73_s26, [#allocation8], %s5403_s29, %s5403_s29, %s5404_s30  }
  0x13   :  { %s86_s9 = sshll.u32 %s5405_s8, 4  ;;  %s87_s9 = int_to_ptr.vmem [resolvable:$true] %s86_s9 }
  0x14   :  { %89 = dma.hbm_to_vmem [thread:$0]  %s85_s28, 16, %s87_s9, [#allocation11]  }
  0x15   :  { %5386 = dma.done.wait [#allocation3], 1344  }
  0x16   :  { %5387 = vsyncadd [#allocation3], 4294965952 }
  0x17   :  { %5388 = dma.done.wait [#allocation5], 35952  }
  0x18   :  { %5389 = vsyncadd [#allocation5], 4294931344 }
  0x19   :  { %5390 = dma.done.wait [#allocation8], 5200  }
  0x1a   :  { %5391 = vsyncadd [#allocation8], 4294962096 }
  0x1b   :  { %5392 = dma.done.wait [#allocation11], 16  }
  0x1c   :  { %5393 = vsyncadd [#allocation11], 4294967280  ;;  %v131_v0 = vld [vmem:[#allocation2 + $0x38] sm:$0xff]  ;;  %v132_v1 = vld [vmem:[#allocation2 + $0x40] sm:$0xff]  ;;  %vm215_vm0 = vcmask 1043456   ;;  %vm205_vm1 = vcmask 195584  }
  0x1d   :  { %v177_v2 = vunpack.c.l.b16 %v131_v0  ;;  %v178_v3 = vunpack.c.h.b16 %v131_v0  ;;  %v179_v4 = vunpack.c.l.b16 %v132_v1  ;;  %v180_v5 = vunpack.c.h.b16 %v132_v1  ;;  %v3562_v6 = vld [vmem:[#allocation2] sm:$0xf]  ;;  %v4892_v10 = vld [vmem:[#allocation2 + $0x18] sm:$0xf0]  ;;  %v4889_v11 = vld [vmem:[#allocation2 + $0x4] sm:$0xf] }
  0x1e   :  { %v3564_v12 = vld [vmem:[#allocation2 + $0x1c] sm:$0xf0]  ;;  %v3570_v13 = vld [vmem:[#allocation2 + $0x8] sm:$0xf]  ;;  %v4893_v14 = vld [vmem:[#allocation2 + $0x20] sm:$0xf0]  ;;  %v3563_v23 = vor.u32 %v4892_v10, %v3562_v6 }
  0x1f   :  { %v191_v7 = vpack.c.b16 %v177_v2, %v177_v2  ;;  %v192_v8 = vpack.c.b16 %v178_v3, %v178_v3  ;;  %v193_v9 = vpack.c.b16 %v179_v4, %v179_v4  ;;  %v134_v15 = vld [vmem:[#allocation2 + $0x50] sm:$0xf]  ;;  %v194_v16 = vpack.c.b16 %v180_v5, %v180_v5  ;;  %v115_v20 = vld [vmem:[%s5938_s0] sm:$0xff]  ;;  %v133_v22 = vld [vmem:[#allocation2 + $0x48] sm:$0xff] }
  0x20   :  { %v183_v21 = vunpack.c.l.b16 %v134_v15  ;;  %v116_v24 = vld [vmem:[%s5938_s0 + $0x8] sm:$0xff]  ;;  %v117_v25 = vld [vmem:[%s5938_s0 + $0x10] sm:$0xff]  ;;  %v118_v26 = vld [vmem:[%s5938_s0 + $0x18] sm:$0xff]  ;;  %v182_v27 = vunpack.c.h.b16 %v133_v22  ;;  %v3567_v28 = vor.u32 %v4889_v11, %v3564_v12  ;;  %v3571_v29 = vor.u32 %v4893_v14, %v3570_v13 }
  0x21   :  { %v217_v17 = vsel %vm215_vm0, %v191_v7, 0  ;;  %v220_v18 = vsel %vm215_vm0, %v192_v8, 0  ;;  %v223_v19 = vsel %vm215_vm0, %v193_v9, 0  ;;  %v4890_v32 = vld [vmem:[#allocation2 + $0xc] sm:$0xf]  ;;  %v120_v34 = vpack.c.bf16 %v116_v24, %v115_v20  ;;  %v119_v52 = vld [vmem:[%s5938_s0 + $0x20] sm:$0xff] }
  0x22   :  { %243 = vmatpush.bf16.msra.mxu0 %v217_v17  ;;  %5216 = vmatpush.bf16.msra.mxu3 %v217_v17  ;;  %v197_v30 = vpack.c.b16 %v183_v21, %v183_v21  ;;  %v196_v31 = vpack.c.b16 %v182_v27, %v182_v27  ;;  %v3572_v33 = vld [vmem:[#allocation2 + $0x24] sm:$0xf0]  ;;  %v5479_v35 = vpack.c.bf16 %v118_v26, %v117_v25  ;;  %v226_v37 = vsel %vm215_vm0, %v194_v16, 0  ;;  %v3586_v38 = vld [vmem:[#allocation2 + $0x18] sm:$0xf] }
  0x23   :  { %266 = vmatpush.bf16.msra.mxu1 %v220_v18  ;;  %289 = vmatpush.bf16.msra.mxu2 %v223_v19  ;;  %v4895_v39 = vld [vmem:[#allocation2 + $0x30] sm:$0xf0]  ;;  %v181_v40 = vunpack.c.l.b16 %v133_v22  ;;  %v3575_v42 = vor.u32 %v4890_v32, %v3572_v33  ;;  %v3580_v47 = vld [vmem:[#allocation2 + $0x2c] sm:$0xf0]  ;;  %v4894_v50 = vld [vmem:[#allocation2 + $0x28] sm:$0xf0]  ;;  %v5493_v53 = vpack.c.bf16 %v119_v52, %v119_v52 }
  0x24   :  { %v235_v36 = vsel %vm215_vm0, %v197_v30, 0  ;;  %v232_v41 = vsel %vm215_vm0, %v196_v31, 0  ;;  %v3587_v43 = vor.u32 %v4895_v39, %v3586_v38  ;;  %v4891_v46 = vld [vmem:[#allocation2 + $0x14] sm:$0xf]  ;;  %v3578_v49 = vld [vmem:[#allocation2 + $0x10] sm:$0xf] }
  0x25   :  { %v195_v44 = vpack.c.b16 %v181_v40, %v181_v40  ;;  %v3583_v48 = vor.u32 %v4891_v46, %v3580_v47  ;;  %v3579_v51 = vor.u32 %v4894_v50, %v3578_v49  ;;  %v3751_v54 = vld [vmem:[#allocation6 + $0x118] sm:$0xf]  ;;  %v4933_v55 = vld [vmem:[#allocation6 + $0x128] sm:$0xf0]  ;;  %v3731_v56 = vld [vmem:[#allocation6 + $0xf0] sm:$0xf] }
  0x26   :  { %244 = vmatpush.bf16.msra.mxu0 %v3563_v23  ;;  %5217 = vmatpush.bf16.msra.mxu3 %v3563_v23  ;;  %v3752_v57 = vor.u32 %v4933_v55, %v3751_v54  ;;  %v4928_v58 = vld [vmem:[#allocation6 + $0x100] sm:$0xf0]  ;;  %v3911_v59 = vld [vmem:[#allocation6 + $0x258] sm:$0xf]  ;;  %v4973_v60 = vld [vmem:[#allocation6 + $0x268] sm:$0xf0] }
  0x27   :  { %267 = vmatpush.bf16.msra.mxu1 %v3567_v28  ;;  %290 = vmatpush.bf16.msra.mxu2 %v3571_v29  ;;  %v229_v45 = vsel %vm215_vm0, %v195_v44, 0  ;;  %v3912_v61 = vor.u32 %v4973_v60, %v3911_v59  ;;  %v4071_v62 = vld [vmem:[#allocation6 + $0x398] sm:$0xf]  ;;  %v5013_v63 = vld [vmem:[#allocation6 + $0x3a8] sm:$0xf0]  ;;  %v3732_v0 = vor.u32 %v4928_v58, %v3731_v56 }
  0x28   :  { %v4072_v1 = vor.u32 %v5013_v63, %v4071_v62  ;;  %v3711_v2 = vld [vmem:[#allocation6 + $0xc8] sm:$0xf]  ;;  %v3891_v3 = vld [vmem:[#allocation6 + $0x230] sm:$0xf]  ;;  %v4968_v4 = vld [vmem:[#allocation6 + $0x240] sm:$0xf0] }
  0x29   :  { %3588 = vmatmul.msk.bf16.vlgmr.msra.gmra.mxu0 %vm205_vm1, %v120_v34  ;;  %3589 = vmatmul.msk.bf16.vlgmr.msra.gmra.mxu3 %vm205_vm1, %v5479_v35  ;;  %v4923_v5 = vld [vmem:[#allocation6 + $0xd8] sm:$0xf0]  ;;  %v3892_v6 = vor.u32 %v4968_v4, %v3891_v3  ;;  %v4051_v7 = vld [vmem:[#allocation6 + $0x370] sm:$0xf]  ;;  %v5008_v8 = vld [vmem:[#allocation6 + $0x380] sm:$0xf0] }
  0x2a   :  { %312 = vmatpush.bf16.msrb.mxu3 %v226_v37  ;;  %3591 = vmatmul.msk.bf16.vlgmr.msra.gmra.mxu1 %vm205_vm1, %v120_v34  ;;  %v4052_v9 = vor.u32 %v5008_v8, %v4051_v7  ;;  %v3871_v10 = vld [vmem:[#allocation6 + $0x208] sm:$0xf]  ;;  %v4963_v11 = vld [vmem:[#allocation6 + $0x218] sm:$0xf0]  ;;  %v3712_v14 = vor.u32 %v4923_v5, %v3711_v2  ;;  %v3691_v16 = vld [vmem:[#allocation6 + $0xa0] sm:$0xf] }
  0x2b   :  { %381 = vmatpush.bf16.msrb.mxu2 %v235_v36  ;;  %358 = vmatpush.bf16.msrb.mxu1 %v232_v41  ;;  %v4031_v12 = vld [vmem:[#allocation6 + $0x348] sm:$0xf]  ;;  %v5003_v13 = vld [vmem:[#allocation6 + $0x358] sm:$0xf0]  ;;  %v3872_v15 = vor.u32 %v4963_v11, %v3871_v10  ;;  %v4918_v18 = vld [vmem:[#allocation6 + $0xb0] sm:$0xf0] }
  0x2c   :  { %3594 = vmatmul.msk.bf16.vlgmr.msra.gmra.mxu2 %vm205_vm1, %v120_v34  ;;  %335 = vmatpush.bf16.msrb.mxu0 %v229_v45  ;;  %v4032_v17 = vor.u32 %v5003_v13, %v4031_v12  ;;  %v3851_v19 = vld [vmem:[#allocation6 + $0x1e0] sm:$0xf]  ;;  %v4958_v20 = vld [vmem:[#allocation6 + $0x1f0] sm:$0xf0]  ;;  %v3692_v23 = vor.u32 %v4918_v18, %v3691_v16  ;;  %v3671_v24 = vld [vmem:[#allocation6 + $0x78] sm:$0xf] }
  0x2d   :  { %v4011_v21 = vld [vmem:[#allocation6 + $0x320] sm:$0xf]  ;;  %v4998_v22 = vld [vmem:[#allocation6 + $0x330] sm:$0xf0]  ;;  %v3852_v25 = vor.u32 %v4958_v20, %v3851_v19  ;;  %v4913_v26 = vld [vmem:[#allocation6 + $0x88] sm:$0xf0] }
  0x2e   :  { %313 = vmatpush.bf16.msrb.mxu3 %v3575_v42  ;;  %v4012_v27 = vor.u32 %v4998_v22, %v4011_v21  ;;  %v3831_v28 = vld [vmem:[#allocation6 + $0x1b8] sm:$0xf]  ;;  %v4953_v29 = vld [vmem:[#allocation6 + $0x1c8] sm:$0xf0]  ;;  %v3672_v30 = vor.u32 %v4913_v26, %v3671_v24  ;;  %v3651_v32 = vld [vmem:[#allocation6 + $0x50] sm:$0xf] }
  0x2f   :  { %382 = vmatpush.bf16.msrb.mxu2 %v3587_v43  ;;  %359 = vmatpush.bf16.msrb.mxu1 %v3583_v48  ;;  %v3832_v31 = vor.u32 %v4953_v29, %v3831_v28  ;;  %v4908_v33 = vld [vmem:[#allocation6 + $0x60] sm:$0xf0]  ;;  %v3811_v36 = vld [vmem:[#allocation6 + $0x190] sm:$0xf]  ;;  %v3991_v38 = vld [vmem:[#allocation6 + $0x2f8] sm:$0xf] }
  0x30   :  { %336 = vmatpush.bf16.msrb.mxu0 %v3579_v51  ;;  %v4948_v37 = vld [vmem:[#allocation6 + $0x1a0] sm:$0xf0]  ;;  %v4993_v39 = vld [vmem:[#allocation6 + $0x308] sm:$0xf0]  ;;  %v3631_v40 = vld [vmem:[#allocation6 + $0x28] sm:$0xf] }
  0x31   :  { %v3992_v41 = vor.u32 %v4993_v39, %v3991_v38  ;;  %v4903_v42 = vld [vmem:[#allocation6 + $0x38] sm:$0xf0]  ;;  %v3791_v44 = vld [vmem:[#allocation6 + $0x168] sm:$0xf]  ;;  %v3971_v47 = vld [vmem:[#allocation6 + $0x2d0] sm:$0xf] }
  0x32   :  { %2258 = vmatpush.bf16.msra.mxu3 %v3752_v57  ;;  %v3632_v43 = vor.u32 %v4903_v42, %v3631_v40  ;;  %v4943_v45 = vld [vmem:[#allocation6 + $0x178] sm:$0xf0]  ;;  %v4988_v48 = vld [vmem:[#allocation6 + $0x2e0] sm:$0xf0]  ;;  %v3611_v50 = vld [vmem:[#allocation6] sm:$0xf] }
  0x33   :  { %2304 = vmatpush.bf16.msra.mxu1 %v4072_v1  ;;  %v3792_v46 = vor.u32 %v4943_v45, %v3791_v44  ;;  %v3972_v49 = vor.u32 %v4988_v48, %v3971_v47  ;;  %v4898_v51 = vld [vmem:[#allocation6 + $0x10] sm:$0xf0]  ;;  %v3771_v52 = vld [vmem:[#allocation6 + $0x140] sm:$0xf]  ;;  %v3951_v56 = vld [vmem:[#allocation6 + $0x2a8] sm:$0xf] }
  0x34   :  { %2281 = vmatpush.bf16.msra.mxu0 %v3912_v61  ;;  %v4938_v54 = vld [vmem:[#allocation6 + $0x150] sm:$0xf0]  ;;  %v4983_v57 = vld [vmem:[#allocation6 + $0x2b8] sm:$0xf0]  ;;  %v4231_v59 = vld [vmem:[#allocation6 + $0x4d8] sm:$0xf] }
  0x35   :  { %v3772_v55 = vor.u32 %v4938_v54, %v3771_v52  ;;  %v3952_v58 = vor.u32 %v4983_v57, %v3951_v56  ;;  %v5053_v60 = vld [vmem:[#allocation6 + $0x4e8] sm:$0xf0]  ;;  %v3931_v62 = vld [vmem:[#allocation6 + $0x280] sm:$0xf]  ;;  %v4978_v63 = vld [vmem:[#allocation6 + $0x290] sm:$0xf0] }
  0x36   :  { %2259 = vmatpush.bf16.msra.mxu3 %v3732_v0  ;;  %v4232_v61 = vor.u32 %v5053_v60, %v4231_v59  ;;  %v3932_v0 = vor.u32 %v4978_v63, %v3931_v62  ;;  %v4391_v1 = vld [vmem:[#allocation6 + $0x618] sm:$0xf]  ;;  %v5093_v2 = vld [vmem:[#allocation6 + $0x628] sm:$0xf0]  ;;  %v4211_v3 = vld [vmem:[#allocation6 + $0x4b0] sm:$0xf] }
  0x37   :  { %2305 = vmatpush.bf16.msra.mxu1 %v4052_v9  ;;  %v4392_v4 = vor.u32 %v5093_v2, %v4391_v1  ;;  %v5048_v5 = vld [vmem:[#allocation6 + $0x4c0] sm:$0xf0]  ;;  %v4371_v7 = vld [vmem:[#allocation6 + $0x5f0] sm:$0xf]  ;;  %v4551_v10 = vld [vmem:[#allocation6 + $0x758] sm:$0xf] }
  0x38   :  { %2282 = vmatpush.bf16.msra.mxu0 %v3892_v6  ;;  %2327 = vmatpush.bf16.msra.mxu2 %v4232_v61  ;;  %v4212_v6 = vor.u32 %v5048_v5, %v4211_v3  ;;  %v5088_v8 = vld [vmem:[#allocation6 + $0x600] sm:$0xf0]  ;;  %v5133_v11 = vld [vmem:[#allocation6 + $0x768] sm:$0xf0]  ;;  %v4191_v13 = vld [vmem:[#allocation6 + $0x488] sm:$0xf] }
  0x39   :  { %3590 = vmatmul.msk.bf16.gmra.mxu3 %vm205_vm1, %v5493_v53  ;;  %3600 = vmatmul.msk.bf16.vlgmr.msrb.gmra.mxu0 %vm205_vm1, %v120_v34  ;;  %v4372_v9 = vor.u32 %v5088_v8, %v4371_v7  ;;  %v4552_v12 = vor.u32 %v5133_v11, %v4551_v10  ;;  %v4711_v16 = vld [vmem:[#allocation6 + $0x898] sm:$0xf]  ;;  %v4351_v18 = vld [vmem:[#allocation6 + $0x5c8] sm:$0xf]  ;;  %v5083_v20 = vld [vmem:[#allocation6 + $0x5d8] sm:$0xf0] }
  0x3a   :  { %3592 = vmatmul.msk.bf16.gmra.mxu1 %vm205_vm1, %v5479_v35  ;;  %2260 = vmatpush.bf16.msra.mxu3 %v3712_v14  ;;  %v5043_v14 = vld [vmem:[#allocation6 + $0x498] sm:$0xf0]  ;;  %v4531_v21 = vld [vmem:[#allocation6 + $0x730] sm:$0xf]  ;;  %v5128_v22 = vld [vmem:[#allocation6 + $0x740] sm:$0xf0] }
  0x3b   :  { %2306 = vmatpush.bf16.msra.mxu1 %v4032_v17  ;;  %v5173_v17 = vld [vmem:[#allocation6 + $0x8a8] sm:$0xf0]  ;;  %v4532_v26 = vor.u32 %v5128_v22, %v4531_v21  ;;  %v5038_v28 = vld [vmem:[#allocation6 + $0x470] sm:$0xf0]  ;;  %v4331_v40 = vld [vmem:[#allocation6 + $0x5a0] sm:$0xf] }
  0x3c   :  { %3595 = vmatmul.msk.bf16.gmra.mxu2 %vm205_vm1, %v5479_v35  ;;  %2283 = vmatpush.bf16.msra.mxu0 %v3872_v15  ;;  %v4192_v15 = vor.u32 %v5043_v14, %v4191_v13  ;;  %v4712_v19 = vor.u32 %v5173_v17, %v4711_v16  ;;  %v4511_v42 = vld [vmem:[#allocation6 + $0x708] sm:$0xf]  ;;  %v5123_v47 = vld [vmem:[#allocation6 + $0x718] sm:$0xf0]  ;;  %v5028_v54 = vld [vmem:[#allocation6 + $0x420] sm:$0xf0] }
  0x3d   :  { %2328 = vmatpush.bf16.msra.mxu2 %v4212_v6  ;;  %v4671_v48 = vld [vmem:[#allocation6 + $0x848] sm:$0xf]  ;;  %v4491_v61 = vld [vmem:[#allocation6 + $0x6e0] sm:$0xf]  ;;  %v5118_v62 = vld [vmem:[#allocation6 + $0x6f0] sm:$0xf0] }
  0x3e   :  { %2261 = vmatpush.bf16.msra.mxu3 %v3692_v23  ;;  %v5525_v23 = vld [vmem:[#allocation4] sm:$0xff]  ;;  %v4492_v1 = vor.u32 %v5118_v62, %v4491_v61  ;;  %v4651_v7 = vld [vmem:[#allocation6 + $0x820] sm:$0xf]  ;;  %v5158_v8 = vld [vmem:[#allocation6 + $0x830] sm:$0xf0] }
  0x3f   :  { %2307 = vmatpush.bf16.msra.mxu1 %v4012_v27  ;;  %v4171_v27 = vld [vmem:[#allocation6 + $0x460] sm:$0xf]  ;;  %v5539_v59 = vperm.slane %v5525_v23, 2  ;;  %v4311_v3 = vld [vmem:[#allocation6 + $0x578] sm:$0xf] }
  0x40   :  { %2284 = vmatpush.bf16.msra.mxu0 %v3852_v25  ;;  %v4352_v25 = vor.u32 %v5083_v20, %v4351_v18  ;;  %v4291_v13 = vld [vmem:[#allocation6 + $0x550] sm:$0xf]  ;;  %v5068_v14 = vld [vmem:[#allocation6 + $0x560] sm:$0xf0]  ;;  %v5023_v18 = vld [vmem:[#allocation6 + $0x3f8] sm:$0xf0] }
  0x41   :  { %2329 = vmatpush.bf16.msra.mxu2 %v4192_v15  ;;  %v4111_v15 = vld [vmem:[#allocation6 + $0x3e8] sm:$0xf]  ;;  %v4292_v17 = vor.u32 %v5068_v14, %v4291_v13  ;;  %v5113_v20 = vld [vmem:[#allocation6 + $0x6c8] sm:$0xf0]  ;;  %v4251_v62 = vld [vmem:[#allocation6 + $0x500] sm:$0xf] }
  0x42   :  { %2262 = vmatpush.bf16.msra.mxu3 %v3672_v30  ;;  %v4172_v30 = vor.u32 %v5038_v28, %v4171_v27  ;;  %v5018_v27 = vld [vmem:[#allocation6 + $0x3d0] sm:$0xf0]  ;;  %v4931_v14 = vld [vmem:[#allocation6 + $0x11c] sm:$0xf] }
  0x43   :  { %2308 = vmatpush.bf16.msra.mxu1 %v3992_v41  ;;  %v5078_v41 = vld [vmem:[#allocation6 + $0x5b0] sm:$0xf0] }
  0x44   :  { %2285 = vmatpush.bf16.msra.mxu0 %v3832_v31  ;;  %v5528_v31 = vperm.slane %v5525_v23, 1 }
  0x45   :  { %2330 = vmatpush.bf16.msra.mxu2 %v4172_v30 }
  0x47   :  { %2309 = vmatpush.bf16.msra.mxu1 %v3972_v49  ;;  %v5163_v49 = vld [vmem:[#allocation6 + $0x858] sm:$0xf0] }
  0x48   :  { %v4672_v52 = vor.u32 %v5163_v49, %v4671_v48  ;;  %v4431_v49 = vld [vmem:[#allocation6 + $0x668] sm:$0xf] }
  0x49   :  { %3597 = vmatmul.msk.bf16.vlgmr.msrb.gmra.mxu3 %vm205_vm1, %v120_v34  ;;  %3601 = vmatmul.msk.bf16.gmra.mxu0 %vm205_vm1, %v5479_v35 }
  0x4a   :  { %3593 = vmatmul.msk.bf16.gmra.mxu1 %vm205_vm1, %v5493_v53 }
  0x4b   :  { %2310 = vmatpush.bf16.msra.mxu1 %v3952_v58 }
  0x4c   :  { %3596 = vmatmul.msk.bf16.gmra.mxu2 %vm205_vm1, %v5493_v53 }
  0x4f   :  { %2311 = vmatpush.bf16.msra.mxu1 %v3932_v0 }
  0x59   :  { %3598 = vmatmul.msk.bf16.gmra.mxu3 %vm205_vm1, %v5479_v35  ;;  %3602 = vmatmul.msk.bf16.gmra.mxu0 %vm205_vm1, %v5493_v53 }
  0x5a   :  { %3603 = vmatmul.msk.bf16.vlgmr.msrb.gmra.mxu1 %vm205_vm1, %v120_v34 }
  0x5b   :  { %2396 = vmatpush.bf16.msrb.mxu1 %v4712_v19  ;;  %v4471_v19 = vld [vmem:[#allocation6 + $0x6b8] sm:$0xf] }
  0x5c   :  { %3606 = vmatmul.msk.bf16.vlgmr.msrb.gmra.mxu2 %vm205_vm1, %v120_v34  ;;  %v3652_v34 = vor.u32 %v4908_v33, %v3651_v32  ;;  %v5531_v32 = vperm.slane %v5525_v23, 0  ;;  %v4691_v33 = vld [vmem:[#allocation6 + $0x870] sm:$0xf] }
  0x5e   :  { %2263 = vmatpush.bf16.msra.mxu3 %v3652_v34  ;;  %v5168_v34 = vld [vmem:[#allocation6 + $0x880] sm:$0xf0] }
  0x62   :  { %2264 = vmatpush.bf16.msra.mxu3 %v3632_v43 }
  0x69   :  { %3599 = vmatmul.msk.bf16.gmra.mxu3 %vm205_vm1, %v5493_v53 }
  0x6a   :  { %3604 = vmatmul.msk.bf16.gmra.mxu1 %vm205_vm1, %v5479_v35 }
  0x6c   :  { %3607 = vmatmul.msk.bf16.gmra.mxu2 %vm205_vm1, %v5479_v35  ;;  %v3812_v35 = vor.u32 %v4948_v37, %v3811_v36  ;;  %v4692_v36 = vor.u32 %v5168_v34, %v4691_v33  ;;  %v4151_v37 = vld [vmem:[#allocation6 + $0x438] sm:$0xf]  ;;  %v4451_v34 = vld [vmem:[#allocation6 + $0x690] sm:$0xf] }
  0x6e   :  { %2286 = vmatpush.bf16.msra.mxu0 %v3812_v35  ;;  %v5033_v35 = vld [vmem:[#allocation6 + $0x448] sm:$0xf0]  ;;  %2397 = vmatpush.bf16.msrb.mxu1 %v4692_v36  ;;  %v5108_v36 = vld [vmem:[#allocation6 + $0x6a0] sm:$0xf0] }
  0x6f   :  { %v4152_v43 = vor.u32 %v5033_v35, %v4151_v37  ;;  %v4452_v37 = vor.u32 %v5108_v36, %v4451_v34  ;;  %v5577_v36 = vperm.slane %v5525_v23, 3 }
  0x71   :  { %2331 = vmatpush.bf16.msra.mxu2 %v4152_v43 }
  0x72   :  { %2287 = vmatpush.bf16.msra.mxu0 %v3792_v46  ;;  %v4332_v46 = vor.u32 %v5078_v41, %v4331_v40  ;;  %2398 = vmatpush.bf16.msrb.mxu1 %v4672_v52  ;;  %v5153_v40 = vld [vmem:[#allocation6 + $0x808] sm:$0xf0] }
  0x76   :  { %2288 = vmatpush.bf16.msra.mxu0 %v3772_v55 }
  0x7a   :  { %3605 = vmatmul.msk.bf16.gmra.mxu1 %vm205_vm1, %v5493_v53  ;;  %2373 = vmatpush.bf16.msrb.mxu0 %v4552_v12  ;;  %v4652_v12 = vor.u32 %v5158_v8, %v4651_v7  ;;  %v5143_v7 = vld [vmem:[#allocation6 + $0x7b8] sm:$0xf0] }
  0x7c   :  { %3608 = vmatmul.msk.bf16.gmra.mxu2 %vm205_vm1, %v5493_v53  ;;  %v3612_v53 = vor.u32 %v4898_v51, %v3611_v50  ;;  %v4512_v51 = vor.u32 %v5123_v47, %v4511_v42  ;;  %2399 = vmatpush.bf16.msrb.mxu1 %v4652_v12 }
  0x7e   :  { %2265 = vmatpush.bf16.msra.mxu3 %v3612_v53  ;;  %2374 = vmatpush.bf16.msrb.mxu0 %v4532_v26  ;;  %v4131_v53 = vld [vmem:[#allocation6 + $0x410] sm:$0xf]  ;;  %v4091_v26 = vld [vmem:[#allocation6 + $0x3c0] sm:$0xf] }
  0x7f   :  { %v4132_v57 = vor.u32 %v5028_v54, %v4131_v53  ;;  %v4092_v33 = vor.u32 %v5018_v27, %v4091_v26  ;;  %v5148_v54 = vld [vmem:[#allocation6 + $0x7e0] sm:$0xf0] }
  0x81   :  { %2332 = vmatpush.bf16.msra.mxu2 %v4132_v57 }
  0x82   :  { %2350 = vmatpush.bf16.msrb.mxu3 %v4392_v4  ;;  %2375 = vmatpush.bf16.msrb.mxu0 %v4512_v51  ;;  %v5073_v4 = vld [vmem:[#allocation6 + $0x588] sm:$0xf0] }
  0x83   :  { %v4312_v6 = vor.u32 %v5073_v4, %v4311_v3 }
  0x86   :  { %2351 = vmatpush.bf16.msrb.mxu3 %v4372_v9  ;;  %2376 = vmatpush.bf16.msrb.mxu0 %v4492_v1  ;;  %v4411_v1 = vld [vmem:[#allocation6 + $0x640] sm:$0xf] }
  0x8a   :  { %2352 = vmatpush.bf16.msrb.mxu3 %v4352_v25  ;;  %v4472_v25 = vor.u32 %v5113_v20, %v4471_v19  ;;  %v4571_v20 = vld [vmem:[#allocation6 + $0x780] sm:$0xf] }
  0x8c   :  { %2377 = vmatpush.bf16.msrb.mxu0 %v4472_v25 }
  0x8e   :  { %2353 = vmatpush.bf16.msrb.mxu3 %v4332_v46 }
  0x90   :  { %2378 = vmatpush.bf16.msrb.mxu0 %v4452_v37 }
  0x92   :  { %2354 = vmatpush.bf16.msrb.mxu3 %v4312_v6  ;;  %v4591_v6 = vld [vmem:[#allocation6 + $0x7a8] sm:$0xf] }
  0x96   :  { %2355 = vmatpush.bf16.msrb.mxu3 %v4292_v17 }
  0xa6   :  { %v246_v24 = vpop.f32.mrf.mxu0 }
  0xa7   :  { %v269_v29 = vpop.f32.mrf.mxu1  ;;  %v247_v44 = vadd.f32 %v246_v24, %v5531_v32  ;;  %v4112_v24 = vor.u32 %v5023_v18, %v4111_v15  ;;  %v3753_v15 = vld [vmem:[#allocation6 + $0x12c] sm:$0xf0] }
  0xa8   :  { %v270_v38 = vadd.f32 %v269_v29, %v5528_v31  ;;  %v3756_v17 = vor.u32 %v4931_v14, %v3753_v15  ;;  %v3693_v14 = vld [vmem:[#allocation6 + $0xb4] sm:$0xf0]  ;;  %v5592_v15 = vperm.slane %v5525_v23, 4 }
  0xa9   :  { %v398_v63 = vmax.f32 %v247_v44, 0.0  ;;  %2333 = vmatpush.bf16.msra.mxu2 %v4112_v24  ;;  %v4271_v44 = vld [vmem:[#allocation6 + $0x528] sm:$0xf] }
  0xaa   :  { %v399_v58 = vmax.f32 %v270_v38, 0.0  ;;  %v4631_v38 = vld [vmem:[#allocation6 + $0x7f8] sm:$0xf] }
  0xab   :  { %v4632_v43 = vor.u32 %v5153_v40, %v4631_v38  ;;  %v4926_v38 = vld [vmem:[#allocation6 + $0xf4] sm:$0xf]  ;;  %v3733_v40 = vld [vmem:[#allocation6 + $0x104] sm:$0xf0] }
  0xac   :  { %v5534_v39 = vpop.f32.mrf.mxu3 }
  0xad   :  { %v252_v41 = vadd.f32 %v5534_v39, %v5531_v32  ;;  %2334 = vmatpush.bf16.msra.mxu2 %v4092_v33  ;;  %2400 = vmatpush.bf16.msrb.mxu1 %v4632_v43  ;;  %v4611_v39 = vld [vmem:[#allocation6 + $0x7d0] sm:$0xf]  ;;  %v4966_v43 = vld [vmem:[#allocation6 + $0x234] sm:$0xf] }
  0xae   :  { %v248_v50 = vpop.f32.mrf.mxu0  ;;  %v3913_v33 = vld [vmem:[#allocation6 + $0x26c] sm:$0xf0] }
  0xaf   :  { %v292_v45 = vpop.f32.mrf.mxu2  ;;  %v249_v55 = vadd.f32 %v248_v50, %v5531_v32  ;;  %v271_v56 = vpop.f32.mrf.mxu1  ;;  %v5103_v50 = vld [vmem:[#allocation6 + $0x678] sm:$0xf0] }
  0xb0   :  { %v272_v60 = vadd.f32 %v271_v56, %v5528_v31  ;;  %v293_v9 = vadd.f32 %v292_v45, %v5539_v59  ;;  %v5063_v45 = vld [vmem:[#allocation6 + $0x538] sm:$0xf0]  ;;  %v4432_v52 = vor.u32 %v5103_v50, %v4431_v49 }
  0xb1   :  { %v405_v0 = vmax.f32 %v249_v55, 0.0  ;;  %v4272_v48 = vor.u32 %v5063_v45, %v4271_v44  ;;  %v412_v55 = vmax.f32 %v252_v41, 0.0  ;;  %2419 = vmatpush.bf16.msrb.mxu2 %v3756_v17  ;;  %v3893_v44 = vld [vmem:[#allocation6 + $0x244] sm:$0xf0]  ;;  %v5011_v50 = vld [vmem:[#allocation6 + $0x39c] sm:$0xf] }
  0xb2   :  { %v406_v2 = vmax.f32 %v272_v60, 0.0  ;;  %v400_v29 = vmax.f32 %v293_v9, 0.0  ;;  %2379 = vmatpush.bf16.msrb.mxu0 %v4432_v52  ;;  %v4592_v9 = vor.u32 %v5143_v7, %v4591_v6  ;;  %v4053_v6 = vld [vmem:[#allocation6 + $0x384] sm:$0xf0] }
  0xb3   :  { %v5542_v5 = vpack.c.bf16 %v405_v0, %v398_v63  ;;  %2356 = vmatpush.bf16.msrb.mxu3 %v4272_v48  ;;  %v5058_v63 = vld [vmem:[#allocation6 + $0x510] sm:$0xf0] }
  0xb4   :  { %v5545_v10 = vpack.c.bf16 %v406_v2, %v399_v58  ;;  %v253_v11 = vpop.f32.mrf.mxu3  ;;  %v4612_v58 = vor.u32 %v5148_v54, %v4611_v39  ;;  %v4252_v0 = vor.u32 %v5058_v63, %v4251_v62  ;;  %v5098_v2 = vld [vmem:[#allocation6 + $0x650] sm:$0xf0]  ;;  %v5051_v62 = vld [vmem:[#allocation6 + $0x4dc] sm:$0xf]  ;;  %v4233_v63 = vld [vmem:[#allocation6 + $0x4ec] sm:$0xf0] }
  0xb5   :  { %2266 = vmatmul.bf16.vlgmr.msra.gmra.mxu3 %v5542_v5  ;;  %v254_v42 = vadd.f32 %v253_v11, %v5531_v32  ;;  %v4412_v4 = vor.u32 %v5098_v2, %v4411_v1 }
  0xb6   :  { %2289 = vmatmul.bf16.vlgmr.msra.gmra.mxu0 %v5545_v10  ;;  %v5550_v22 = vpop.f32.mrf.mxu0  ;;  %2401 = vmatpush.bf16.msrb.mxu1 %v4612_v58 }
  0xb7   :  { %v294_v16 = vpop.f32.mrf.mxu2  ;;  %v274_v28 = vpop.f32.mrf.mxu1  ;;  %v419_v56 = vmax.f32 %v254_v42, 0.0  ;;  %2357 = vmatpush.bf16.msrb.mxu3 %v4252_v0  ;;  %2380 = vmatpush.bf16.msrb.mxu0 %v4412_v4  ;;  %v3736_v42 = vor.u32 %v4926_v38, %v3733_v40  ;;  %v4961_v0 = vld [vmem:[#allocation6 + $0x20c] sm:$0xf]  ;;  %v3873_v4 = vld [vmem:[#allocation6 + $0x21c] sm:$0xf0] }
  0xb8   :  { %v295_v21 = vadd.f32 %v294_v16, %v5539_v59  ;;  %v275_v46 = vadd.f32 %v274_v28, %v5528_v31  ;;  %v5001_v38 = vld [vmem:[#allocation6 + $0x34c] sm:$0xf] }
  0xb9   :  { %v5562_v8 = vpack.c.bf16 %v419_v56, %v412_v55  ;;  %2420 = vmatpush.bf16.msrb.mxu2 %v3736_v42  ;;  %v4921_v55 = vld [vmem:[#allocation6 + $0xcc] sm:$0xf]  ;;  %v3713_v56 = vld [vmem:[#allocation6 + $0xdc] sm:$0xf0] }
  0xba   :  { %v407_v30 = vmax.f32 %v295_v21, 0.0  ;;  %v413_v60 = vmax.f32 %v275_v46, 0.0  ;;  %2402 = vmatpush.bf16.msrb.mxu1 %v4592_v9  ;;  %v5138_v21 = vld [vmem:[#allocation6 + $0x790] sm:$0xf0]  ;;  %v3876_v9 = vor.u32 %v4961_v0, %v3873_v4 }
  0xbb   :  { %v4572_v25 = vor.u32 %v5138_v21, %v4571_v20  ;;  %v5597_v21 = vperm.slane %v5525_v23, 5 }
  0xbc   :  { %v5552_v35 = vpack.c.bf16 %v407_v30, %v400_v29  ;;  %v256_v47 = vpop.f32.mrf.mxu3  ;;  %v4971_v30 = vld [vmem:[#allocation6 + $0x25c] sm:$0xf] }
  0xbd   :  { %v257_v34 = vadd.f32 %v256_v47, %v5531_v32  ;;  %v3916_v37 = vor.u32 %v4971_v30, %v3913_v33 }
  0xbe   :  { %2312 = vmatmul.bf16.vlgmr.msra.gmra.mxu1 %v5552_v35  ;;  %v5559_v53 = vpop.f32.mrf.mxu0 }
  0xbf   :  { %v297_v51 = vpop.f32.mrf.mxu2  ;;  %v276_v57 = vpop.f32.mrf.mxu1  ;;  %2403 = vmatpush.bf16.msrb.mxu1 %v4572_v25  ;;  %2442 = vmatpush.bf16.msra.mxu3 %v3916_v37  ;;  %v426_v48 = vmax.f32 %v257_v34, 0.0  ;;  %v341_v30 = vadd.f32 %v5559_v53, %v5592_v15  ;;  %v4956_v34 = vld [vmem:[#allocation6 + $0x1e4] sm:$0xf]  ;;  %v3853_v37 = vld [vmem:[#allocation6 + $0x1f4] sm:$0xf0] }
  0xc0   :  { %v277_v61 = vadd.f32 %v276_v57, %v5528_v31  ;;  %v298_v11 = vadd.f32 %v297_v51, %v5539_v59  ;;  %v4073_v51 = vld [vmem:[#allocation6 + $0x3ac] sm:$0xf0]  ;;  %v3856_v42 = vor.u32 %v4956_v34, %v3853_v37  ;;  %v4193_v53 = vld [vmem:[#allocation6 + $0x49c] sm:$0xf0] }
  0xc1   :  { %v4076_v52 = vor.u32 %v5011_v50, %v4073_v51  ;;  %v5586_v57 = vpack.c.bf16 %v426_v48, %v426_v48  ;;  %v3833_v50 = vld [vmem:[#allocation6 + $0x1cc] sm:$0xf0]  ;;  %v4996_v51 = vld [vmem:[#allocation6 + $0x324] sm:$0xf] }
  0xc2   :  { %v420_v3 = vmax.f32 %v277_v61, 0.0  ;;  %v414_v26 = vmax.f32 %v298_v11, 0.0 }
  0xc3   :  { %2465 = vmatpush.bf16.msra.mxu0 %v4076_v52 }
  0xc4   :  { %v5565_v12 = vpack.c.bf16 %v420_v3, %v413_v60  ;;  %v258_v13 = vpop.f32.mrf.mxu3  ;;  %v3716_v60 = vor.u32 %v4921_v55, %v3713_v56  ;;  %v4236_v3 = vor.u32 %v5051_v62, %v4233_v63  ;;  %v5611_v63 = vperm.slane %v5525_v23, 6  ;;  %v3813_v23 = vld [vmem:[#allocation6 + $0x1a4] sm:$0xf0] }
  0xc5   :  { %2271 = vmatmul.bf16.gmra.mxu3 %v5562_v8  ;;  %v4916_v13 = vld [vmem:[#allocation6 + $0xa4] sm:$0xf] }
  0xc6   :  { %2294 = vmatmul.bf16.gmra.mxu0 %v5565_v12  ;;  %v5570_v19 = vpop.f32.mrf.mxu0  ;;  %2421 = vmatpush.bf16.msrb.mxu2 %v3716_v60  ;;  %v4013_v60 = vld [vmem:[#allocation6 + $0x334] sm:$0xf0] }
  0xc7   :  { %v299_v16 = vpop.f32.mrf.mxu2  ;;  %v279_v24 = vpop.f32.mrf.mxu1  ;;  %2488 = vmatpush.bf16.msra.mxu1 %v4236_v3 }
  0xc8   :  { %v300_v18 = vadd.f32 %v299_v16, %v5539_v59  ;;  %v280_v29 = vadd.f32 %v279_v24, %v5528_v31  ;;  %v3896_v31 = vor.u32 %v4966_v43, %v3893_v44  ;;  %v4033_v43 = vld [vmem:[#allocation6 + $0x35c] sm:$0xf0]  ;;  %v4911_v44 = vld [vmem:[#allocation6 + $0x7c] sm:$0xf] }
  0xca   :  { %v421_v27 = vmax.f32 %v300_v18, 0.0  ;;  %v427_v46 = vmax.f32 %v280_v29, 0.0  ;;  %2443 = vmatpush.bf16.msra.mxu3 %v3896_v31  ;;  %v3696_v18 = vor.u32 %v4916_v13, %v3693_v14  ;;  %v339_v29 = vadd.f32 %v5550_v22, %v5592_v15  ;;  %v3673_v31 = vld [vmem:[#allocation6 + $0x8c] sm:$0xf0]  ;;  %v4946_v13 = vld [vmem:[#allocation6 + $0x194] sm:$0xf] }
  0xcb   :  { %v4036_v22 = vor.u32 %v5001_v38, %v4033_v43  ;;  %v3676_v48 = vor.u32 %v4911_v44, %v3673_v31  ;;  %v4901_v14 = vld [vmem:[#allocation6 + $0x2c] sm:$0xf]  ;;  %v4153_v43 = vld [vmem:[#allocation6 + $0x44c] sm:$0xf0]  ;;  %v4896_v44 = vld [vmem:[#allocation6 + $0x4] sm:$0xf] }
  0xcc   :  { %v5572_v28 = vpack.c.bf16 %v421_v27, %v414_v26  ;;  %v315_v41 = vpop.f32.mrf.mxu3  ;;  %v5583_v39 = vpack.c.bf16 %v427_v46, %v427_v46  ;;  %2422 = vmatpush.bf16.msrb.mxu2 %v3696_v18  ;;  %v5046_v26 = vld [vmem:[#allocation6 + $0x4b4] sm:$0xf]  ;;  %v4213_v27 = vld [vmem:[#allocation6 + $0x4c4] sm:$0xf0]  ;;  %v5041_v46 = vld [vmem:[#allocation6 + $0x48c] sm:$0xf] }
  0xcd   :  { %v316_v32 = vadd.f32 %v315_v41, %v5577_v36  ;;  %v4216_v33 = vor.u32 %v5046_v26, %v4213_v27  ;;  %v402_v52 = vmax.f32 %v339_v29, 0.0  ;;  %v3816_v26 = vor.u32 %v4946_v13, %v3813_v23  ;;  %v3633_v27 = vld [vmem:[#allocation6 + $0x3c] sm:$0xf0]  ;;  %v4991_v29 = vld [vmem:[#allocation6 + $0x2fc] sm:$0xf] }
  0xce   :  { %2317 = vmatmul.bf16.gmra.mxu1 %v5572_v28  ;;  %v5581_v49 = vpop.f32.mrf.mxu0  ;;  %2444 = vmatpush.bf16.msra.mxu3 %v3876_v9  ;;  %v3636_v38 = vor.u32 %v4901_v14, %v3633_v27  ;;  %v4976_v13 = vld [vmem:[#allocation6 + $0x284] sm:$0xf]  ;;  %v3933_v23 = vld [vmem:[#allocation6 + $0x294] sm:$0xf0]  ;;  %v5021_v14 = vld [vmem:[#allocation6 + $0x3ec] sm:$0xf] }
  0xcf   :  { %v302_v45 = vpop.f32.mrf.mxu2  ;;  %v281_v47 = vpop.f32.mrf.mxu1  ;;  %v401_v58 = vmax.f32 %v316_v32, 0.0  ;;  %2489 = vmatpush.bf16.msra.mxu1 %v4216_v33  ;;  %v4196_v32 = vor.u32 %v5041_v46, %v4193_v53  ;;  %v3613_v46 = vld [vmem:[#allocation6 + $0x14] sm:$0xf0]  ;;  %v4941_v53 = vld [vmem:[#allocation6 + $0x16c] sm:$0xf] }
  0xd0   :  { %v303_v54 = vadd.f32 %v302_v45, %v5539_v59  ;;  %v5006_v59 = vld [vmem:[#allocation6 + $0x374] sm:$0xf]  ;;  %v4951_v47 = vld [vmem:[#allocation6 + $0x1bc] sm:$0xf]  ;;  %2423 = vmatpush.bf16.msrb.mxu2 %v3676_v48 }
  0xd1   :  { %v4056_v11 = vor.u32 %v5006_v59, %v4053_v6  ;;  %v3836_v56 = vor.u32 %v4951_v47, %v3833_v50  ;;  %v5036_v6 = vld [vmem:[#allocation6 + $0x464] sm:$0xf]  ;;  %v3616_v47 = vor.u32 %v4896_v44, %v3613_v46  ;;  %v3793_v50 = vld [vmem:[#allocation6 + $0x17c] sm:$0xf0] }
  0xd2   :  { %v428_v7 = vmax.f32 %v303_v54, 0.0  ;;  %2445 = vmatpush.bf16.msra.mxu3 %v3856_v42  ;;  %v409_v54 = vmax.f32 %v341_v30, 0.0  ;;  %v3993_v30 = vld [vmem:[#allocation6 + $0x30c] sm:$0xf0]  ;;  %v5031_v42 = vld [vmem:[#allocation6 + $0x43c] sm:$0xf] }
  0xd3   :  { %2466 = vmatpush.bf16.msra.mxu0 %v4056_v11  ;;  %2490 = vmatpush.bf16.msra.mxu1 %v4196_v32  ;;  %v4156_v31 = vor.u32 %v5031_v42, %v4153_v43 }
  0xd4   :  { %v317_v61 = vpop.f32.mrf.mxu3  ;;  %v5601_v25 = vpack.c.bf16 %v428_v7, %v428_v7  ;;  %v4173_v7 = vld [vmem:[#allocation6 + $0x474] sm:$0xf0]  ;;  %v5615_v9 = vpack.c.bf16 %v409_v54, %v402_v52  ;;  %v3796_v54 = vor.u32 %v4941_v53, %v3793_v50 }
  0xd5   :  { %v318_v2 = vadd.f32 %v317_v61, %v5577_v36  ;;  %2276 = vmatmul.bf16.gmra.mxu3 %v5586_v57  ;;  %v4906_v61 = vld [vmem:[#allocation6 + $0x54] sm:$0xf]  ;;  %v4176_v11 = vor.u32 %v5036_v6, %v4173_v7  ;;  %v3953_v6 = vld [vmem:[#allocation6 + $0x2bc] sm:$0xf0]  ;;  %v3773_v7 = vld [vmem:[#allocation6 + $0x154] sm:$0xf0] }
  0xd6   :  { %2299 = vmatmul.bf16.gmra.mxu0 %v5583_v39  ;;  %v5594_v20 = vpop.f32.mrf.mxu0  ;;  %2446 = vmatpush.bf16.msra.mxu3 %v3836_v56 }
  0xd7   :  { %v304_v1 = vpop.f32.mrf.mxu2  ;;  %v408_v16 = vmax.f32 %v318_v2, 0.0  ;;  %v361_v17 = vpop.f32.mrf.mxu1  ;;  %2467 = vmatpush.bf16.msra.mxu0 %v4036_v22  ;;  %v3653_v2 = vld [vmem:[#allocation6 + $0x64] sm:$0xf0]  ;;  %2491 = vmatpush.bf16.msra.mxu1 %v4176_v11 }
  0xd8   :  { %v362_v40 = vadd.f32 %v361_v17, %v5597_v21  ;;  %v4016_v1 = vor.u32 %v4996_v51, %v4013_v60  ;;  %v3656_v4 = vor.u32 %v4906_v61, %v3653_v2  ;;  %v4986_v51 = vld [vmem:[#allocation6 + $0x2d4] sm:$0xf]  ;;  %v344_v60 = vadd.f32 %v5570_v19, %v5592_v15  ;;  %v4133_v2 = vld [vmem:[#allocation6 + $0x424] sm:$0xf0]  ;;  %v4936_v19 = vld [vmem:[#allocation6 + $0x144] sm:$0xf] }
  0xd9   :  { %v5599_v24 = vpack.c.bf16 %v408_v16, %v401_v58  ;;  %v346_v61 = vadd.f32 %v5581_v49, %v5592_v15  ;;  %v3776_v49 = vor.u32 %v4936_v19, %v3773_v7 }
  0xda   :  { %v403_v62 = vmax.f32 %v362_v40, 0.0  ;;  %2424 = vmatpush.bf16.msrb.mxu2 %v3656_v4  ;;  %v3996_v40 = vor.u32 %v4991_v29, %v3993_v30  ;;  %2447 = vmatpush.bf16.msra.mxu3 %v3816_v26  ;;  %v4113_v29 = vld [vmem:[#allocation6 + $0x3fc] sm:$0xf0]  ;;  %v5091_v30 = vld [vmem:[#allocation6 + $0x61c] sm:$0xf] }
  0xdb   :  { %2335 = vmatmul.bf16.vlgmr.msra.gmra.mxu2 %v5599_v24  ;;  %2468 = vmatpush.bf16.msra.mxu0 %v4016_v1  ;;  %v5026_v1 = vld [vmem:[#allocation6 + $0x414] sm:$0xf] }
  0xdc   :  { %v320_v41 = vpop.f32.mrf.mxu3  ;;  %2492 = vmatpush.bf16.msra.mxu1 %v4156_v31 }
  0xdd   :  { %v321_v3 = vadd.f32 %v320_v41, %v5577_v36 }
  0xde   :  { %2322 = vmatmul.bf16.gmra.mxu1 %v5601_v25  ;;  %v350_v58 = vpop.f32.mrf.mxu0  ;;  %2425 = vmatpush.bf16.msrb.mxu2 %v3636_v38  ;;  %v4393_v38 = vld [vmem:[#allocation6 + $0x62c] sm:$0xf0] }
  0xdf   :  { %v384_v45 = vpop.f32.mrf.mxu2  ;;  %v363_v55 = vpop.f32.mrf.mxu1  ;;  %v415_v33 = vmax.f32 %v321_v3, 0.0  ;;  %2469 = vmatpush.bf16.msra.mxu0 %v3996_v40  ;;  %2448 = vmatpush.bf16.msra.mxu3 %v3796_v54  ;;  %v4981_v3 = vld [vmem:[#allocation6 + $0x2ac] sm:$0xf]  ;;  %v4396_v42 = vor.u32 %v5091_v30, %v4393_v38  ;;  %v5166_v30 = vld [vmem:[#allocation6 + $0x874] sm:$0xf] }
  0xe0   :  { %v364_v0 = vadd.f32 %v363_v55, %v5597_v21  ;;  %v385_v16 = vadd.f32 %v384_v45, %v5611_v63  ;;  %v3973_v55 = vld [vmem:[#allocation6 + $0x2e4] sm:$0xf0]  ;;  %v3956_v11 = vor.u32 %v4981_v3, %v3953_v6  ;;  %v5171_v6 = vld [vmem:[#allocation6 + $0x89c] sm:$0xf] }
  0xe1   :  { %v3976_v58 = vor.u32 %v4986_v51, %v3973_v55  ;;  %v349_v51 = vadd.f32 %v5594_v20, %v5592_v15  ;;  %v5126_v15 = vld [vmem:[#allocation6 + $0x734] sm:$0xf]  ;;  %v4533_v20 = vld [vmem:[#allocation6 + $0x744] sm:$0xf0] }
  0xe2   :  { %v410_v59 = vmax.f32 %v364_v0, 0.0  ;;  %v404_v48 = vmax.f32 %v385_v16, 0.0  ;;  %2426 = vmatpush.bf16.msrb.mxu2 %v3616_v47  ;;  %v416_v16 = vmax.f32 %v344_v60, 0.0  ;;  %v5016_v47 = vld [vmem:[#allocation6 + $0x3c4] sm:$0xf]  ;;  %v4536_v7 = vor.u32 %v5126_v15, %v4533_v20 }
  0xe3   :  { %2470 = vmatpush.bf16.msra.mxu0 %v3976_v58  ;;  %2449 = vmatpush.bf16.msra.mxu3 %v3776_v49  ;;  %v4093_v58 = vld [vmem:[#allocation6 + $0x3d4] sm:$0xf0]  ;;  %v5086_v60 = vld [vmem:[#allocation6 + $0x5f4] sm:$0xf]  ;;  %v4353_v49 = vld [vmem:[#allocation6 + $0x5dc] sm:$0xf0] }
  0xe4   :  { %v5618_v17 = vpack.c.bf16 %v410_v59, %v403_v62  ;;  %v322_v18 = vpop.f32.mrf.mxu3  ;;  %v4136_v59 = vor.u32 %v5026_v1, %v4133_v2  ;;  %v4096_v1 = vor.u32 %v5016_v47, %v4093_v58  ;;  %v5156_v15 = vld [vmem:[#allocation6 + $0x824] sm:$0xf]  ;;  %v4653_v20 = vld [vmem:[#allocation6 + $0x834] sm:$0xf0] }
  0xe5   :  { %v323_v34 = vadd.f32 %v322_v18, %v5577_v36  ;;  %2358 = vmatmul.bf16.vlgmr.msrb.gmra.mxu3 %v5615_v9  ;;  %v423_v18 = vmax.f32 %v346_v61, 0.0  ;;  %v4373_v61 = vld [vmem:[#allocation6 + $0x604] sm:$0xf0] }
  0xe6   :  { %2381 = vmatmul.bf16.vlgmr.msrb.gmra.mxu0 %v5618_v17  ;;  %2493 = vmatpush.bf16.msra.mxu1 %v4136_v59  ;;  %v4376_v2 = vor.u32 %v5086_v60, %v4373_v61  ;;  %v5071_v60 = vld [vmem:[#allocation6 + $0x57c] sm:$0xf]  ;;  %v4313_v61 = vld [vmem:[#allocation6 + $0x58c] sm:$0xf0] }
  0xe7   :  { %v386_v37 = vpop.f32.mrf.mxu2  ;;  %v422_v45 = vmax.f32 %v323_v34, 0.0  ;;  %v366_v22 = vpop.f32.mrf.mxu1  ;;  %2471 = vmatpush.bf16.msra.mxu0 %v3956_v11  ;;  %v5638_v44 = vpack.c.bf16 %v423_v18, %v416_v16  ;;  %2511 = vmatpush.bf16.msra.mxu2 %v4396_v42  ;;  %v4713_v11 = vld [vmem:[#allocation6 + $0x8ac] sm:$0xf0]  ;;  %v4934_v16 = vld [vmem:[#allocation6 + $0x130] sm:$0xf0] }
  0xe8   :  { %v387_v41 = vadd.f32 %v386_v37, %v5611_v63  ;;  %v367_v62 = vadd.f32 %v366_v22, %v5597_v21  ;;  %v4116_v37 = vor.u32 %v5021_v14, %v4113_v29  ;;  %v3759_v14 = vld [vmem:[#allocation6 + $0x120] sm:$0xf]  ;;  %v5121_v18 = vld [vmem:[#allocation6 + $0x70c] sm:$0xf] }
  0xe9   :  { %v5624_v52 = vpack.c.bf16 %v422_v45, %v415_v33  ;;  %v4513_v29 = vld [vmem:[#allocation6 + $0x71c] sm:$0xf0] }
  0xea   :  { %v411_v32 = vmax.f32 %v387_v41, 0.0  ;;  %v417_v33 = vmax.f32 %v367_v62, 0.0  ;;  %v3936_v41 = vor.u32 %v4976_v13, %v3933_v23  ;;  %2494 = vmatpush.bf16.msra.mxu1 %v4116_v37  ;;  %v4716_v13 = vor.u32 %v5171_v6, %v4713_v11  ;;  %v4293_v11 = vld [vmem:[#allocation6 + $0x564] sm:$0xf0] }
  0xeb   :  { %2340 = vmatmul.bf16.gmra.mxu2 %v5624_v52  ;;  %v4516_v37 = vor.u32 %v5121_v18, %v4513_v29  ;;  %v5106_v18 = vld [vmem:[#allocation6 + $0x694] sm:$0xf] }
  0xec   :  { %v5626_v56 = vpack.c.bf16 %v411_v32, %v404_v48  ;;  %v325_v0 = vpop.f32.mrf.mxu3  ;;  %2472 = vmatpush.bf16.msra.mxu0 %v3936_v41  ;;  %v5131_v48 = vld [vmem:[#allocation6 + $0x75c] sm:$0xf]  ;;  %v4553_v32 = vld [vmem:[#allocation6 + $0x76c] sm:$0xf0]  ;;  %2512 = vmatpush.bf16.msra.mxu2 %v4376_v2 }
  0xed   :  { %v326_v27 = vadd.f32 %v325_v0, %v5577_v36  ;;  %v4556_v55 = vor.u32 %v5131_v48, %v4553_v32  ;;  %v4493_v48 = vld [vmem:[#allocation6 + $0x6f4] sm:$0xf0]  ;;  %v5111_v2 = vld [vmem:[#allocation6 + $0x6bc] sm:$0xf] }
  0xee   :  { %2404 = vmatmul.bf16.vlgmr.msrb.gmra.mxu1 %v5626_v56 }
  0xef   :  { %v389_v4 = vpop.f32.mrf.mxu2  ;;  %v368_v26 = vpop.f32.mrf.mxu1  ;;  %v429_v45 = vmax.f32 %v326_v27, 0.0  ;;  %2534 = vmatpush.bf16.msrb.mxu3 %v4556_v55  ;;  %2495 = vmatpush.bf16.msra.mxu1 %v4096_v1  ;;  %v3760_v27 = vor.u32 %v4934_v16, %v3759_v14  ;;  %v4673_v55 = vld [vmem:[#allocation6 + $0x85c] sm:$0xf0]  ;;  %v4924_v1 = vld [vmem:[#allocation6 + $0xe0] sm:$0xf0] }
  0xf0   :  { %v369_v34 = vadd.f32 %v368_v26, %v5597_v21  ;;  %v390_v40 = vadd.f32 %v389_v4, %v5611_v63  ;;  %v430_v4 = vmax.f32 %v349_v51, 0.0  ;;  %2557 = vmatpush.bf16.msrb.mxu0 %v4716_v13  ;;  %v4919_v13 = vld [vmem:[#allocation6 + $0xb8] sm:$0xf0]  ;;  %v5061_v14 = vld [vmem:[#allocation6 + $0x52c] sm:$0xf] }
  0xf1   :  { %v5645_v50 = vpack.c.bf16 %v429_v45, %v429_v45  ;;  %v5076_v45 = vld [vmem:[#allocation6 + $0x5a4] sm:$0xf]  ;;  %v4273_v16 = vld [vmem:[#allocation6 + $0x53c] sm:$0xf0] }
  0xf2   :  { %v424_v43 = vmax.f32 %v369_v34, 0.0  ;;  %v418_v31 = vmax.f32 %v390_v40, 0.0  ;;  %v5655_v40 = vpack.c.bf16 %v430_v4, %v430_v4 }
  0xf3   :  { %2535 = vmatpush.bf16.msrb.mxu3 %v4536_v7  ;;  %2580 = vmatpush.bf16.msrb.mxu1 %v3760_v27  ;;  %v5066_v7 = vld [vmem:[#allocation6 + $0x554] sm:$0xf]  ;;  %v4276_v27 = vor.u32 %v5061_v14, %v4273_v16  ;;  %v4899_v14 = vld [vmem:[#allocation6 + $0x18] sm:$0xf0] }
  0xf4   :  { %v5640_v36 = vpack.c.bf16 %v424_v43, %v417_v33  ;;  %v327_v22 = vpop.f32.mrf.mxu3  ;;  %v4693_v33 = vld [vmem:[#allocation6 + $0x884] sm:$0xf0] }
  0xf5   :  { %2363 = vmatmul.bf16.gmra.mxu3 %v5638_v44  ;;  %v4696_v38 = vor.u32 %v5166_v30, %v4693_v33  ;;  %v4333_v22 = vld [vmem:[#allocation6 + $0x5b4] sm:$0xf0]  ;;  %v5151_v30 = vld [vmem:[#allocation6 + $0x7fc] sm:$0xf]  ;;  %v4633_v33 = vld [vmem:[#allocation6 + $0x80c] sm:$0xf0] }
  0xf6   :  { %2386 = vmatmul.bf16.gmra.mxu0 %v5640_v36 }
  0xf7   :  { %v391_v46 = vpop.f32.mrf.mxu2  ;;  %v371_v54 = vpop.f32.mrf.mxu1  ;;  %2536 = vmatpush.bf16.msrb.mxu3 %v4516_v37  ;;  %2558 = vmatpush.bf16.msrb.mxu0 %v4696_v38  ;;  %v3679_v37 = vld [vmem:[#allocation6 + $0x80] sm:$0xf]  ;;  %v4914_v38 = vld [vmem:[#allocation6 + $0x90] sm:$0xf0] }
  0xf8   :  { %v392_v53 = vadd.f32 %v391_v46, %v5611_v63  ;;  %v372_v0 = vadd.f32 %v371_v54, %v5597_v21  ;;  %v5081_v21 = vld [vmem:[#allocation6 + $0x5cc] sm:$0xf] }
  0xf9   :  { %v4356_v23 = vor.u32 %v5081_v21, %v4353_v49  ;;  %v4929_v46 = vld [vmem:[#allocation6 + $0x108] sm:$0xf0]  ;;  %v3699_v21 = vld [vmem:[#allocation6 + $0xa8] sm:$0xf]  ;;  %v4296_v49 = vor.u32 %v5066_v7, %v4293_v11  ;;  %v4974_v7 = vld [vmem:[#allocation6 + $0x270] sm:$0xf0] }
  0xfa   :  { %v425_v62 = vmax.f32 %v392_v53, 0.0  ;;  %v431_v59 = vmax.f32 %v372_v0, 0.0  ;;  %v5116_v53 = vld [vmem:[#allocation6 + $0x6e4] sm:$0xf]  ;;  %v5161_v54 = vld [vmem:[#allocation6 + $0x84c] sm:$0xf] }
  0xfb   :  { %2345 = vmatmul.bf16.gmra.mxu2 %v5645_v50  ;;  %v4496_v51 = vor.u32 %v5116_v53, %v4493_v48  ;;  %v4676_v58 = vor.u32 %v5161_v54, %v4673_v55  ;;  %v3719_v0 = vld [vmem:[#allocation6 + $0xd0] sm:$0xf]  ;;  %v5101_v53 = vld [vmem:[#allocation6 + $0x66c] sm:$0xf]  ;;  %v4433_v48 = vld [vmem:[#allocation6 + $0x67c] sm:$0xf0] }
  0xfc   :  { %v5650_v3 = vpack.c.bf16 %v425_v62, %v418_v31  ;;  %2513 = vmatpush.bf16.msra.mxu2 %v4356_v23  ;;  %v5657_v41 = vpack.c.bf16 %v431_v59, %v431_v59  ;;  %v4336_v31 = vor.u32 %v5076_v45, %v4333_v22  ;;  %v4316_v62 = vor.u32 %v5071_v60, %v4313_v61  ;;  %v4473_v59 = vld [vmem:[#allocation6 + $0x6cc] sm:$0xf0]  ;;  %v4253_v45 = vld [vmem:[#allocation6 + $0x514] sm:$0xf0]  ;;  %v4909_v55 = vld [vmem:[#allocation6 + $0x68] sm:$0xf0] }
  0xfd   :  { %2537 = vmatpush.bf16.msrb.mxu3 %v4496_v51  ;;  %2559 = vmatpush.bf16.msrb.mxu0 %v4676_v58  ;;  %v3720_v4 = vor.u32 %v4924_v1, %v3719_v0  ;;  %v4476_v6 = vor.u32 %v5111_v2, %v4473_v59  ;;  %v3700_v23 = vor.u32 %v4919_v13, %v3699_v21  ;;  %v3659_v54 = vld [vmem:[#allocation6 + $0x58] sm:$0xf]  ;;  %v4593_v58 = vld [vmem:[#allocation6 + $0x7bc] sm:$0xf0]  ;;  %v5136_v2 = vld [vmem:[#allocation6 + $0x784] sm:$0xf] }
  0xfe   :  { %2409 = vmatmul.bf16.gmra.mxu1 %v5650_v3  ;;  %v4436_v51 = vor.u32 %v5101_v53, %v4433_v48  ;;  %v3660_v60 = vor.u32 %v4909_v55, %v3659_v54  ;;  %v4413_v0 = vld [vmem:[#allocation6 + $0x654] sm:$0xf0]  ;;  %v4079_v21 = vld [vmem:[#allocation6 + $0x3a0] sm:$0xf]  ;;  %v3619_v13 = vld [vmem:[#allocation6 + $0x8] sm:$0xf] }
  0xff   :  { %v394_v19 = vpop.f32.mrf.mxu2  ;;  %v373_v26 = vpop.f32.mrf.mxu1  ;;  %v3620_v16 = vor.u32 %v4899_v14, %v3619_v13  ;;  %v4219_v54 = vld [vmem:[#allocation6 + $0x4b8] sm:$0xf]  ;;  %v4199_v14 = vld [vmem:[#allocation6 + $0x490] sm:$0xf] }
 0x100   :  { %v395_v34 = vadd.f32 %v394_v19, %v5611_v63  ;;  %v3739_v63 = vld [vmem:[#allocation6 + $0xf8] sm:$0xf]  ;;  %2514 = vmatpush.bf16.msra.mxu2 %v4336_v31  ;;  %v4656_v19 = vor.u32 %v5156_v15, %v4653_v20  ;;  %v4453_v26 = vld [vmem:[#allocation6 + $0x6a4] sm:$0xf0]  ;;  %v3639_v15 = vld [vmem:[#allocation6 + $0x30] sm:$0xf] }
 0x101   :  { %v3740_v47 = vor.u32 %v4929_v46, %v3739_v63  ;;  %2538 = vmatpush.bf16.msrb.mxu3 %v4476_v6  ;;  %v4456_v29 = vor.u32 %v5106_v18, %v4453_v26  ;;  %v5146_v63 = vld [vmem:[#allocation6 + $0x7d4] sm:$0xf]  ;;  %v4613_v31 = vld [vmem:[#allocation6 + $0x7e4] sm:$0xf0]  ;;  %v4904_v20 = vld [vmem:[#allocation6 + $0x40] sm:$0xf0] }
 0x102   :  { %v432_v42 = vmax.f32 %v395_v34, 0.0  ;;  %2560 = vmatpush.bf16.msrb.mxu0 %v4656_v19  ;;  %v4636_v34 = vor.u32 %v5151_v30, %v4633_v33  ;;  %v4616_v46 = vor.u32 %v5146_v63, %v4613_v31  ;;  %v3640_v6 = vor.u32 %v4904_v20, %v3639_v15  ;;  %v3919_v19 = vld [vmem:[#allocation6 + $0x260] sm:$0xf]  ;;  %v3899_v18 = vld [vmem:[#allocation6 + $0x238] sm:$0xf] }
 0x103   :  { %2581 = vmatpush.bf16.msrb.mxu1 %v3740_v47  ;;  %v5141_v47 = vld [vmem:[#allocation6 + $0x7ac] sm:$0xf]  ;;  %v3920_v11 = vor.u32 %v4974_v7, %v3919_v19  ;;  %v4239_v33 = vld [vmem:[#allocation6 + $0x4e0] sm:$0xf]  ;;  %v5094_v63 = vld [vmem:[#allocation6 + $0x630] sm:$0xf0] }
 0x104   :  { %v5661_v32 = vpack.c.bf16 %v432_v42, %v432_v42  ;;  %2515 = vmatpush.bf16.msra.mxu2 %v4316_v62  ;;  %v3680_v42 = vor.u32 %v4914_v38, %v3679_v37  ;;  %v4596_v61 = vor.u32 %v5141_v47, %v4593_v58  ;;  %v5096_v62 = vld [vmem:[#allocation6 + $0x644] sm:$0xf]  ;;  %v4969_v26 = vld [vmem:[#allocation6 + $0x248] sm:$0xf0]  ;;  %v4039_v47 = vld [vmem:[#allocation6 + $0x350] sm:$0xf] }
 0x105   :  { %2368 = vmatmul.bf16.gmra.mxu3 %v5655_v40  ;;  %v4416_v1 = vor.u32 %v5096_v62, %v4413_v0  ;;  %v5009_v30 = vld [vmem:[#allocation6 + $0x388] sm:$0xf0]  ;;  %v5673_v31 = vld [vmem:[#allocation7] sm:$0x1f]  ;;  %v4999_v20 = vld [vmem:[#allocation6 + $0x338] sm:$0xf0] }
 0x106   :  { %2391 = vmatmul.bf16.gmra.mxu0 %v5657_v41  ;;  %2539 = vmatpush.bf16.msrb.mxu3 %v4456_v29  ;;  %v3900_v29 = vor.u32 %v4969_v26, %v3899_v18  ;;  %v5676_v48 = vperm.slane %v5673_v31, 0  ;;  %v5049_v58 = vld [vmem:[#allocation6 + $0x4c8] sm:$0xf0] }
 0x107   :  { %v396_v43 = vpop.f32.mrf.mxu2  ;;  %2582 = vmatpush.bf16.msrb.mxu1 %v3720_v4  ;;  %2561 = vmatpush.bf16.msrb.mxu0 %v4636_v34  ;;  %v4573_v4 = vld [vmem:[#allocation6 + $0x794] sm:$0xf0]  ;;  %v5054_v34 = vld [vmem:[#allocation6 + $0x4f0] sm:$0xf0]  ;;  %v4220_v62 = vor.u32 %v5049_v58, %v4219_v54  ;;  %v5079_v54 = vld [vmem:[#allocation6 + $0x5b8] sm:$0xf0] }
 0x108   :  { %2516 = vmatpush.bf16.msra.mxu2 %v4296_v49  ;;  %v5056_v43 = vld [vmem:[#allocation6 + $0x504] sm:$0xf]  ;;  %v4576_v59 = vor.u32 %v5136_v2, %v4573_v4  ;;  %v5014_v49 = vld [vmem:[#allocation6 + $0x3b0] sm:$0xf0]  ;;  %v4240_v38 = vor.u32 %v5054_v34, %v4239_v33  ;;  %v5089_v2 = vld [vmem:[#allocation6 + $0x608] sm:$0xf0] }
 0x109   :  { %v4256_v22 = vor.u32 %v5056_v43, %v4253_v45  ;;  %v4964_v43 = vld [vmem:[#allocation6 + $0x220] sm:$0xf0]  ;;  %v4399_v45 = vld [vmem:[#allocation6 + $0x620] sm:$0xf]  ;;  %v4019_v4 = vld [vmem:[#allocation6 + $0x328] sm:$0xf] }
 0x10a   :  { %2540 = vmatpush.bf16.msrb.mxu3 %v4436_v51  ;;  %v5004_v51 = vld [vmem:[#allocation6 + $0x360] sm:$0xf0]  ;;  %v4020_v7 = vor.u32 %v4999_v20, %v4019_v4  ;;  %v4994_v34 = vld [vmem:[#allocation6 + $0x310] sm:$0xf0]  ;;  %v3799_v58 = vld [vmem:[#allocation6 + $0x170] sm:$0xf] }
 0x10b   :  { %2427 = vmatmul.bf16.vlgmr.msrb.gmra.mxu2 %v5542_v5  ;;  %2583 = vmatpush.bf16.msrb.mxu1 %v3700_v23  ;;  %v4080_v23 = vor.u32 %v5014_v49, %v4079_v21  ;;  %v4040_v55 = vor.u32 %v5004_v51, %v4039_v47  ;;  %v4954_v21 = vld [vmem:[#allocation6 + $0x1d0] sm:$0xf0]  ;;  %v4339_v51 = vld [vmem:[#allocation6 + $0x5a8] sm:$0xf] }
 0x10c   :  { %2517 = vmatpush.bf16.msra.mxu2 %v4276_v27  ;;  %2562 = vmatpush.bf16.msrb.mxu0 %v4616_v46  ;;  %v4059_v27 = vld [vmem:[#allocation6 + $0x378] sm:$0xf]  ;;  %v4400_v46 = vor.u32 %v5094_v63, %v4399_v45  ;;  %v5039_v45 = vld [vmem:[#allocation6 + $0x478] sm:$0xf0] }
 0x10d   :  { %v4060_v37 = vor.u32 %v5009_v30, %v4059_v27  ;;  %v4359_v27 = vld [vmem:[#allocation6 + $0x5d0] sm:$0xf]  ;;  %v3999_v30 = vld [vmem:[#allocation6 + $0x300] sm:$0xf] }
 0x10e   :  { %2414 = vmatmul.bf16.gmra.mxu1 %v5661_v32  ;;  %2541 = vmatpush.bf16.msrb.mxu3 %v4416_v1  ;;  %v4379_v1 = vld [vmem:[#allocation6 + $0x5f8] sm:$0xf] }
 0x10f   :  { %2584 = vmatpush.bf16.msrb.mxu1 %v3680_v42  ;;  %v3879_v42 = vld [vmem:[#allocation6 + $0x210] sm:$0xf]  ;;  %v4380_v15 = vor.u32 %v5089_v2, %v4379_v1  ;;  %v4989_v1 = vld [vmem:[#allocation6 + $0x2e8] sm:$0xf0] }
 0x110   :  { %2518 = vmatpush.bf16.msra.mxu2 %v4256_v22  ;;  %2563 = vmatpush.bf16.msrb.mxu0 %v4596_v61  ;;  %v3880_v22 = vor.u32 %v4964_v43, %v3879_v42  ;;  %v4959_v61 = vld [vmem:[#allocation6 + $0x1f8] sm:$0xf0]  ;;  %v4000_v42 = vor.u32 %v4994_v34, %v3999_v30  ;;  %v4179_v43 = vld [vmem:[#allocation6 + $0x468] sm:$0xf]  ;;  %v3959_v34 = vld [vmem:[#allocation6 + $0x2b0] sm:$0xf] }
 0x113   :  { %2585 = vmatpush.bf16.msrb.mxu1 %v3660_v60  ;;  %v3859_v60 = vld [vmem:[#allocation6 + $0x1e8] sm:$0xf] }
 0x114   :  { %2564 = vmatpush.bf16.msrb.mxu0 %v4576_v59  ;;  %2603 = vmatpush.bf16.msrb.mxu2 %v3920_v11  ;;  %v3860_v0 = vor.u32 %v4959_v61, %v3859_v60  ;;  %v3839_v11 = vld [vmem:[#allocation6 + $0x1c0] sm:$0xf]  ;;  %v4944_v60 = vld [vmem:[#allocation6 + $0x180] sm:$0xf0] }
 0x115   :  { %2450 = vmatmul.bf16.vlgmr.msra.gmra.mxu3 %v5545_v10  ;;  %v3800_v2 = vor.u32 %v4944_v60, %v3799_v58  ;;  %v4099_v58 = vld [vmem:[#allocation6 + $0x3c8] sm:$0xf]  ;;  %v5019_v60 = vld [vmem:[#allocation6 + $0x3d8] sm:$0xf0] }
 0x116   :  { %2473 = vmatmul.bf16.vlgmr.msra.gmra.mxu0 %v5552_v35  ;;  %2626 = vmatpush.bf16.msra.mxu3 %v4080_v23  ;;  %v3840_v23 = vor.u32 %v4954_v21, %v3839_v11  ;;  %v4319_v11 = vld [vmem:[#allocation6 + $0x580] sm:$0xf]  ;;  %v5074_v21 = vld [vmem:[#allocation6 + $0x590] sm:$0xf0] }
 0x117   :  { %2586 = vmatpush.bf16.msrb.mxu1 %v3640_v6 }
 0x118   :  { %2604 = vmatpush.bf16.msrb.mxu2 %v3900_v29  ;;  %2649 = vmatpush.bf16.msra.mxu0 %v4240_v38  ;;  %v5084_v29 = vld [vmem:[#allocation6 + $0x5e0] sm:$0xf0]  ;;  %v4949_v38 = vld [vmem:[#allocation6 + $0x1a8] sm:$0xf0] }
 0x119   :  { %v4360_v33 = vor.u32 %v5084_v29, %v4359_v27 }
 0x11a   :  { %2627 = vmatpush.bf16.msra.mxu3 %v4060_v37  ;;  %v3819_v37 = vld [vmem:[#allocation6 + $0x198] sm:$0xf] }
 0x11b   :  { %2432 = vmatmul.bf16.gmra.mxu2 %v5562_v8  ;;  %2587 = vmatpush.bf16.msrb.mxu1 %v3620_v16  ;;  %v5044_v16 = vld [vmem:[#allocation6 + $0x4a0] sm:$0xf0] }
 0x11c   :  { %2605 = vmatpush.bf16.msrb.mxu2 %v3880_v22  ;;  %2650 = vmatpush.bf16.msra.mxu0 %v4220_v62  ;;  %v4200_v26 = vor.u32 %v5044_v16, %v4199_v14  ;;  %v3820_v22 = vor.u32 %v4949_v38, %v3819_v37  ;;  %v4139_v14 = vld [vmem:[#allocation6 + $0x418] sm:$0xf]  ;;  %v5029_v16 = vld [vmem:[#allocation6 + $0x428] sm:$0xf0]  ;;  %v4984_v37 = vld [vmem:[#allocation6 + $0x2c0] sm:$0xf0] }
 0x11d   :  { %v4140_v29 = vor.u32 %v5029_v16, %v4139_v14  ;;  %v4119_v38 = vld [vmem:[#allocation6 + $0x3f0] sm:$0xf]  ;;  %v5134_v14 = vld [vmem:[#allocation6 + $0x770] sm:$0xf0]  ;;  %v4719_v16 = vld [vmem:[#allocation6 + $0x8a0] sm:$0xf] }
 0x11e   :  { %2496 = vmatmul.bf16.vlgmr.msra.gmra.mxu1 %v5599_v24  ;;  %2628 = vmatpush.bf16.msra.mxu3 %v4040_v55  ;;  %v4340_v55 = vor.u32 %v5079_v54, %v4339_v51  ;;  %v4979_v51 = vld [vmem:[#allocation6 + $0x298] sm:$0xf0] }
 0x11f   :  { %2672 = vmatpush.bf16.msra.mxu1 %v4400_v46  ;;  %v4180_v46 = vor.u32 %v5039_v45, %v4179_v43  ;;  %v3960_v43 = vor.u32 %v4984_v37, %v3959_v34  ;;  %v5024_v45 = vld [vmem:[#allocation6 + $0x400] sm:$0xf0] }
 0x120   :  { %2606 = vmatpush.bf16.msrb.mxu2 %v3860_v0  ;;  %2651 = vmatpush.bf16.msra.mxu0 %v4200_v26  ;;  %v3979_v0 = vld [vmem:[#allocation6 + $0x2d8] sm:$0xf] }
 0x121   :  { %v3980_v4 = vor.u32 %v4989_v1, %v3979_v0  ;;  %v4100_v0 = vor.u32 %v5019_v60, %v4099_v58  ;;  %v4279_v1 = vld [vmem:[#allocation6 + $0x530] sm:$0xf] }
 0x122   :  { %2629 = vmatpush.bf16.msra.mxu3 %v4020_v7  ;;  %v4939_v7 = vld [vmem:[#allocation6 + $0x158] sm:$0xf0] }
 0x123   :  { %2673 = vmatpush.bf16.msra.mxu1 %v4380_v15  ;;  %v5034_v15 = vld [vmem:[#allocation6 + $0x450] sm:$0xf0] }
 0x124   :  { %2607 = vmatpush.bf16.msrb.mxu2 %v3840_v23  ;;  %2652 = vmatpush.bf16.msra.mxu0 %v4180_v46  ;;  %v4320_v23 = vor.u32 %v5074_v21, %v4319_v11  ;;  %v4120_v46 = vor.u32 %v5024_v45, %v4119_v38  ;;  %v5129_v38 = vld [vmem:[#allocation6 + $0x748] sm:$0xf0] }
 0x125   :  { %2455 = vmatmul.bf16.gmra.mxu3 %v5565_v12 }
 0x126   :  { %2478 = vmatmul.bf16.gmra.mxu0 %v5572_v28  ;;  %2630 = vmatpush.bf16.msra.mxu3 %v4000_v42 }
 0x127   :  { %2674 = vmatpush.bf16.msra.mxu1 %v4360_v33 }
 0x128   :  { %2608 = vmatpush.bf16.msrb.mxu2 %v3820_v22  ;;  %v4299_v22 = vld [vmem:[#allocation6 + $0x558] sm:$0xf] }
 0x12a   :  { %2631 = vmatpush.bf16.msra.mxu3 %v3980_v4 }
 0x12b   :  { %2437 = vmatmul.bf16.gmra.mxu2 %v5586_v57  ;;  %2675 = vmatpush.bf16.msra.mxu1 %v4340_v55 }
 0x12c   :  { %2609 = vmatpush.bf16.msrb.mxu2 %v3800_v2  ;;  %v5064_v2 = vld [vmem:[#allocation6 + $0x540] sm:$0xf0] }
 0x12e   :  { %2501 = vmatmul.bf16.gmra.mxu1 %v5624_v52  ;;  %2632 = vmatpush.bf16.msra.mxu3 %v3960_v43 }
 0x12f   :  { %2676 = vmatpush.bf16.msra.mxu1 %v4320_v23  ;;  %v4559_v23 = vld [vmem:[#allocation6 + $0x760] sm:$0xf] }
 0x133   :  { %v2290_v53 = vpop.f32.mrf.mxu0 }
 0x135   :  { %2460 = vmatmul.bf16.gmra.mxu3 %v5583_v39 }
 0x136   :  { %2483 = vmatmul.bf16.gmra.mxu0 %v5601_v25 }
 0x138   :  { %v2267_v59 = vpop.f32.mrf.mxu3 }
 0x139   :  { %v2268_v6 = vadd.f32 %v2267_v59, %v5676_v48  ;;  %v4159_v59 = vld [vmem:[#allocation6 + $0x440] sm:$0xf] }
 0x13b   :  { %v2313_v19 = vpop.f32.mrf.mxu1  ;;  %v2291_v49 = vadd.f32 %v2290_v53, %v2268_v6  ;;  %v2292_v13 = vpop.f32.mrf.mxu0  ;;  %2519 = vmatmul.bf16.vlgmr.msra.gmra.mxu2 %v5615_v9  ;;  %v4160_v6 = vor.u32 %v5034_v15, %v4159_v59  ;;  %v4280_v15 = vor.u32 %v5064_v2, %v4279_v1 }
 0x13d   :  { %v5683_v18 = vadd.f32 %v2313_v19, %v2291_v49  ;;  %v3779_v19 = vld [vmem:[#allocation6 + $0x148] sm:$0xf]  ;;  %2653 = vmatpush.bf16.msra.mxu0 %v4160_v6 }
 0x13e   :  { %2506 = vmatmul.bf16.gmra.mxu1 %v5645_v50  ;;  %v3780_v49 = vor.u32 %v4939_v7, %v3779_v19  ;;  %v4259_v19 = vld [vmem:[#allocation6 + $0x508] sm:$0xf]  ;;  %v5059_v7 = vld [vmem:[#allocation6 + $0x518] sm:$0xf0] }
 0x13f   :  { %v4260_v11 = vor.u32 %v5059_v7, %v4259_v19  ;;  %v4679_v19 = vld [vmem:[#allocation6 + $0x850] sm:$0xf]  ;;  %v5164_v7 = vld [vmem:[#allocation6 + $0x860] sm:$0xf0] }
 0x140   :  { %v2269_v63 = vpop.f32.mrf.mxu3  ;;  %2610 = vmatpush.bf16.msrb.mxu2 %v3780_v49 }
 0x141   :  { %v2270_v53 = vadd.f32 %v2269_v63, %v5676_v48  ;;  %2654 = vmatpush.bf16.msra.mxu0 %v4140_v29  ;;  %v5069_v63 = vld [vmem:[#allocation6 + $0x568] sm:$0xf0] }
 0x143   :  { %v2315_v47 = vpop.f32.mrf.mxu1  ;;  %v2293_v61 = vadd.f32 %v2292_v13, %v2270_v53  ;;  %v2295_v62 = vpop.f32.mrf.mxu0  ;;  %v4300_v53 = vor.u32 %v5069_v63, %v4299_v22  ;;  %v4699_v22 = vld [vmem:[#allocation6 + $0x878] sm:$0xf]  ;;  %v5169_v63 = vld [vmem:[#allocation6 + $0x888] sm:$0xf0] }
 0x145   :  { %v5686_v20 = vadd.f32 %v2315_v47, %v2293_v61  ;;  %2542 = vmatmul.bf16.vlgmr.msrb.gmra.mxu3 %v5618_v17  ;;  %v3939_v47 = vld [vmem:[#allocation6 + $0x288] sm:$0xf]  ;;  %2655 = vmatpush.bf16.msra.mxu0 %v4120_v46  ;;  %v4932_v46 = vld [vmem:[#allocation6 + $0x124] sm:$0xf] }
 0x146   :  { %2565 = vmatmul.bf16.vlgmr.msrb.gmra.mxu0 %v5626_v56  ;;  %v3940_v55 = vor.u32 %v4979_v51, %v3939_v47  ;;  %2677 = vmatpush.bf16.msra.mxu1 %v4300_v53  ;;  %v4700_v47 = vor.u32 %v5169_v63, %v4699_v22  ;;  %v3761_v51 = vld [vmem:[#allocation6 + $0x134] sm:$0xf0] }
 0x147   :  { %v3764_v60 = vor.u32 %v4932_v46, %v3761_v51  ;;  %v4922_v46 = vld [vmem:[#allocation6 + $0xd4] sm:$0xf] }
 0x148   :  { %v2272_v13 = vpop.f32.mrf.mxu3  ;;  %2633 = vmatpush.bf16.msra.mxu3 %v3940_v55  ;;  %v5124_v55 = vld [vmem:[#allocation6 + $0x720] sm:$0xf0] }
 0x149   :  { %v2273_v26 = vadd.f32 %v2272_v13, %v5676_v48  ;;  %2656 = vmatpush.bf16.msra.mxu0 %v4100_v0  ;;  %v3921_v0 = vld [vmem:[#allocation6 + $0x274] sm:$0xf0] }
 0x14a   :  { %2678 = vmatpush.bf16.msra.mxu1 %v4280_v15 }
 0x14b   :  { %v2318_v27 = vpop.f32.mrf.mxu1  ;;  %v2296_v30 = vadd.f32 %v2295_v62, %v2273_v26  ;;  %v2297_v33 = vpop.f32.mrf.mxu0  ;;  %2524 = vmatmul.bf16.gmra.mxu2 %v5638_v44  ;;  %v4560_v26 = vor.u32 %v5134_v14, %v4559_v23  ;;  %v3741_v23 = vld [vmem:[#allocation6 + $0x10c] sm:$0xf0]  ;;  %v4967_v14 = vld [vmem:[#allocation6 + $0x23c] sm:$0xf] }
 0x14d   :  { %v5693_v42 = vadd.f32 %v2318_v27, %v2296_v30  ;;  %v5174_v27 = vld [vmem:[#allocation6 + $0x8b0] sm:$0xf0]  ;;  %2695 = vmatpush.bf16.msra.mxu2 %v4560_v26  ;;  %2741 = vmatpush.bf16.msrb.mxu0 %v3764_v60 }
 0x14e   :  { %2588 = vmatmul.bf16.vlgmr.msrb.gmra.mxu1 %v5542_v5 }
 0x14f   :  { %2679 = vmatpush.bf16.msra.mxu1 %v4260_v11  ;;  %v4927_v11 = vld [vmem:[#allocation6 + $0xfc] sm:$0xf] }
 0x150   :  { %v2274_v54 = vpop.f32.mrf.mxu3 }
 0x151   :  { %v2275_v61 = vadd.f32 %v2274_v54, %v5676_v48  ;;  %v4519_v54 = vld [vmem:[#allocation6 + $0x710] sm:$0xf] }
 0x153   :  { %v2320_v62 = vpop.f32.mrf.mxu1  ;;  %v2298_v4 = vadd.f32 %v2297_v33, %v2275_v61  ;;  %v2300_v59 = vpop.f32.mrf.mxu0  ;;  %v4720_v33 = vor.u32 %v5174_v27, %v4719_v16  ;;  %v4520_v61 = vor.u32 %v5124_v55, %v4519_v54  ;;  %v3901_v16 = vld [vmem:[#allocation6 + $0x24c] sm:$0xf0]  ;;  %v4459_v54 = vld [vmem:[#allocation6 + $0x698] sm:$0xf]  ;;  %v5109_v55 = vld [vmem:[#allocation6 + $0x6a8] sm:$0xf0] }
 0x154   :  { %v4460_v60 = vor.u32 %v5109_v55, %v4459_v54 }
 0x155   :  { %v5696_v6 = vadd.f32 %v2320_v62, %v2298_v4  ;;  %2547 = vmatmul.bf16.gmra.mxu3 %v5640_v36  ;;  %v4972_v62 = vld [vmem:[#allocation6 + $0x264] sm:$0xf]  ;;  %v4499_v4 = vld [vmem:[#allocation6 + $0x6e8] sm:$0xf] }
 0x156   :  { %2570 = vmatmul.bf16.gmra.mxu0 %v5650_v3  ;;  %2718 = vmatpush.bf16.msrb.mxu3 %v4720_v33  ;;  %v3924_v1 = vor.u32 %v4972_v62, %v3921_v0  ;;  %v4659_v33 = vld [vmem:[#allocation6 + $0x828] sm:$0xf]  ;;  %v4917_v62 = vld [vmem:[#allocation6 + $0xac] sm:$0xf]  ;;  %v3701_v0 = vld [vmem:[#allocation6 + $0xbc] sm:$0xf0] }
 0x158   :  { %v2277_v21 = vpop.f32.mrf.mxu3  ;;  %2764 = vmatpush.bf16.msrb.mxu1 %v3924_v1 }
 0x159   :  { %v2278_v49 = vadd.f32 %v2277_v21, %v5676_v48  ;;  %v4539_v48 = vld [vmem:[#allocation6 + $0x738] sm:$0xf] }
 0x15a   :  { %v4540_v45 = vor.u32 %v5129_v38, %v4539_v48  ;;  %2719 = vmatpush.bf16.msrb.mxu3 %v4700_v47  ;;  %v4479_v38 = vld [vmem:[#allocation6 + $0x6c0] sm:$0xf] }
 0x15b   :  { %v2323_v13 = vpop.f32.mrf.mxu1  ;;  %v2301_v29 = vadd.f32 %v2300_v59, %v2278_v49  ;;  %v2302_v30 = vpop.f32.mrf.mxu0  ;;  %2529 = vmatmul.bf16.gmra.mxu2 %v5655_v40  ;;  %v5119_v59 = vld [vmem:[#allocation6 + $0x6f8] sm:$0xf0] }
 0x15c   :  { %2696 = vmatpush.bf16.msra.mxu2 %v4540_v45  ;;  %v4500_v21 = vor.u32 %v5119_v59, %v4499_v4  ;;  %v3904_v30 = vor.u32 %v4967_v14, %v3901_v16  ;;  %v3881_v4 = vld [vmem:[#allocation6 + $0x224] sm:$0xf0]  ;;  %v4639_v59 = vld [vmem:[#allocation6 + $0x800] sm:$0xf]  ;;  %v5149_v16 = vld [vmem:[#allocation6 + $0x7e8] sm:$0xf0] }
 0x15d   :  { %v5703_v34 = vadd.f32 %v2323_v13, %v2301_v29  ;;  %v4680_v13 = vor.u32 %v5164_v7, %v4679_v19  ;;  %v3744_v29 = vor.u32 %v4927_v11, %v3741_v23  ;;  %v3704_v19 = vor.u32 %v4917_v62, %v3701_v0  ;;  %v5154_v11 = vld [vmem:[#allocation6 + $0x810] sm:$0xf0] }
 0x15e   :  { %2593 = vmatmul.bf16.gmra.mxu1 %v5562_v8  ;;  %v2336_v37 = vpop.f32.mrf.mxu2  ;;  %v4640_v14 = vor.u32 %v5154_v11, %v4639_v59  ;;  %v5144_v59 = vld [vmem:[#allocation6 + $0x7c0] sm:$0xf0] }
 0x15f   :  { %v2337_v43 = vadd.f32 %v2336_v37, %v5683_v18  ;;  %v5159_v37 = vld [vmem:[#allocation6 + $0x838] sm:$0xf0]  ;;  %2720 = vmatpush.bf16.msrb.mxu3 %v4680_v13  ;;  %2742 = vmatpush.bf16.msrb.mxu0 %v3744_v29  ;;  %v4912_v29 = vld [vmem:[#allocation6 + $0x84] sm:$0xf] }
 0x160   :  { %v2279_v53 = vpop.f32.mrf.mxu3  ;;  %2697 = vmatpush.bf16.msra.mxu2 %v4520_v61  ;;  %v4660_v48 = vor.u32 %v5159_v37, %v4659_v33  ;;  %2765 = vmatpush.bf16.msrb.mxu1 %v3904_v30  ;;  %v3681_v30 = vld [vmem:[#allocation6 + $0x94] sm:$0xf0] }
 0x163   :  { %v2325_v58 = vpop.f32.mrf.mxu1  ;;  %v2382_v2 = vpop.f32.mrf.mxu0  ;;  %2721 = vmatpush.bf16.msrb.mxu3 %v4660_v48  ;;  %v3684_v48 = vor.u32 %v4912_v29, %v3681_v30  ;;  %v4897_v29 = vld [vmem:[#allocation6 + $0xc] sm:$0xf]  ;;  %v3621_v30 = vld [vmem:[#allocation6 + $0x1c] sm:$0xf0] }
 0x164   :  { %2698 = vmatpush.bf16.msra.mxu2 %v4500_v21  ;;  %v4957_v21 = vld [vmem:[#allocation6 + $0x1ec] sm:$0xf] }
 0x165   :  { %2552 = vmatmul.bf16.gmra.mxu3 %v5657_v41 }
 0x166   :  { %2575 = vmatmul.bf16.gmra.mxu0 %v5661_v32  ;;  %v2338_v18 = vpop.f32.mrf.mxu2 }
 0x167   :  { %v2339_v15 = vadd.f32 %v2338_v18, %v5686_v20  ;;  %v5114_v20 = vld [vmem:[#allocation6 + $0x6d0] sm:$0xf0]  ;;  %2722 = vmatpush.bf16.msrb.mxu3 %v4640_v14 }
 0x168   :  { %v2359_v49 = vpop.f32.mrf.mxu3  ;;  %v4480_v63 = vor.u32 %v5114_v20, %v4479_v38  ;;  %v4962_v18 = vld [vmem:[#allocation6 + $0x214] sm:$0xf] }
 0x169   :  { %v2360_v26 = vadd.f32 %v2359_v49, %v2337_v43  ;;  %v3721_v43 = vld [vmem:[#allocation6 + $0xe4] sm:$0xf0]  ;;  %v3884_v7 = vor.u32 %v4962_v18, %v3881_v4  ;;  %v3861_v49 = vld [vmem:[#allocation6 + $0x1fc] sm:$0xf0] }
 0x16a   :  { %v3724_v47 = vor.u32 %v4922_v46, %v3721_v43  ;;  %2699 = vmatpush.bf16.msra.mxu2 %v4480_v63 }
 0x16b   :  { %v2405_v27 = vpop.f32.mrf.mxu1  ;;  %v2383_v45 = vadd.f32 %v2382_v2, %v2360_v26  ;;  %v2384_v22 = vpop.f32.mrf.mxu0  ;;  %2611 = vmatmul.bf16.vlgmr.msrb.gmra.mxu2 %v5545_v10  ;;  %v4439_v26 = vld [vmem:[#allocation6 + $0x670] sm:$0xf]  ;;  %2766 = vmatpush.bf16.msrb.mxu1 %v3884_v7 }
 0x16c   :  { %2743 = vmatpush.bf16.msrb.mxu0 %v3724_v47  ;;  %v4952_v47 = vld [vmem:[#allocation6 + $0x1c4] sm:$0xf] }
 0x16d   :  { %v2406_v53 = vadd.f32 %v2405_v27, %v2383_v45  ;;  %v3864_v27 = vor.u32 %v4957_v21, %v3861_v49  ;;  %v4419_v45 = vld [vmem:[#allocation6 + $0x648] sm:$0xf]  ;;  %v4947_v21 = vld [vmem:[#allocation6 + $0x19c] sm:$0xf] }
 0x16e   :  { %2598 = vmatmul.bf16.gmra.mxu1 %v5586_v57  ;;  %v2341_v51 = vpop.f32.mrf.mxu2  ;;  %2700 = vmatpush.bf16.msra.mxu2 %v4460_v60  ;;  %v4907_v60 = vld [vmem:[#allocation6 + $0x5c] sm:$0xf]  ;;  %v3641_v49 = vld [vmem:[#allocation6 + $0x44] sm:$0xf0] }
 0x16f   :  { %v2342_v58 = vadd.f32 %v2341_v51, %v5693_v42  ;;  %v4619_v42 = vld [vmem:[#allocation6 + $0x7d8] sm:$0xf]  ;;  %v3063_v63 = vmax.f32 %v2406_v53, 0.0  ;;  %2767 = vmatpush.bf16.msrb.mxu1 %v3864_v27 }
 0x170   :  { %v2361_v61 = vpop.f32.mrf.mxu3  ;;  %2744 = vmatpush.bf16.msrb.mxu0 %v3704_v19  ;;  %v4620_v20 = vor.u32 %v5149_v16, %v4619_v42  ;;  %v3841_v51 = vld [vmem:[#allocation6 + $0x1d4] sm:$0xf0]  ;;  %v4902_v19 = vld [vmem:[#allocation6 + $0x34] sm:$0xf]  ;;  %v4579_v16 = vld [vmem:[#allocation6 + $0x788] sm:$0xf] }
 0x171   :  { %v2362_v1 = vadd.f32 %v2361_v61, %v2339_v15  ;;  %v5104_v15 = vld [vmem:[#allocation6 + $0x680] sm:$0xf0]  ;;  %v3661_v61 = vld [vmem:[#allocation6 + $0x6c] sm:$0xf0]  ;;  %v3644_v42 = vor.u32 %v4902_v19, %v3641_v49  ;;  %v5047_v49 = vld [vmem:[#allocation6 + $0x4bc] sm:$0xf] }
 0x172   :  { %v4440_v37 = vor.u32 %v5104_v15, %v4439_v26  ;;  %v3664_v18 = vor.u32 %v4907_v60, %v3661_v61  ;;  %2723 = vmatpush.bf16.msrb.mxu3 %v4620_v20  ;;  %v5139_v26 = vld [vmem:[#allocation6 + $0x798] sm:$0xf0]  ;;  %v3801_v20 = vld [vmem:[#allocation6 + $0x184] sm:$0xf0]  ;;  %v4937_v60 = vld [vmem:[#allocation6 + $0x14c] sm:$0xf] }
 0x173   :  { %v2407_v2 = vpop.f32.mrf.mxu1  ;;  %v2385_v13 = vadd.f32 %v2384_v22, %v2362_v1  ;;  %v2387_v23 = vpop.f32.mrf.mxu0  ;;  %v5099_v22 = vld [vmem:[#allocation6 + $0x658] sm:$0xf0]  ;;  %v4580_v15 = vor.u32 %v5139_v26, %v4579_v16  ;;  %v4401_v16 = vld [vmem:[#allocation6 + $0x634] sm:$0xf0] }
 0x174   :  { %2701 = vmatpush.bf16.msra.mxu2 %v4440_v37  ;;  %2745 = vmatpush.bf16.msrb.mxu0 %v3684_v48  ;;  %v4420_v55 = vor.u32 %v5099_v22, %v4419_v45  ;;  %v3624_v48 = vor.u32 %v4897_v29, %v3621_v30  ;;  %v4041_v29 = vld [vmem:[#allocation6 + $0x364] sm:$0xf0] }
 0x175   :  { %v2408_v33 = vadd.f32 %v2407_v2, %v2385_v13  ;;  %2634 = vmatmul.bf16.vlgmr.msra.gmra.mxu3 %v5552_v35  ;;  %v3844_v2 = vor.u32 %v4952_v47, %v3841_v51  ;;  %v4081_v47 = vld [vmem:[#allocation6 + $0x3b4] sm:$0xf0] }
 0x176   :  { %2657 = vmatmul.bf16.vlgmr.msra.gmra.mxu0 %v5599_v24  ;;  %v2343_v38 = vpop.f32.mrf.mxu2 }
 0x177   :  { %v3068_v46 = vmax.f32 %v2408_v33, 0.0  ;;  %v2344_v43 = vadd.f32 %v2343_v38, %v5696_v6  ;;  %v4599_v6 = vld [vmem:[#allocation6 + $0x7b0] sm:$0xf]  ;;  %2768 = vmatpush.bf16.msrb.mxu1 %v3844_v2  ;;  %v4942_v38 = vld [vmem:[#allocation6 + $0x174] sm:$0xf] }
 0x178   :  { %v2364_v54 = vpop.f32.mrf.mxu3  ;;  %2746 = vmatpush.bf16.msrb.mxu0 %v3664_v18  ;;  %2702 = vmatpush.bf16.msra.mxu2 %v4420_v55  ;;  %v4600_v11 = vor.u32 %v5144_v59, %v4599_v6  ;;  %v4241_v55 = vld [vmem:[#allocation6 + $0x4f4] sm:$0xf0]  ;;  %v3781_v2 = vld [vmem:[#allocation6 + $0x15c] sm:$0xf0] }
 0x179   :  { %v5715_v62 = vpack.c.bf16 %v3068_v46, %v3063_v63  ;;  %v2365_v0 = vadd.f32 %v2364_v54, %v2342_v58  ;;  %v3821_v58 = vld [vmem:[#allocation6 + $0x1ac] sm:$0xf0]  ;;  %v3804_v63 = vor.u32 %v4942_v38, %v3801_v20  ;;  %v5012_v46 = vld [vmem:[#allocation6 + $0x3a4] sm:$0xf] }
 0x17a   :  { %v3824_v14 = vor.u32 %v4947_v21, %v3821_v58  ;;  %2724 = vmatpush.bf16.msrb.mxu3 %v4600_v11  ;;  %v5052_v54 = vld [vmem:[#allocation6 + $0x4e4] sm:$0xf]  ;;  %v4061_v58 = vld [vmem:[#allocation6 + $0x38c] sm:$0xf0] }
 0x17b   :  { %v2410_v1 = vpop.f32.mrf.mxu1  ;;  %v2388_v53 = vadd.f32 %v2387_v23, %v2365_v0  ;;  %v2389_v4 = vpop.f32.mrf.mxu0  ;;  %2616 = vmatmul.bf16.gmra.mxu2 %v5565_v12 }
 0x17c   :  { %2747 = vmatpush.bf16.msrb.mxu0 %v3644_v42  ;;  %2769 = vmatpush.bf16.msrb.mxu1 %v3824_v14  ;;  %v4221_v42 = vld [vmem:[#allocation6 + $0x4cc] sm:$0xf0] }
 0x17d   :  { %v2411_v7 = vadd.f32 %v2410_v1, %v2388_v53  ;;  %v4244_v1 = vor.u32 %v5052_v54, %v4241_v55  ;;  %v3784_v53 = vor.u32 %v4937_v60, %v3781_v2  ;;  %v4224_v26 = vor.u32 %v5047_v49, %v4221_v42  ;;  %v4997_v54 = vld [vmem:[#allocation6 + $0x32c] sm:$0xf]  ;;  %v4021_v55 = vld [vmem:[#allocation6 + $0x33c] sm:$0xf0]  ;;  %v5082_v42 = vld [vmem:[#allocation6 + $0x5d4] sm:$0xf] }
 0x17e   :  { %2680 = vmatmul.bf16.vlgmr.msra.gmra.mxu1 %v5615_v9  ;;  %v2346_v13 = vpop.f32.mrf.mxu2  ;;  %2725 = vmatpush.bf16.msrb.mxu3 %v4580_v15  ;;  %v5002_v15 = vld [vmem:[#allocation6 + $0x354] sm:$0xf]  ;;  %v5037_v2 = vld [vmem:[#allocation6 + $0x46c] sm:$0xf] }
 0x17f   :  { %v2347_v23 = vadd.f32 %v2346_v13, %v5703_v34  ;;  %v3073_v61 = vmax.f32 %v2411_v7, 0.0  ;;  %v5007_v7 = vld [vmem:[#allocation6 + $0x37c] sm:$0xf] }
 0x180   :  { %v2366_v27 = vpop.f32.mrf.mxu3  ;;  %2748 = vmatpush.bf16.msrb.mxu0 %v3624_v48  ;;  %2770 = vmatpush.bf16.msrb.mxu1 %v3804_v63  ;;  %v4064_v14 = vor.u32 %v5007_v7, %v4061_v58  ;;  %v4561_v48 = vld [vmem:[#allocation6 + $0x774] sm:$0xf0]  ;;  %v5042_v63 = vld [vmem:[#allocation6 + $0x494] sm:$0xf]  ;;  %v4992_v7 = vld [vmem:[#allocation6 + $0x304] sm:$0xf] }
 0x181   :  { %v2367_v33 = vadd.f32 %v2366_v27, %v2344_v43  ;;  %v4084_v43 = vor.u32 %v5012_v46, %v4081_v47  ;;  %v5087_v46 = vld [vmem:[#allocation6 + $0x5fc] sm:$0xf]  ;;  %v4001_v58 = vld [vmem:[#allocation6 + $0x314] sm:$0xf0] }
 0x182   :  { %2810 = vmatpush.bf16.msra.mxu3 %v4244_v1  ;;  %v4541_v1 = vld [vmem:[#allocation6 + $0x74c] sm:$0xf0] }
 0x183   :  { %v2412_v37 = vpop.f32.mrf.mxu1  ;;  %v2390_v45 = vadd.f32 %v2389_v4, %v2367_v33  ;;  %v2392_v22 = vpop.f32.mrf.mxu0  ;;  %2787 = vmatpush.bf16.msrb.mxu2 %v4084_v43  ;;  %v4044_v33 = vor.u32 %v5002_v15, %v4041_v29  ;;  %v4381_v43 = vld [vmem:[#allocation6 + $0x60c] sm:$0xf0]  ;;  %v4521_v15 = vld [vmem:[#allocation6 + $0x724] sm:$0xf0]  ;;  %v5032_v29 = vld [vmem:[#allocation6 + $0x444] sm:$0xf] }
 0x184   :  { %2771 = vmatpush.bf16.msrb.mxu1 %v3784_v53 }
 0x185   :  { %v2413_v34 = vadd.f32 %v2412_v37, %v2390_v45  ;;  %2639 = vmatmul.bf16.gmra.mxu3 %v5572_v28  ;;  %v5132_v37 = vld [vmem:[#allocation6 + $0x764] sm:$0xf]  ;;  %v5729_v45 = vperm.slane %v5673_v31, 1  ;;  %v4024_v31 = vor.u32 %v4997_v54, %v4021_v55 }
 0x186   :  { %2662 = vmatmul.bf16.gmra.mxu0 %v5624_v52  ;;  %v2348_v51 = vpop.f32.mrf.mxu2  ;;  %2811 = vmatpush.bf16.msra.mxu3 %v4224_v26  ;;  %v4564_v20 = vor.u32 %v5132_v37, %v4561_v48  ;;  %v4161_v37 = vld [vmem:[#allocation6 + $0x454] sm:$0xf0]  ;;  %v4987_v48 = vld [vmem:[#allocation6 + $0x2dc] sm:$0xf] }
 0x187   :  { %v3078_v0 = vmax.f32 %v2413_v34, 0.0  ;;  %2788 = vmatpush.bf16.msrb.mxu2 %v4064_v14  ;;  %v4201_v34 = vld [vmem:[#allocation6 + $0x4a4] sm:$0xf0] }
 0x188   :  { %v2369_v18 = vpop.f32.mrf.mxu3  ;;  %2856 = vmatpush.bf16.msra.mxu1 %v4564_v20  ;;  %v4204_v51 = vor.u32 %v5042_v63, %v4201_v34  ;;  %v5077_v63 = vld [vmem:[#allocation6 + $0x5ac] sm:$0xf]  ;;  %v4341_v34 = vld [vmem:[#allocation6 + $0x5bc] sm:$0xf0] }
 0x189   :  { %v2370_v4 = vadd.f32 %v2369_v18, %v2347_v23  ;;  %v5722_v59 = vpack.c.bf16 %v3078_v0, %v3073_v61  ;;  %v5092_v23 = vld [vmem:[#allocation6 + $0x624] sm:$0xf]  ;;  %v4384_v61 = vor.u32 %v5087_v46, %v4381_v43  ;;  %v5127_v0 = vld [vmem:[#allocation6 + $0x73c] sm:$0xf]  ;;  %v4344_v43 = vor.u32 %v5077_v63, %v4341_v34  ;;  %v4121_v34 = vld [vmem:[#allocation6 + $0x404] sm:$0xf0] }
 0x18a   :  { %v4404_v27 = vor.u32 %v5092_v23, %v4401_v16  ;;  %2812 = vmatpush.bf16.msra.mxu3 %v4204_v51  ;;  %v4544_v53 = vor.u32 %v5127_v0, %v4541_v1  ;;  %v4361_v23 = vld [vmem:[#allocation6 + $0x5e4] sm:$0xf0]  ;;  %v4982_v0 = vld [vmem:[#allocation6 + $0x2b4] sm:$0xf] }
 0x18b   :  { %v2415_v6 = vpop.f32.mrf.mxu1  ;;  %v2393_v19 = vadd.f32 %v2392_v22, %v2370_v4  ;;  %v2394_v11 = vpop.f32.mrf.mxu0  ;;  %2621 = vmatmul.bf16.gmra.mxu2 %v5583_v39  ;;  %v4181_v4 = vld [vmem:[#allocation6 + $0x47c] sm:$0xf0]  ;;  %v4364_v26 = vor.u32 %v5082_v42, %v4361_v23  ;;  %v3961_v1 = vld [vmem:[#allocation6 + $0x2c4] sm:$0xf0]  ;;  %v5112_v23 = vld [vmem:[#allocation6 + $0x6c4] sm:$0xf] }
 0x18c   :  { %2833 = vmatpush.bf16.msra.mxu0 %v4404_v27  ;;  %2789 = vmatpush.bf16.msrb.mxu2 %v4044_v33  ;;  %v4184_v11 = vor.u32 %v5037_v2, %v4181_v4  ;;  %v5122_v27 = vld [vmem:[#allocation6 + $0x714] sm:$0xf]  ;;  %v3964_v4 = vor.u32 %v4982_v0, %v3961_v1 }
 0x18d   :  { %v5726_v21 = vadd.f32 %v2415_v6, %v2393_v19  ;;  %2857 = vmatpush.bf16.msra.mxu1 %v4544_v53  ;;  %v4524_v33 = vor.u32 %v5122_v27, %v4521_v15  ;;  %v4141_v53 = vld [vmem:[#allocation6 + $0x42c] sm:$0xf0] }
 0x18e   :  { %2685 = vmatmul.bf16.gmra.mxu1 %v5638_v44  ;;  %v2428_v13 = vpop.f32.mrf.mxu2  ;;  %2813 = vmatpush.bf16.msra.mxu3 %v4184_v11  ;;  %v4321_v11 = vld [vmem:[#allocation6 + $0x594] sm:$0xf0] }
 0x18f   :  { %v2429_v60 = vadd.f32 %v2428_v13, %v5729_v45  ;;  %v4004_v13 = vor.u32 %v4992_v7, %v4001_v58 }
 0x190   :  { %v2371_v30 = vpop.f32.mrf.mxu3  ;;  %2834 = vmatpush.bf16.msra.mxu0 %v4384_v61  ;;  %2790 = vmatpush.bf16.msrb.mxu2 %v4024_v31  ;;  %v4501_v61 = vld [vmem:[#allocation6 + $0x6fc] sm:$0xf0] }
 0x191   :  { %2858 = vmatpush.bf16.msra.mxu1 %v4524_v33  ;;  %v5067_v33 = vld [vmem:[#allocation6 + $0x55c] sm:$0xf] }
 0x193   :  { %v2417_v38 = vpop.f32.mrf.mxu1  ;;  %v2474_v22 = vpop.f32.mrf.mxu0 }
 0x194   :  { %2791 = vmatpush.bf16.msrb.mxu2 %v4004_v13  ;;  %v3981_v38 = vld [vmem:[#allocation6 + $0x2ec] sm:$0xf0]  ;;  %2835 = vmatpush.bf16.msra.mxu0 %v4364_v26  ;;  %v3941_v13 = vld [vmem:[#allocation6 + $0x29c] sm:$0xf0]  ;;  %v4481_v26 = vld [vmem:[#allocation6 + $0x6d4] sm:$0xf0] }
 0x195   :  { %2644 = vmatmul.bf16.gmra.mxu3 %v5601_v25  ;;  %v3984_v46 = vor.u32 %v4987_v48, %v3981_v38 }
 0x196   :  { %2667 = vmatmul.bf16.gmra.mxu0 %v5645_v50  ;;  %v2430_v47 = vpop.f32.mrf.mxu2 }
 0x197   :  { %v2431_v20 = vadd.f32 %v2430_v47, %v5729_v45  ;;  %v5027_v47 = vld [vmem:[#allocation6 + $0x41c] sm:$0xf] }
 0x198   :  { %v2451_v18 = vpop.f32.mrf.mxu3  ;;  %2792 = vmatpush.bf16.msrb.mxu2 %v3984_v46  ;;  %2836 = vmatpush.bf16.msra.mxu0 %v4344_v43  ;;  %v5062_v46 = vld [vmem:[#allocation6 + $0x534] sm:$0xf] }
 0x199   :  { %v2452_v6 = vadd.f32 %v2451_v18, %v2429_v60  ;;  %v5117_v60 = vld [vmem:[#allocation6 + $0x6ec] sm:$0xf] }
 0x19a   :  { %v4504_v31 = vor.u32 %v5117_v60, %v4501_v61  ;;  %v4281_v60 = vld [vmem:[#allocation6 + $0x544] sm:$0xf0] }
 0x19b   :  { %v2497_v19 = vpop.f32.mrf.mxu1  ;;  %v2475_v49 = vadd.f32 %v2474_v22, %v2452_v6  ;;  %v2476_v14 = vpop.f32.mrf.mxu0  ;;  %2703 = vmatmul.bf16.vlgmr.msra.gmra.mxu2 %v5618_v17  ;;  %v4164_v22 = vor.u32 %v5032_v29, %v4161_v37  ;;  %v4144_v6 = vor.u32 %v5027_v47, %v4141_v53  ;;  %v4484_v29 = vor.u32 %v5112_v23, %v4481_v26  ;;  %v4301_v37 = vld [vmem:[#allocation6 + $0x56c] sm:$0xf0] }
 0x19c   :  { %2859 = vmatpush.bf16.msra.mxu1 %v4504_v31  ;;  %2793 = vmatpush.bf16.msrb.mxu2 %v3964_v4  ;;  %v4284_v0 = vor.u32 %v5062_v46, %v4281_v60  ;;  %v5057_v4 = vld [vmem:[#allocation6 + $0x50c] sm:$0xf]  ;;  %v5167_v60 = vld [vmem:[#allocation6 + $0x87c] sm:$0xf] }
 0x19d   :  { %v5736_v16 = vadd.f32 %v2497_v19, %v2475_v49  ;;  %2814 = vmatpush.bf16.msra.mxu3 %v4164_v22  ;;  %v5072_v19 = vld [vmem:[#allocation6 + $0x584] sm:$0xf] }
 0x19e   :  { %2690 = vmatmul.bf16.gmra.mxu1 %v5655_v40  ;;  %v2433_v30 = vpop.f32.mrf.mxu2  ;;  %v4324_v58 = vor.u32 %v5072_v19, %v4321_v11 }
 0x19f   :  { %v2434_v42 = vadd.f32 %v2433_v30, %v5729_v45  ;;  %v5022_v30 = vld [vmem:[#allocation6 + $0x3f4] sm:$0xf] }
 0x1a0   :  { %v2453_v51 = vpop.f32.mrf.mxu3  ;;  %2837 = vmatpush.bf16.msra.mxu0 %v4324_v58  ;;  %2860 = vmatpush.bf16.msra.mxu1 %v4484_v29  ;;  %v4124_v43 = vor.u32 %v5022_v30, %v4121_v34  ;;  %v4421_v29 = vld [vmem:[#allocation6 + $0x65c] sm:$0xf0]  ;;  %v4935_v30 = vld [vmem:[#allocation6 + $0x138] sm:$0xf0] }
 0x1a1   :  { %v2454_v54 = vadd.f32 %v2453_v51, %v2431_v20  ;;  %2815 = vmatpush.bf16.msra.mxu3 %v4144_v6  ;;  %v4304_v20 = vor.u32 %v5067_v33, %v4301_v37  ;;  %v4261_v6 = vld [vmem:[#allocation6 + $0x51c] sm:$0xf0]  ;;  %v5172_v37 = vld [vmem:[#allocation6 + $0x8a4] sm:$0xf] }
 0x1a2   :  { %v4264_v58 = vor.u32 %v5057_v4, %v4261_v6 }
 0x1a3   :  { %v2499_v55 = vpop.f32.mrf.mxu1  ;;  %v2477_v2 = vadd.f32 %v2476_v14, %v2454_v54  ;;  %v2479_v18 = vpop.f32.mrf.mxu0  ;;  %v4977_v14 = vld [vmem:[#allocation6 + $0x28c] sm:$0xf]  ;;  %v5107_v54 = vld [vmem:[#allocation6 + $0x69c] sm:$0xf] }
 0x1a4   :  { %v3944_v27 = vor.u32 %v4977_v14, %v3941_v13  ;;  %2838 = vmatpush.bf16.msra.mxu0 %v4304_v20  ;;  %v5102_v14 = vld [vmem:[#allocation6 + $0x674] sm:$0xf]  ;;  %v4441_v13 = vld [vmem:[#allocation6 + $0x684] sm:$0xf0] }
 0x1a5   :  { %v5739_v7 = vadd.f32 %v2499_v55, %v2477_v2  ;;  %2726 = vmatmul.bf16.vlgmr.msrb.gmra.mxu3 %v5626_v56  ;;  %v4461_v55 = vld [vmem:[#allocation6 + $0x6ac] sm:$0xf0]  ;;  %v5017_v2 = vld [vmem:[#allocation6 + $0x3cc] sm:$0xf]  ;;  %v4444_v26 = vor.u32 %v5102_v14, %v4441_v13 }
 0x1a6   :  { %2749 = vmatmul.bf16.vlgmr.msrb.gmra.mxu0 %v5542_v5  ;;  %v2435_v49 = vpop.f32.mrf.mxu2  ;;  %2794 = vmatpush.bf16.msrb.mxu2 %v3944_v27  ;;  %v4464_v31 = vor.u32 %v5107_v54, %v4461_v55 }
 0x1a7   :  { %v2436_v1 = vadd.f32 %v2435_v49, %v5729_v45  ;;  %2816 = vmatpush.bf16.msra.mxu3 %v4124_v43 }
 0x1a8   :  { %v2456_v15 = vpop.f32.mrf.mxu3  ;;  %2861 = vmatpush.bf16.msra.mxu1 %v4464_v31  ;;  %2839 = vmatpush.bf16.msra.mxu0 %v4284_v0  ;;  %v3747_v31 = vld [vmem:[#allocation6 + $0x100] sm:$0xf] }
 0x1a9   :  { %v2457_v48 = vadd.f32 %v2456_v15, %v2434_v42  ;;  %v5097_v15 = vld [vmem:[#allocation6 + $0x64c] sm:$0xf] }
 0x1aa   :  { %v4424_v20 = vor.u32 %v5097_v15, %v4421_v29  ;;  %v3727_v15 = vld [vmem:[#allocation6 + $0xd8] sm:$0xf]  ;;  %v3907_v29 = vld [vmem:[#allocation6 + $0x240] sm:$0xf] }
 0x1ab   :  { %v2502_v38 = vpop.f32.mrf.mxu1  ;;  %v2480_v22 = vadd.f32 %v2479_v18, %v2457_v48  ;;  %v2481_v63 = vpop.f32.mrf.mxu0  ;;  %2708 = vmatmul.bf16.gmra.mxu2 %v5640_v36  ;;  %v4101_v18 = vld [vmem:[#allocation6 + $0x3dc] sm:$0xf0]  ;;  %v4721_v48 = vld [vmem:[#allocation6 + $0x8b4] sm:$0xf0] }
 0x1ac   :  { %v4104_v53 = vor.u32 %v5017_v2, %v4101_v18  ;;  %2840 = vmatpush.bf16.msra.mxu0 %v4264_v58  ;;  %2862 = vmatpush.bf16.msra.mxu1 %v4444_v26  ;;  %v4930_v2 = vld [vmem:[#allocation6 + $0x110] sm:$0xf0]  ;;  %v3927_v18 = vld [vmem:[#allocation6 + $0x268] sm:$0xf] }
 0x1ad   :  { %v5746_v51 = vadd.f32 %v2502_v38, %v2480_v22  ;;  %v3767_v38 = vld [vmem:[#allocation6 + $0x128] sm:$0xf]  ;;  %v3748_v4 = vor.u32 %v4930_v2, %v3747_v31  ;;  %v4641_v2 = vld [vmem:[#allocation6 + $0x814] sm:$0xf0] }
 0x1ae   :  { %2772 = vmatmul.bf16.vlgmr.msrb.gmra.mxu1 %v5545_v10  ;;  %v2438_v61 = vpop.f32.mrf.mxu2  ;;  %2817 = vmatpush.bf16.msra.mxu3 %v4104_v53  ;;  %v3768_v43 = vor.u32 %v4935_v30, %v3767_v38  ;;  %v4087_v58 = vld [vmem:[#allocation6 + $0x3a8] sm:$0xf]  ;;  %v5157_v38 = vld [vmem:[#allocation6 + $0x82c] sm:$0xf] }
 0x1af   :  { %v2439_v33 = vadd.f32 %v2438_v61, %v5729_v45  ;;  %v4701_v61 = vld [vmem:[#allocation6 + $0x88c] sm:$0xf0] }
 0x1b0   :  { %v2458_v47 = vpop.f32.mrf.mxu3  ;;  %2863 = vmatpush.bf16.msra.mxu1 %v4424_v20  ;;  %v4661_v20 = vld [vmem:[#allocation6 + $0x83c] sm:$0xf0] }
 0x1b1   :  { %v2459_v19 = vadd.f32 %v2458_v47, %v2436_v1  ;;  %v4704_v1 = vor.u32 %v5167_v60, %v4701_v61  ;;  %v4975_v47 = vld [vmem:[#allocation6 + $0x278] sm:$0xf0]  ;;  %v4664_v30 = vor.u32 %v5157_v38, %v4661_v20  ;;  %v4920_v60 = vld [vmem:[#allocation6 + $0xc0] sm:$0xf0] }
 0x1b2   :  { %2902 = vmatpush.bf16.msrb.mxu3 %v3768_v43  ;;  %v3928_v6 = vor.u32 %v4975_v47, %v3927_v18  ;;  %v3707_v43 = vld [vmem:[#allocation6 + $0xb0] sm:$0xf] }
 0x1b3   :  { %v2504_v11 = vpop.f32.mrf.mxu1  ;;  %v2482_v42 = vadd.f32 %v2481_v63, %v2459_v19  ;;  %v2484_v23 = vpop.f32.mrf.mxu0  ;;  %v4724_v63 = vor.u32 %v5172_v37, %v4721_v48  ;;  %v5162_v19 = vld [vmem:[#allocation6 + $0x854] sm:$0xf] }
 0x1b4   :  { %2925 = vmatpush.bf16.msrb.mxu0 %v3928_v6  ;;  %v4970_v48 = vld [vmem:[#allocation6 + $0x250] sm:$0xf0]  ;;  %v4965_v6 = vld [vmem:[#allocation6 + $0x228] sm:$0xf0] }
 0x1b5   :  { %v5749_v49 = vadd.f32 %v2504_v11, %v2482_v42  ;;  %2731 = vmatmul.bf16.gmra.mxu3 %v5650_v3  ;;  %2879 = vmatpush.bf16.msra.mxu2 %v4724_v63  ;;  %v4681_v11 = vld [vmem:[#allocation6 + $0x864] sm:$0xf0]  ;;  %v5015_v42 = vld [vmem:[#allocation6 + $0x3b8] sm:$0xf0]  ;;  %v3908_v63 = vor.u32 %v4970_v48, %v3907_v29  ;;  %v3867_v29 = vld [vmem:[#allocation6 + $0x1f0] sm:$0xf] }
 0x1b6   :  { %2754 = vmatmul.bf16.gmra.mxu0 %v5562_v8  ;;  %v2440_v27 = vpop.f32.mrf.mxu2  ;;  %v4684_v13 = vor.u32 %v5162_v19, %v4681_v11  ;;  %2903 = vmatpush.bf16.msrb.mxu3 %v3748_v4  ;;  %v4088_v26 = vor.u32 %v5015_v42, %v4087_v58  ;;  %v3887_v4 = vld [vmem:[#allocation6 + $0x218] sm:$0xf]  ;;  %v5147_v11 = vld [vmem:[#allocation6 + $0x7dc] sm:$0xf]  ;;  %v4621_v58 = vld [vmem:[#allocation6 + $0x7ec] sm:$0xf0] }
 0x1b7   :  { %v3888_v19 = vor.u32 %v4965_v6, %v3887_v4  ;;  %v5005_v42 = vld [vmem:[#allocation6 + $0x368] sm:$0xf0] }
 0x1b8   :  { %v2461_v22 = vpop.f32.mrf.mxu3  ;;  %2948 = vmatpush.bf16.msrb.mxu1 %v4088_v26  ;;  %2926 = vmatpush.bf16.msrb.mxu0 %v3908_v63  ;;  %v4624_v26 = vor.u32 %v5147_v11, %v4621_v58  ;;  %v4027_v63 = vld [vmem:[#allocation6 + $0x330] sm:$0xf]  ;;  %v4007_v58 = vld [vmem:[#allocation6 + $0x308] sm:$0xf] }
 0x1b9   :  { %v2462_v34 = vadd.f32 %v2461_v22, %v2439_v33  ;;  %2880 = vmatpush.bf16.msra.mxu2 %v4704_v1  ;;  %v5152_v1 = vld [vmem:[#allocation6 + $0x804] sm:$0xf] }
 0x1ba   :  { %v4644_v47 = vor.u32 %v5152_v1, %v4641_v2  ;;  %v4955_v1 = vld [vmem:[#allocation6 + $0x1d8] sm:$0xf0] }
 0x1bb   :  { %v2507_v46 = vpop.f32.mrf.mxu1  ;;  %v2485_v54 = vadd.f32 %v2484_v23, %v2462_v34  ;;  %v2486_v55 = vpop.f32.mrf.mxu0  ;;  %2713 = vmatmul.bf16.gmra.mxu2 %v5657_v41  ;;  %v4067_v34 = vld [vmem:[#allocation6 + $0x380] sm:$0xf] }
 0x1bc   :  { %2927 = vmatpush.bf16.msrb.mxu0 %v3888_v19  ;;  %v4581_v19 = vld [vmem:[#allocation6 + $0x79c] sm:$0xf0] }
 0x1bd   :  { %v5756_v45 = vadd.f32 %v2507_v46, %v2485_v54  ;;  %2881 = vmatpush.bf16.msra.mxu2 %v4684_v13  ;;  %v5010_v46 = vld [vmem:[#allocation6 + $0x390] sm:$0xf0]  ;;  %v4047_v13 = vld [vmem:[#allocation6 + $0x358] sm:$0xf] }
 0x1be   :  { %2777 = vmatmul.bf16.gmra.mxu1 %v5565_v12  ;;  %v2520_v0 = vpop.f32.mrf.mxu2  ;;  %v4068_v55 = vor.u32 %v5010_v46, %v4067_v34  ;;  %v5142_v34 = vld [vmem:[#allocation6 + $0x7b4] sm:$0xf]  ;;  %v4601_v46 = vld [vmem:[#allocation6 + $0x7c4] sm:$0xf0] }
 0x1bf   :  { %v2521_v53 = vadd.f32 %v2520_v0, %v5736_v16  ;;  %v4925_v16 = vld [vmem:[#allocation6 + $0xe8] sm:$0xf0]  ;;  %v3708_v0 = vor.u32 %v4920_v60, %v3707_v43  ;;  %v4910_v60 = vld [vmem:[#allocation6 + $0x70] sm:$0xf0] }
 0x1c0   :  { %v2463_v14 = vpop.f32.mrf.mxu3  ;;  %v3728_v37 = vor.u32 %v4925_v16, %v3727_v15  ;;  %2949 = vmatpush.bf16.msrb.mxu1 %v4068_v55  ;;  %v4048_v15 = vor.u32 %v5005_v42, %v4047_v13  ;;  %v4915_v16 = vld [vmem:[#allocation6 + $0x98] sm:$0xf0]  ;;  %v3667_v55 = vld [vmem:[#allocation6 + $0x60] sm:$0xf] }
 0x1c1   :  { %2882 = vmatpush.bf16.msra.mxu2 %v4664_v30  ;;  %v5000_v30 = vld [vmem:[#allocation6 + $0x340] sm:$0xf0]  ;;  %v4995_v13 = vld [vmem:[#allocation6 + $0x318] sm:$0xf0] }
 0x1c2   :  { %2904 = vmatpush.bf16.msrb.mxu3 %v3728_v37 }
 0x1c3   :  { %v2509_v23 = vpop.f32.mrf.mxu1  ;;  %v2566_v27 = vpop.f32.mrf.mxu0 }
 0x1c4   :  { %v3687_v23 = vld [vmem:[#allocation6 + $0x88] sm:$0xf]  ;;  %2950 = vmatpush.bf16.msrb.mxu1 %v4048_v15 }
 0x1c5   :  { %2736 = vmatmul.bf16.gmra.mxu3 %v5661_v32  ;;  %2883 = vmatpush.bf16.msra.mxu2 %v4644_v47  ;;  %v3688_v38 = vor.u32 %v4915_v16, %v3687_v23  ;;  %v4008_v23 = vor.u32 %v4995_v13, %v4007_v58 }
 0x1c6   :  { %2759 = vmatmul.bf16.gmra.mxu0 %v5586_v57  ;;  %v2522_v33 = vpop.f32.mrf.mxu2  ;;  %2905 = vmatpush.bf16.msrb.mxu3 %v3708_v0  ;;  %v3668_v0 = vor.u32 %v4910_v60, %v3667_v55  ;;  %v4900_v60 = vld [vmem:[#allocation6 + $0x20] sm:$0xf0] }
 0x1c7   :  { %v2523_v22 = vadd.f32 %v2522_v33, %v5739_v7  ;;  %v4960_v33 = vld [vmem:[#allocation6 + $0x200] sm:$0xf0] }
 0x1c8   :  { %v2543_v54 = vpop.f32.mrf.mxu3  ;;  %v3868_v20 = vor.u32 %v4960_v33, %v3867_v29 }
 0x1c9   :  { %v2544_v61 = vadd.f32 %v2543_v54, %v2521_v53  ;;  %2884 = vmatpush.bf16.msra.mxu2 %v4624_v26  ;;  %v3827_v26 = vld [vmem:[#allocation6 + $0x1a0] sm:$0xf] }
 0x1ca   :  { %2906 = vmatpush.bf16.msrb.mxu3 %v3688_v38  ;;  %2928 = vmatpush.bf16.msrb.mxu0 %v3868_v20  ;;  %v4905_v38 = vld [vmem:[#allocation6 + $0x48] sm:$0xf0]  ;;  %v3807_v20 = vld [vmem:[#allocation6 + $0x178] sm:$0xf] }
 0x1cb   :  { %v5762_v31 = vpop.f32.mrf.mxu1  ;;  %v2567_v18 = vadd.f32 %v2566_v27, %v2544_v61  ;;  %v2568_v7 = vpop.f32.mrf.mxu0  ;;  %2795 = vmatmul.bf16.vlgmr.msrb.gmra.mxu2 %v5552_v35  ;;  %v4604_v61 = vor.u32 %v5142_v34, %v4601_v46  ;;  %v4945_v46 = vld [vmem:[#allocation6 + $0x188] sm:$0xf0] }
 0x1cc   :  { %v3808_v55 = vor.u32 %v4945_v46, %v3807_v20 }
 0x1cd   :  { %v3064_v2 = vmax.f32 %v2567_v18, 0.0  ;;  %2885 = vmatpush.bf16.msra.mxu2 %v4604_v61 }
 0x1ce   :  { %2782 = vmatmul.bf16.gmra.mxu1 %v5583_v39  ;;  %v2525_v53 = vpop.f32.mrf.mxu2  ;;  %2907 = vmatpush.bf16.msrb.mxu3 %v3668_v0 }
 0x1cf   :  { %v2526_v14 = vadd.f32 %v2525_v53, %v5746_v51  ;;  %v4028_v51 = vor.u32 %v5000_v30, %v4027_v63  ;;  %v3987_v30 = vld [vmem:[#allocation6 + $0x2e0] sm:$0xf] }
 0x1d0   :  { %v2545_v27 = vpop.f32.mrf.mxu3 }
 0x1d1   :  { %v2546_v37 = vadd.f32 %v2545_v27, %v2523_v22  ;;  %v3847_v22 = vld [vmem:[#allocation6 + $0x1c8] sm:$0xf]  ;;  %2951 = vmatpush.bf16.msrb.mxu1 %v4028_v51  ;;  %v4950_v27 = vld [vmem:[#allocation6 + $0x1b0] sm:$0xf0] }
 0x1d2   :  { %v3848_v4 = vor.u32 %v4955_v1, %v3847_v22  ;;  %v3828_v29 = vor.u32 %v4950_v27, %v3827_v26  ;;  %v4990_v51 = vld [vmem:[#allocation6 + $0x2f0] sm:$0xf0]  ;;  %v3787_v22 = vld [vmem:[#allocation6 + $0x150] sm:$0xf]  ;;  %v4940_v1 = vld [vmem:[#allocation6 + $0x160] sm:$0xf0] }
 0x1d3   :  { %v5767_v48 = vpop.f32.mrf.mxu1  ;;  %v2569_v43 = vadd.f32 %v2568_v7, %v2546_v37  ;;  %v2571_v54 = vpop.f32.mrf.mxu0  ;;  %v5137_v7 = vld [vmem:[#allocation6 + $0x78c] sm:$0xf]  ;;  %v4407_v27 = vld [vmem:[#allocation6 + $0x628] sm:$0xf] }
 0x1d4   :  { %2929 = vmatpush.bf16.msrb.mxu0 %v3848_v4  ;;  %v4584_v18 = vor.u32 %v5137_v7, %v4581_v19  ;;  %v3788_v4 = vor.u32 %v4940_v1, %v3787_v22  ;;  %v4985_v7 = vld [vmem:[#allocation6 + $0x2c8] sm:$0xf0]  ;;  %v4387_v22 = vld [vmem:[#allocation6 + $0x600] sm:$0xf]  ;;  %v4567_v1 = vld [vmem:[#allocation6 + $0x768] sm:$0xf] }
 0x1d5   :  { %v3069_v47 = vmax.f32 %v2569_v43, 0.0  ;;  %2818 = vmatmul.bf16.vlgmr.msra.gmra.mxu3 %v5599_v24  ;;  %2952 = vmatpush.bf16.msrb.mxu1 %v4008_v23  ;;  %v5055_v23 = vld [vmem:[#allocation6 + $0x4f8] sm:$0xf0] }
 0x1d6   :  { %2841 = vmatmul.bf16.vlgmr.msra.gmra.mxu0 %v5615_v9  ;;  %v2527_v6 = vpop.f32.mrf.mxu2  ;;  %2886 = vmatpush.bf16.msra.mxu2 %v4584_v18 }
 0x1d7   :  { %v5771_v53 = vpack.c.bf16 %v3069_v47, %v3064_v2  ;;  %v2528_v11 = vadd.f32 %v2527_v6, %v5749_v49  ;;  %v3647_v49 = vld [vmem:[#allocation6 + $0x38] sm:$0xf] }
 0x1d8   :  { %v2548_v42 = vpop.f32.mrf.mxu3  ;;  %2930 = vmatpush.bf16.msrb.mxu0 %v3828_v29  ;;  %v3648_v63 = vor.u32 %v4905_v38, %v3647_v49  ;;  %v3967_v6 = vld [vmem:[#allocation6 + $0x2b8] sm:$0xf]  ;;  %v3947_v29 = vld [vmem:[#allocation6 + $0x290] sm:$0xf] }
 0x1d9   :  { %v2549_v15 = vadd.f32 %v2548_v42, %v2526_v14  ;;  %v3988_v14 = vor.u32 %v4990_v51, %v3987_v30  ;;  %v4247_v42 = vld [vmem:[#allocation6 + $0x4e8] sm:$0xf] }
 0x1da   :  { %2908 = vmatpush.bf16.msrb.mxu3 %v3648_v63  ;;  %v4248_v26 = vor.u32 %v5055_v23, %v4247_v42  ;;  %v5785_v63 = vld [vmem:[#allocation7] sm:$0x1f]  ;;  %v5175_v42 = vld [vmem:[#allocation6 + $0x8b8] sm:$0xf0] }
 0x1db   :  { %v5774_v16 = vpop.f32.mrf.mxu1  ;;  %v2572_v33 = vadd.f32 %v2571_v54, %v2549_v15  ;;  %v2573_v37 = vpop.f32.mrf.mxu0  ;;  %2800 = vmatmul.bf16.gmra.mxu2 %v5572_v28  ;;  %v3627_v54 = vld [vmem:[#allocation6 + $0x10] sm:$0xf]  ;;  %2953 = vmatpush.bf16.msrb.mxu1 %v3988_v14  ;;  %v5095_v15 = vld [vmem:[#allocation6 + $0x638] sm:$0xf0]  ;;  %v5788_v30 = vperm.slane %v5785_v63, 2 }
 0x1dc   :  { %v3628_v0 = vor.u32 %v4900_v60, %v3627_v54  ;;  %2931 = vmatpush.bf16.msrb.mxu0 %v3808_v55  ;;  %v4408_v49 = vor.u32 %v5095_v15, %v4407_v27  ;;  %2971 = vmatpush.bf16.msrb.mxu2 %v4248_v26  ;;  %v4227_v54 = vld [vmem:[#allocation6 + $0x4c0] sm:$0xf]  ;;  %v5050_v60 = vld [vmem:[#allocation6 + $0x4d0] sm:$0xf0]  ;;  %v4367_v27 = vld [vmem:[#allocation6 + $0x5d8] sm:$0xf] }
 0x1dd   :  { %v3074_v13 = vmax.f32 %v2572_v33, 0.0  ;;  %v2590_v55 = vadd.f32 %v5762_v31, %v5788_v30  ;;  %v2592_v26 = vadd.f32 %v5767_v48, %v5788_v30  ;;  %v5085_v15 = vld [vmem:[#allocation6 + $0x5e8] sm:$0xf0] }
 0x1de   :  { %2864 = vmatmul.bf16.vlgmr.msra.gmra.mxu1 %v5618_v17  ;;  %v2530_v34 = vpop.f32.mrf.mxu2  ;;  %2909 = vmatpush.bf16.msrb.mxu3 %v3628_v0  ;;  %v4228_v0 = vor.u32 %v5050_v60, %v4227_v54  ;;  %v4707_v60 = vld [vmem:[#allocation6 + $0x880] sm:$0xf] }
 0x1df   :  { %v2531_v43 = vadd.f32 %v2530_v34, %v5756_v45  ;;  %v3968_v45 = vor.u32 %v4985_v7, %v3967_v6  ;;  %v5135_v6 = vld [vmem:[#allocation6 + $0x778] sm:$0xf0]  ;;  %v4207_v7 = vld [vmem:[#allocation6 + $0x498] sm:$0xf] }
 0x1e0   :  { %v2550_v61 = vpop.f32.mrf.mxu3  ;;  %2932 = vmatpush.bf16.msrb.mxu0 %v3788_v4  ;;  %2972 = vmatpush.bf16.msrb.mxu2 %v4228_v0  ;;  %v4347_v0 = vld [vmem:[#allocation6 + $0x5b0] sm:$0xf] }
 0x1e1   :  { %v2551_v2 = vadd.f32 %v2550_v61, %v2528_v11  ;;  %2954 = vmatpush.bf16.msrb.mxu1 %v3968_v45  ;;  %v4568_v45 = vor.u32 %v5135_v6, %v4567_v1 }
 0x1e2   :  { %2994 = vmatpush.bf16.msra.mxu3 %v4408_v49 }
 0x1e3   :  { %v5779_v47 = vpop.f32.mrf.mxu1  ;;  %v2574_v19 = vadd.f32 %v2573_v37, %v2551_v2  ;;  %v2576_v58 = vpop.f32.mrf.mxu0  ;;  %v4980_v37 = vld [vmem:[#allocation6 + $0x2a0] sm:$0xf0] }
 0x1e4   :  { %v3948_v33 = vor.u32 %v4980_v37, %v3947_v29  ;;  %3017 = vmatpush.bf16.msra.mxu0 %v4568_v45  ;;  %v4547_v29 = vld [vmem:[#allocation6 + $0x740] sm:$0xf]  ;;  %v4368_v37 = vor.u32 %v5085_v15, %v4367_v27  ;;  %v5165_v27 = vld [vmem:[#allocation6 + $0x868] sm:$0xf0]  ;;  %v4327_v15 = vld [vmem:[#allocation6 + $0x588] sm:$0xf] }
 0x1e5   :  { %v3079_v18 = vmax.f32 %v2574_v19, 0.0  ;;  %2823 = vmatmul.bf16.gmra.mxu3 %v5624_v52  ;;  %v5045_v19 = vld [vmem:[#allocation6 + $0x4a8] sm:$0xf0] }
 0x1e6   :  { %2846 = vmatmul.bf16.gmra.mxu0 %v5638_v44  ;;  %v2532_v11 = vpop.f32.mrf.mxu2  ;;  %2955 = vmatpush.bf16.msrb.mxu1 %v3948_v33  ;;  %v4187_v33 = vld [vmem:[#allocation6 + $0x470] sm:$0xf] }
 0x1e7   :  { %v5783_v38 = vpack.c.bf16 %v3079_v18, %v3074_v13  ;;  %v4208_v13 = vor.u32 %v5045_v19, %v4207_v7  ;;  %v4727_v18 = vld [vmem:[#allocation6 + $0x8a8] sm:$0xf]  ;;  %v5035_v19 = vld [vmem:[#allocation6 + $0x458] sm:$0xf0] }
 0x1e8   :  { %v2553_v20 = vpop.f32.mrf.mxu3  ;;  %v4728_v31 = vor.u32 %v5175_v42, %v4727_v18  ;;  %v4167_v7 = vld [vmem:[#allocation6 + $0x448] sm:$0xf]  ;;  %v4527_v18 = vld [vmem:[#allocation6 + $0x718] sm:$0xf]  ;;  %v5125_v42 = vld [vmem:[#allocation6 + $0x728] sm:$0xf0] }
 0x1e9   :  { %v2554_v51 = vadd.f32 %v2553_v20, %v2531_v43  ;;  %v5090_v43 = vld [vmem:[#allocation6 + $0x610] sm:$0xf0]  ;;  %2973 = vmatpush.bf16.msrb.mxu2 %v4208_v13  ;;  %v4168_v13 = vor.u32 %v5035_v19, %v4167_v7 }
 0x1ea   :  { %v4388_v4 = vor.u32 %v5090_v43, %v4387_v22  ;;  %3040 = vmatpush.bf16.msra.mxu1 %v4728_v31  ;;  %v5130_v20 = vld [vmem:[#allocation6 + $0x750] sm:$0xf0]  ;;  %v5080_v43 = vld [vmem:[#allocation6 + $0x5c0] sm:$0xf0]  ;;  %v4528_v31 = vor.u32 %v5125_v42, %v4527_v18  ;;  %v4487_v42 = vld [vmem:[#allocation6 + $0x6c8] sm:$0xf] }
 0x1eb   :  { %v5790_v34 = vpop.f32.mrf.mxu1  ;;  %v5792_v14 = vadd.f32 %v2576_v58, %v2554_v51  ;;  %v2578_v46 = vpop.f32.mrf.mxu0  ;;  %2805 = vmatmul.bf16.gmra.mxu2 %v5601_v25  ;;  %v5040_v51 = vld [vmem:[#allocation6 + $0x480] sm:$0xf0]  ;;  %v4348_v6 = vor.u32 %v5080_v43, %v4347_v0  ;;  %v5070_v18 = vld [vmem:[#allocation6 + $0x570] sm:$0xf0] }
 0x1ec   :  { %2995 = vmatpush.bf16.msra.mxu3 %v4388_v4  ;;  %v4188_v54 = vor.u32 %v5040_v51, %v4187_v33  ;;  %v5160_v43 = vld [vmem:[#allocation6 + $0x840] sm:$0xf0] }
 0x1ee   :  { %2869 = vmatmul.bf16.gmra.mxu1 %v5640_v36  ;;  %v2612_v61 = vpop.f32.mrf.mxu2  ;;  %2974 = vmatpush.bf16.msrb.mxu2 %v4188_v54  ;;  %v5120_v54 = vld [vmem:[#allocation6 + $0x700] sm:$0xf0] }
 0x1ef   :  { %v2613_v2 = vadd.f32 %v2612_v61, %v2590_v55  ;;  %v4548_v55 = vor.u32 %v5130_v20, %v4547_v29  ;;  %v5170_v61 = vld [vmem:[#allocation6 + $0x890] sm:$0xf0] }
 0x1f0   :  { %v2555_v58 = vpop.f32.mrf.mxu3  ;;  %2996 = vmatpush.bf16.msra.mxu3 %v4368_v37  ;;  %v4708_v48 = vor.u32 %v5170_v61, %v4707_v60  ;;  %v4147_v37 = vld [vmem:[#allocation6 + $0x420] sm:$0xf]  ;;  %v5030_v20 = vld [vmem:[#allocation6 + $0x430] sm:$0xf0] }
 0x1f1   :  { %3018 = vmatpush.bf16.msra.mxu0 %v4548_v55  ;;  %v4507_v55 = vld [vmem:[#allocation6 + $0x6f0] sm:$0xf]  ;;  %v4148_v60 = vor.u32 %v5030_v20, %v4147_v37  ;;  %v5155_v37 = vld [vmem:[#allocation6 + $0x818] sm:$0xf0] }
 0x1f2   :  { %3041 = vmatpush.bf16.msra.mxu1 %v4708_v48  ;;  %2975 = vmatpush.bf16.msrb.mxu2 %v4168_v13  ;;  %v4667_v48 = vld [vmem:[#allocation6 + $0x830] sm:$0xf]  ;;  %v4307_v13 = vld [vmem:[#allocation6 + $0x560] sm:$0xf] }
 0x1f3   :  { %v2601_v23 = vpop.f32.mrf.mxu1  ;;  %v2658_v11 = vpop.f32.mrf.mxu0 }
 0x1f4   :  { %2997 = vmatpush.bf16.msra.mxu3 %v4348_v6  ;;  %v5025_v6 = vld [vmem:[#allocation6 + $0x408] sm:$0xf0] }
 0x1f5   :  { %2828 = vmatmul.bf16.gmra.mxu3 %v5645_v50  ;;  %3019 = vmatpush.bf16.msra.mxu0 %v4528_v31  ;;  %v4308_v31 = vor.u32 %v5070_v18, %v4307_v13 }
 0x1f6   :  { %2851 = vmatmul.bf16.gmra.mxu0 %v5655_v40  ;;  %v2614_v49 = vpop.f32.mrf.mxu2  ;;  %2976 = vmatpush.bf16.msrb.mxu2 %v4148_v60 }
 0x1f7   :  { %v2615_v46 = vadd.f32 %v2614_v49, %v2592_v26  ;;  %v4687_v26 = vld [vmem:[#allocation6 + $0x858] sm:$0xf]  ;;  %v5075_v49 = vld [vmem:[#allocation6 + $0x598] sm:$0xf0] }
 0x1f8   :  { %v2635_v22 = vpop.f32.mrf.mxu3  ;;  %v4688_v29 = vor.u32 %v5165_v27, %v4687_v26  ;;  %v4328_v51 = vor.u32 %v5075_v49, %v4327_v15  ;;  %v5115_v26 = vld [vmem:[#allocation6 + $0x6d8] sm:$0xf0]  ;;  %v4107_v15 = vld [vmem:[#allocation6 + $0x3d0] sm:$0xf]  ;;  %v4647_v49 = vld [vmem:[#allocation6 + $0x808] sm:$0xf] }
 0x1f9   :  { %v2636_v1 = vadd.f32 %v2635_v22, %v2613_v2  ;;  %v2595_v2 = vadd.f32 %v5774_v16, %v5788_v30  ;;  %v4508_v16 = vor.u32 %v5120_v54, %v4507_v55  ;;  %v4488_v27 = vor.u32 %v5115_v26, %v4487_v42  ;;  %v4467_v55 = vld [vmem:[#allocation6 + $0x6a0] sm:$0xf]  ;;  %v5110_v54 = vld [vmem:[#allocation6 + $0x6b0] sm:$0xf0]  ;;  %v4267_v42 = vld [vmem:[#allocation6 + $0x510] sm:$0xf] }
 0x1fa   :  { %3042 = vmatpush.bf16.msra.mxu1 %v4688_v29  ;;  %2998 = vmatpush.bf16.msra.mxu3 %v4328_v51  ;;  %v4427_v26 = vld [vmem:[#allocation6 + $0x650] sm:$0xf] }
 0x1fb   :  { %v2681_v4 = vpop.f32.mrf.mxu1  ;;  %v2659_v58 = vadd.f32 %v2658_v11, %v2636_v1  ;;  %v2660_v45 = vpop.f32.mrf.mxu0  ;;  %2887 = vmatmul.bf16.vlgmr.msra.gmra.mxu2 %v5626_v56  ;;  %v4668_v1 = vor.u32 %v5160_v43, %v4667_v48  ;;  %3020 = vmatpush.bf16.msra.mxu0 %v4508_v16  ;;  %v4627_v43 = vld [vmem:[#allocation6 + $0x7e0] sm:$0xf] }
 0x1fd   :  { %v5806_v23 = vadd.f32 %v2681_v4, %v2659_v58  ;;  %v4127_v4 = vld [vmem:[#allocation6 + $0x3f8] sm:$0xf] }
 0x1fe   :  { %2874 = vmatmul.bf16.gmra.mxu1 %v5657_v41  ;;  %v2617_v11 = vpop.f32.mrf.mxu2  ;;  %v4128_v58 = vor.u32 %v5025_v6, %v4127_v4  ;;  %2999 = vmatpush.bf16.msra.mxu3 %v4308_v31  ;;  %v4447_v4 = vld [vmem:[#allocation6 + $0x678] sm:$0xf] }
 0x1ff   :  { %v2618_v33 = vadd.f32 %v2617_v11, %v2595_v2  ;;  %3043 = vmatpush.bf16.msra.mxu1 %v4668_v1  ;;  %v2597_v2 = vadd.f32 %v5779_v47, %v5788_v30  ;;  %v5020_v11 = vld [vmem:[#allocation6 + $0x3e0] sm:$0xf0]  ;;  %3021 = vmatpush.bf16.msra.mxu0 %v4488_v27  ;;  %v4648_v47 = vor.u32 %v5155_v37, %v4647_v49  ;;  %v5150_v1 = vld [vmem:[#allocation6 + $0x7f0] sm:$0xf0] }
 0x200   :  { %v2637_v61 = vpop.f32.mrf.mxu3  ;;  %2977 = vmatpush.bf16.msrb.mxu2 %v4128_v58  ;;  %v4108_v20 = vor.u32 %v5020_v11, %v4107_v15  ;;  %v5105_v58 = vld [vmem:[#allocation6 + $0x688] sm:$0xf0] }
 0x201   :  { %v2638_v0 = vadd.f32 %v2637_v61, %v2615_v46  ;;  %v4468_v61 = vor.u32 %v5110_v54, %v4467_v55  ;;  %v4448_v13 = vor.u32 %v5105_v58, %v4447_v4  ;;  %v4587_v55 = vld [vmem:[#allocation6 + $0x790] sm:$0xf]  ;;  %v5140_v54 = vld [vmem:[#allocation6 + $0x7a0] sm:$0xf0] }
 0x202   :  { %v5181_v4 = vld [vmem:[#allocation9 + $0x28] sm:$0xff]  ;;  %v5199_v58 = vld [vmem:[#allocation9 + $0xb8] sm:$0xff] }
 0x203   :  { %v2683_v22 = vpop.f32.mrf.mxu1  ;;  %v2661_v7 = vadd.f32 %v2660_v45, %v2638_v0  ;;  %v2663_v19 = vpop.f32.mrf.mxu0  ;;  %3044 = vmatpush.bf16.msra.mxu1 %v4648_v47  ;;  %v4287_v0 = vld [vmem:[#allocation6 + $0x538] sm:$0xf]  ;;  %3022 = vmatpush.bf16.msra.mxu0 %v4468_v61 }
 0x204   :  { %2978 = vmatpush.bf16.msrb.mxu2 %v4108_v20 }
 0x205   :  { %v5810_v46 = vadd.f32 %v2683_v22, %v2661_v7  ;;  %2910 = vmatmul.bf16.vlgmr.msrb.gmra.mxu3 %v5542_v5  ;;  %v5065_v22 = vld [vmem:[#allocation6 + $0x548] sm:$0xf0]  ;;  %v4628_v7 = vor.u32 %v5150_v1, %v4627_v43 }
 0x206   :  { %2933 = vmatmul.bf16.vlgmr.msrb.gmra.mxu0 %v5545_v10  ;;  %v2619_v45 = vpop.f32.mrf.mxu2  ;;  %v4288_v48 = vor.u32 %v5065_v22, %v4287_v0  ;;  %v5183_v0 = vld [vmem:[#allocation9 + $0x38] sm:$0xff] }
 0x207   :  { %v2620_v29 = vadd.f32 %v2619_v45, %v2597_v2  ;;  %3045 = vmatpush.bf16.msra.mxu1 %v4628_v7  ;;  %v5060_v2 = vld [vmem:[#allocation6 + $0x520] sm:$0xf0]  ;;  %3023 = vmatpush.bf16.msra.mxu0 %v4448_v13 }
 0x208   :  { %v2640_v51 = vpop.f32.mrf.mxu3  ;;  %3000 = vmatpush.bf16.msra.mxu3 %v4288_v48  ;;  %v4268_v31 = vor.u32 %v5060_v2, %v4267_v42  ;;  %v5100_v45 = vld [vmem:[#allocation6 + $0x660] sm:$0xf0]  ;;  %3427 = vmatpush.bf16.msra.mxu2 %v5183_v0  ;;  %v5190_v2 = vld [vmem:[#allocation9 + $0x70] sm:$0xff] }
 0x209   :  { %v2641_v5 = vadd.f32 %v2640_v51, %v2618_v33  ;;  %v2600_v33 = vadd.f32 %v5790_v34, %v5788_v30  ;;  %v4428_v11 = vor.u32 %v5100_v45, %v4427_v26  ;;  %v4607_v30 = vld [vmem:[#allocation6 + $0x7b8] sm:$0xf]  ;;  %v5145_v34 = vld [vmem:[#allocation6 + $0x7c8] sm:$0xf0]  ;;  %v5191_v7 = vld [vmem:[#allocation9 + $0x78] sm:$0xff] }
 0x20a   :  { %v4608_v20 = vor.u32 %v5145_v34, %v4607_v30  ;;  %v5189_v45 = vld [vmem:[#allocation9 + $0x68] sm:$0xff]  ;;  %v5178_v34 = vld [vmem:[#allocation9 + $0x10] sm:$0xff] }
 0x20b   :  { %v2686_v60 = vpop.f32.mrf.mxu1  ;;  %v2664_v10 = vadd.f32 %v2663_v19, %v2641_v5  ;;  %v2665_v16 = vpop.f32.mrf.mxu0  ;;  %2892 = vmatmul.bf16.gmra.mxu2 %v5650_v3  ;;  %3024 = vmatpush.bf16.msra.mxu0 %v4428_v11 }
 0x20c   :  { %3001 = vmatpush.bf16.msra.mxu3 %v4268_v31  ;;  %3046 = vmatpush.bf16.msra.mxu1 %v4608_v20  ;;  %v5188_v20 = vld [vmem:[#allocation9 + $0x60] sm:$0xff] }
 0x20d   :  { %v5818_v6 = vadd.f32 %v2686_v60, %v2664_v10 }
 0x20e   :  { %2956 = vmatmul.bf16.vlgmr.msrb.gmra.mxu1 %v5552_v35  ;;  %v2622_v19 = vpop.f32.mrf.mxu2 }
 0x20f   :  { %v2623_v18 = vadd.f32 %v2622_v19, %v2600_v33  ;;  %v5829_v33 = vperm.slane %v5785_v63, 3  ;;  %3473 = vmatpush.bf16.msrb.mxu0 %v5199_v58  ;;  %v5180_v19 = vld [vmem:[#allocation9 + $0x20] sm:$0xff] }
 0x210   :  { %v2642_v35 = vpop.f32.mrf.mxu3  ;;  %3450 = vmatpush.bf16.msrb.mxu3 %v5191_v7 }
 0x211   :  { %v2643_v27 = vadd.f32 %v2642_v35, %v2620_v29  ;;  %v4588_v29 = vor.u32 %v5140_v54, %v4587_v55  ;;  %v5198_v35 = vld [vmem:[#allocation9 + $0xb0] sm:$0xff]  ;;  %v5177_v54 = vld [vmem:[#allocation9 + $0x8] sm:$0xff] }
 0x213   :  { %v2688_v15 = vpop.f32.mrf.mxu1  ;;  %v2666_v49 = vadd.f32 %v2665_v16, %v2643_v27  ;;  %v2668_v37 = vpop.f32.mrf.mxu0  ;;  %3047 = vmatpush.bf16.msra.mxu1 %v4588_v29  ;;  %3474 = vmatpush.bf16.msrb.mxu0 %v5198_v35  ;;  %v5197_v27 = vld [vmem:[#allocation9 + $0xa8] sm:$0xff] }
 0x214   :  { %3451 = vmatpush.bf16.msrb.mxu3 %v5190_v2 }
 0x215   :  { %v5820_v51 = vadd.f32 %v2688_v15, %v2666_v49  ;;  %2915 = vmatmul.bf16.gmra.mxu3 %v5562_v8 }
 0x216   :  { %2938 = vmatmul.bf16.gmra.mxu0 %v5565_v12  ;;  %v2624_v47 = vpop.f32.mrf.mxu2  ;;  %v5182_v12 = vld [vmem:[#allocation9 + $0x30] sm:$0xff] }
 0x217   :  { %3428 = vmatpush.bf16.msra.mxu2 %v5182_v12  ;;  %3475 = vmatpush.bf16.msrb.mxu0 %v5197_v27  ;;  %v5194_v12 = vld [vmem:[#allocation9 + $0x90] sm:$0xff] }
 0x218   :  { %v2645_v5 = vpop.f32.mrf.mxu3  ;;  %3452 = vmatpush.bf16.msrb.mxu3 %v5189_v45 }
 0x219   :  { %v2646_v60 = vadd.f32 %v2645_v5, %v2623_v18  ;;  %v5195_v5 = vld [vmem:[#allocation9 + $0x98] sm:$0xff] }
 0x21b   :  { %v2691_v61 = vpop.f32.mrf.mxu1  ;;  %v2669_v10 = vadd.f32 %v2668_v37, %v2646_v60  ;;  %v2670_v16 = vpop.f32.mrf.mxu0  ;;  %2897 = vmatmul.bf16.gmra.mxu2 %v5661_v32 }
 0x21c   :  { %3429 = vmatpush.bf16.msra.mxu2 %v5181_v4  ;;  %3453 = vmatpush.bf16.msrb.mxu3 %v5188_v20 }
 0x21d   :  { %v5826_v22 = vadd.f32 %v2691_v61, %v2669_v10  ;;  %v5176_v61 = vld [vmem:[#allocation9] sm:$0xff] }
 0x21e   :  { %2961 = vmatmul.bf16.gmra.mxu1 %v5572_v28  ;;  %v2704_v8 = vpop.f32.mrf.mxu2 }
 0x220   :  { %v2647_v48 = vpop.f32.mrf.mxu3  ;;  %3430 = vmatpush.bf16.msra.mxu2 %v5180_v19 }
 0x223   :  { %v2693_v43 = vpop.f32.mrf.mxu1  ;;  %v2750_v1 = vpop.f32.mrf.mxu0 }
 0x224   :  { %v2751_v13 = vadd.f32 %v2750_v1, %v5829_v33  ;;  %v5193_v1 = vld [vmem:[#allocation9 + $0x88] sm:$0xff] }
 0x225   :  { %2920 = vmatmul.bf16.gmra.mxu3 %v5586_v57  ;;  %v5179_v57 = vld [vmem:[#allocation9 + $0x18] sm:$0xff] }
 0x226   :  { %2943 = vmatmul.bf16.gmra.mxu0 %v5583_v39  ;;  %v2706_v28 = vpop.f32.mrf.mxu2  ;;  %v2705_v39 = vadd.f32 %v2704_v8, %v5806_v23  ;;  %3431 = vmatpush.bf16.msra.mxu2 %v5179_v57  ;;  %v5186_v8 = vld [vmem:[#allocation9 + $0x50] sm:$0xff] }
 0x227   :  { %v2707_v11 = vadd.f32 %v2706_v28, %v5810_v46  ;;  %v5187_v46 = vld [vmem:[#allocation9 + $0x58] sm:$0xff] }
 0x228   :  { %v2727_v18 = vpop.f32.mrf.mxu3  ;;  %3454 = vmatpush.bf16.msrb.mxu3 %v5187_v46 }
 0x229   :  { %v2728_v30 = vadd.f32 %v2727_v18, %v2705_v39  ;;  %v5192_v18 = vld [vmem:[#allocation9 + $0x80] sm:$0xff] }
 0x22a   :  { %3432 = vmatpush.bf16.msra.mxu2 %v5178_v34  ;;  %v5206_v34 = vld [vmem:[#allocation9 + $0xf0] sm:$0xff] }
 0x22b   :  { %v2773_v42 = vpop.f32.mrf.mxu1  ;;  %v5836_v26 = vpop.f32.mrf.mxu0  ;;  %2979 = vmatmul.bf16.vlgmr.msrb.gmra.mxu2 %v5599_v24  ;;  %v3065_v47 = vmax.f32 %v2728_v30, 0.0 }
 0x22c   :  { %v5834_v31 = vadd.f32 %v2773_v42, %v2751_v13  ;;  %3455 = vmatpush.bf16.msrb.mxu3 %v5186_v8 }
 0x22e   :  { %2966 = vmatmul.bf16.gmra.mxu1 %v5601_v25  ;;  %v2709_v15 = vpop.f32.mrf.mxu2  ;;  %v5196_v25 = vld [vmem:[#allocation9 + $0xa0] sm:$0xff]  ;;  %3433 = vmatpush.bf16.msra.mxu2 %v5177_v54  ;;  %v5202_v54 = vld [vmem:[#allocation9 + $0xd0] sm:$0xff] }
 0x22f   :  { %3476 = vmatpush.bf16.msrb.mxu0 %v5196_v25 }
 0x230   :  { %v2729_v49 = vpop.f32.mrf.mxu3 }
 0x231   :  { %v2730_v37 = vadd.f32 %v2729_v49, %v2707_v11  ;;  %v5205_v49 = vld [vmem:[#allocation9 + $0xe8] sm:$0xff] }
 0x232   :  { %3434 = vmatpush.bf16.msra.mxu2 %v5176_v61 }
 0x233   :  { %v5842_v24 = vpop.f32.mrf.mxu1  ;;  %v3070_v55 = vmax.f32 %v2730_v37, 0.0  ;;  %v2755_v23 = vpop.f32.mrf.mxu0  ;;  %3477 = vmatpush.bf16.msrb.mxu0 %v5195_v5 }
 0x234   :  { %v2756_v10 = vadd.f32 %v2755_v23, %v5829_v33 }
 0x235   :  { %v5844_v29 = vpack.c.bf16 %v3070_v55, %v3065_v47  ;;  %3002 = vmatmul.bf16.vlgmr.msra.gmra.mxu3 %v5615_v9  ;;  %v2710_v9 = vadd.f32 %v2709_v15, %v5818_v6  ;;  %v5207_v15 = vld [vmem:[#allocation9 + $0xf8] sm:$0xff] }
 0x236   :  { %3025 = vmatmul.bf16.vlgmr.msra.gmra.mxu0 %v5618_v17  ;;  %v2711_v60 = vpop.f32.mrf.mxu2  ;;  %v5185_v17 = vld [vmem:[#allocation9 + $0x48] sm:$0xff]  ;;  %3496 = vmatpush.bf16.msrb.mxu1 %v5207_v15 }
 0x237   :  { %3478 = vmatpush.bf16.msrb.mxu0 %v5194_v12  ;;  %v2712_v7 = vadd.f32 %v2711_v60, %v5820_v51  ;;  %3456 = vmatpush.bf16.msrb.mxu3 %v5185_v17  ;;  %v2753_v12 = vadd.f32 %v5836_v26, %v5829_v33  ;;  %v5215_v26 = vld [vmem:[#allocation9 + $0x138] sm:$0xff] }
 0x238   :  { %v2732_v16 = vpop.f32.mrf.mxu3  ;;  %3519 = vmatpush.bf16.msrb.mxu2 %v5215_v26 }
 0x239   :  { %v2733_v58 = vadd.f32 %v2732_v16, %v2710_v9  ;;  %v2776_v17 = vadd.f32 %v5842_v24, %v2753_v12 }
 0x23a   :  { %3497 = vmatpush.bf16.msrb.mxu1 %v5206_v34 }
 0x23b   :  { %v2778_v0 = vpop.f32.mrf.mxu1  ;;  %v5851_v43 = vpop.f32.mrf.mxu0  ;;  %2984 = vmatmul.bf16.gmra.mxu2 %v5624_v52  ;;  %3479 = vmatpush.bf16.msrb.mxu0 %v5193_v1  ;;  %v5184_v52 = vld [vmem:[#allocation9 + $0x40] sm:$0xff]  ;;  %v3075_v42 = vmax.f32 %v2733_v58, 0.0 }
 0x23c   :  { %v5849_v48 = vadd.f32 %v2778_v0, %v2756_v10  ;;  %3457 = vmatpush.bf16.msrb.mxu3 %v5184_v52 }
 0x23e   :  { %3048 = vmatmul.bf16.vlgmr.msra.gmra.mxu1 %v5626_v56  ;;  %v5856_v4 = vpop.f32.mrf.mxu2 }
 0x23f   :  { %3480 = vmatpush.bf16.msrb.mxu0 %v5192_v18  ;;  %3498 = vmatpush.bf16.msrb.mxu1 %v5205_v49  ;;  %v2715_v58 = vadd.f32 %v5856_v4, %v5826_v22 }
 0x240   :  { %v2734_v28 = vpop.f32.mrf.mxu3 }
 0x241   :  { %v2735_v19 = vadd.f32 %v2734_v28, %v2712_v7 }
 0x243   :  { %v5859_v13 = vpop.f32.mrf.mxu1  ;;  %v3080_v56 = vmax.f32 %v2735_v19, 0.0  ;;  %v2760_v2 = vpop.f32.mrf.mxu0 }
 0x244   :  { %v2761_v35 = vadd.f32 %v2760_v2, %v5829_v33 }
 0x245   :  { %3007 = vmatmul.bf16.gmra.mxu3 %v5638_v44  ;;  %v3095_v6 = vpack.c.bf16 %v3080_v56, %v3075_v42  ;;  %v3084_v42 = vmax.f32 %v5792_v14, 0.0  ;;  %v2758_v14 = vadd.f32 %v5851_v43, %v5829_v33  ;;  %v5212_v33 = vld [vmem:[#allocation9 + $0x120] sm:$0xff] }
 0x246   :  { %3030 = vmatmul.bf16.gmra.mxu0 %v5640_v36  ;;  %v2716_v51 = vpop.f32.mrf.mxu2 }
 0x247   :  { %v3099_v51 = vpack.c.bf16 %v3084_v42, %v3084_v42  ;;  %v2781_v34 = vadd.f32 %v5859_v13, %v2758_v14 }
 0x248   :  { %v5864_v57 = vpop.f32.mrf.mxu3 }
 0x249   :  { %v2738_v19 = vadd.f32 %v5864_v57, %v2715_v58  ;;  %v5214_v57 = vld [vmem:[#allocation9 + $0x130] sm:$0xff] }
 0x24a   :  { %3520 = vmatpush.bf16.msrb.mxu2 %v5214_v57 }
 0x24b   :  { %v2783_v39 = vpop.f32.mrf.mxu1  ;;  %v2762_v27 = vpop.f32.mrf.mxu0  ;;  %2989 = vmatmul.bf16.gmra.mxu2 %v5645_v50  ;;  %v5204_v50 = vld [vmem:[#allocation9 + $0xe0] sm:$0xff]  ;;  %v3085_v24 = vmax.f32 %v2738_v19, 0.0 }
 0x24c   :  { %v5866_v45 = vadd.f32 %v2783_v39, %v2761_v35  ;;  %3499 = vmatpush.bf16.msrb.mxu1 %v5204_v50 }
 0x24d   :  { %v3100_v4 = vpack.c.bf16 %v3085_v24, %v3085_v24 }
 0x24e   :  { %3053 = vmatmul.bf16.gmra.mxu1 %v5650_v3  ;;  %v2796_v11 = vpop.f32.mrf.mxu2  ;;  %v5203_v3 = vld [vmem:[#allocation9 + $0xd8] sm:$0xff] }
 0x24f   :  { %v2797_v1 = vadd.f32 %v2796_v11, %v5834_v31 }
 0x250   :  { %v2739_v44 = vpop.f32.mrf.mxu3  ;;  %3500 = vmatpush.bf16.msrb.mxu1 %v5203_v3 }
 0x251   :  { %v5213_v44 = vld [vmem:[#allocation9 + $0x128] sm:$0xff] }
 0x252   :  { %3521 = vmatpush.bf16.msrb.mxu2 %v5213_v44 }
 0x253   :  { %v2785_v30 = vpop.f32.mrf.mxu1  ;;  %v2842_v36 = vpop.f32.mrf.mxu0 }
 0x254   :  { %3501 = vmatpush.bf16.msrb.mxu1 %v5202_v54 }
 0x255   :  { %3012 = vmatmul.bf16.gmra.mxu3 %v5655_v40 }
 0x256   :  { %3035 = vmatmul.bf16.gmra.mxu0 %v5657_v41  ;;  %v2798_v37 = vpop.f32.mrf.mxu2  ;;  %v5201_v41 = vld [vmem:[#allocation9 + $0xc8] sm:$0xff]  ;;  %3522 = vmatpush.bf16.msrb.mxu2 %v5212_v33 }
 0x258   :  { %v2819_v20 = vpop.f32.mrf.mxu3  ;;  %3502 = vmatpush.bf16.msrb.mxu1 %v5201_v41 }
 0x259   :  { %v2820_v28 = vadd.f32 %v2819_v20, %v2797_v1 }
 0x25b   :  { %v2865_v25 = vpop.f32.mrf.mxu1  ;;  %v2844_v47 = vpop.f32.mrf.mxu0  ;;  %3435 = vmatmul.bf16.vlgmr.msra.gmra.mxu2 %v5715_v62  ;;  %v2843_v56 = vadd.f32 %v2842_v36, %v2820_v28 }
 0x25d   :  { %v2866_v35 = vadd.f32 %v2865_v25, %v2843_v56 }
 0x25e   :  { %3058 = vmatmul.bf16.gmra.mxu1 %v5661_v32  ;;  %v5874_v55 = vpop.f32.mrf.mxu2  ;;  %v5200_v32 = vld [vmem:[#allocation9 + $0xc0] sm:$0xff] }
 0x25f   :  { %3503 = vmatpush.bf16.msrb.mxu1 %v5200_v32  ;;  %v2802_v36 = vadd.f32 %v5874_v55, %v5849_v48  ;;  %v5211_v32 = vld [vmem:[#allocation9 + $0x118] sm:$0xff] }
 0x260   :  { %v2821_v23 = vpop.f32.mrf.mxu3  ;;  %3523 = vmatpush.bf16.msrb.mxu2 %v5211_v32 }
 0x263   :  { %v2867_v40 = vpop.f32.mrf.mxu1  ;;  %v5876_v46 = vpop.f32.mrf.mxu0 }
 0x265   :  { %3458 = vmatmul.bf16.vlgmr.msrb.gmra.mxu3 %v5771_v53 }
 0x266   :  { %3481 = vmatmul.bf16.vlgmr.msrb.gmra.mxu0 %v5844_v29  ;;  %v2803_v5 = vpop.f32.mrf.mxu2  ;;  %v3083_v29 = vmax.f32 %v5726_v21, 0.0  ;;  %v2799_v21 = vadd.f32 %v2798_v37, %v2776_v17 }
 0x267   :  { %v2804_v25 = vadd.f32 %v2803_v5, %v2781_v34 }
 0x268   :  { %v2824_v62 = vpop.f32.mrf.mxu3  ;;  %v2822_v52 = vadd.f32 %v2821_v23, %v2799_v21 }
 0x269   :  { %v2825_v50 = vadd.f32 %v2824_v62, %v2802_v36 }
 0x26a   :  { %v2845_v2 = vadd.f32 %v2844_v47, %v2822_v52 }
 0x26b   :  { %v5880_v60 = vpop.f32.mrf.mxu1  ;;  %v5882_v61 = vpop.f32.mrf.mxu0  ;;  %3440 = vmatmul.bf16.gmra.mxu2 %v5722_v59  ;;  %v3098_v59 = vpack.c.bf16 %v3083_v29, %v3083_v29 }
 0x26c   :  { %v2868_v39 = vadd.f32 %v2867_v40, %v2845_v2  ;;  %v2848_v40 = vadd.f32 %v5876_v46, %v2825_v50 }
 0x26e   :  { %v5885_v10 = vpop.f32.mrf.mxu2  ;;  %v2871_v48 = vadd.f32 %v5880_v60, %v2848_v40 }
 0x270   :  { %v2826_v16 = vpop.f32.mrf.mxu3 }
 0x271   :  { %v2827_v23 = vadd.f32 %v2826_v16, %v2804_v25  ;;  %v2807_v16 = vadd.f32 %v5885_v10, %v5866_v45  ;;  %v5209_v45 = vld [vmem:[#allocation9 + $0x108] sm:$0xff] }
 0x273   :  { %v5887_v0 = vpop.f32.mrf.mxu1  ;;  %v5889_v53 = vpop.f32.mrf.mxu0  ;;  %v2850_v13 = vadd.f32 %v5882_v61, %v2827_v23 }
 0x275   :  { %3463 = vmatmul.bf16.gmra.mxu3 %v5783_v38  ;;  %v2873_v5 = vadd.f32 %v5887_v0, %v2850_v13  ;;  %v5210_v0 = vld [vmem:[#allocation9 + $0x110] sm:$0xff] }
 0x276   :  { %3486 = vmatmul.bf16.gmra.mxu0 %v3095_v6  ;;  %v2808_v8 = vpop.f32.mrf.mxu2  ;;  %3524 = vmatpush.bf16.msrb.mxu2 %v5210_v0 }
 0x278   :  { %v5895_v9 = vpop.f32.mrf.mxu3 }
 0x279   :  { %v2830_v46 = vadd.f32 %v5895_v9, %v2807_v16 }
 0x27a   :  { %3525 = vmatpush.bf16.msrb.mxu2 %v5209_v45 }
 0x27b   :  { %v5899_v7 = vpop.f32.mrf.mxu1  ;;  %v2854_v38 = vpop.f32.mrf.mxu0  ;;  %3445 = vmatmul.bf16.gmra.mxu2 %v3098_v59  ;;  %v2853_v60 = vadd.f32 %v5889_v53, %v2830_v46  ;;  %v796_v53 = vperm.slane %v5785_v63, 4 }
 0x27d   :  { %v2876_v38 = vadd.f32 %v5899_v7, %v2853_v60 }
 0x27e   :  { %v2888_v18 = vpop.f32.mrf.mxu2 }
 0x27f   :  { %v2889_v27 = vadd.f32 %v2888_v18, %v2866_v35  ;;  %v5208_v18 = vld [vmem:[#allocation9 + $0x100] sm:$0xff] }
 0x280   :  { %v2831_v31 = vpop.f32.mrf.mxu3  ;;  %3526 = vmatpush.bf16.msrb.mxu2 %v5208_v18 }
 0x281   :  { %v3066_v49 = vmax.f32 %v2889_v27, 0.0 }
 0x283   :  { %v2877_v6 = vpop.f32.mrf.mxu1  ;;  %v5905_v22 = vpop.f32.mrf.mxu0 }
 0x285   :  { %3468 = vmatmul.bf16.gmra.mxu3 %v3099_v51 }
 0x286   :  { %3491 = vmatmul.bf16.gmra.mxu0 %v3100_v4  ;;  %v2890_v15 = vpop.f32.mrf.mxu2 }
 0x287   :  { %v2891_v11 = vadd.f32 %v2890_v15, %v2868_v39 }
 0x288   :  { %v2911_v30 = vpop.f32.mrf.mxu3 }
 0x289   :  { %v3071_v37 = vmax.f32 %v2891_v11, 0.0  ;;  %v2912_v6 = vadd.f32 %v2911_v30, %v796_v53 }
 0x28b   :  { %v2957_v20 = vpop.f32.mrf.mxu1  ;;  %v3091_v47 = vpack.c.bf16 %v3071_v37, %v3066_v49  ;;  %v2936_v3 = vpop.f32.mrf.mxu0  ;;  %v2935_v35 = vadd.f32 %v5905_v22, %v2912_v6 }
 0x28d   :  { %3504 = vmatmul.bf16.vlgmr.msrb.gmra.mxu1 %v3091_v47  ;;  %v2958_v57 = vadd.f32 %v2957_v20, %v2935_v35 }
 0x28e   :  { %v2893_v43 = vpop.f32.mrf.mxu2 }
 0x28f   :  { %v2894_v62 = vadd.f32 %v2893_v43, %v2871_v48 }
 0x290   :  { %v2913_v54 = vpop.f32.mrf.mxu3 }
 0x291   :  { %v3076_v59 = vmax.f32 %v2894_v62, 0.0  ;;  %v2914_v39 = vadd.f32 %v2913_v54, %v796_v53 }
 0x293   :  { %v2959_v41 = vpop.f32.mrf.mxu1  ;;  %v2939_v55 = vpop.f32.mrf.mxu0  ;;  %v2937_v14 = vadd.f32 %v2936_v3, %v2914_v39 }
 0x295   :  { %v2960_v63 = vadd.f32 %v2959_v41, %v2937_v14 }
 0x296   :  { %v2895_v29 = vpop.f32.mrf.mxu2 }
 0x297   :  { %v2896_v8 = vadd.f32 %v2895_v29, %v2873_v5 }
 0x298   :  { %v2916_v12 = vpop.f32.mrf.mxu3 }
 0x299   :  { %v3081_v17 = vmax.f32 %v2896_v8, 0.0  ;;  %v2917_v37 = vadd.f32 %v2916_v12, %v796_v53 }
 0x29b   :  { %v2962_v61 = vpop.f32.mrf.mxu1  ;;  %v3096_v1 = vpack.c.bf16 %v3081_v17, %v3076_v59  ;;  %v2941_v58 = vpop.f32.mrf.mxu0  ;;  %v2940_v33 = vadd.f32 %v2939_v55, %v2917_v37 }
 0x29d   :  { %3509 = vmatmul.bf16.gmra.mxu1 %v3096_v1  ;;  %v2963_v3 = vadd.f32 %v2962_v61, %v2940_v33 }
 0x29e   :  { %v2898_v21 = vpop.f32.mrf.mxu2 }
 0x29f   :  { %v2899_v10 = vadd.f32 %v2898_v21, %v2876_v38 }
 0x2a0   :  { %v2918_v28 = vpop.f32.mrf.mxu3 }
 0x2a1   :  { %v3086_v26 = vmax.f32 %v2899_v10, 0.0  ;;  %v2919_v54 = vadd.f32 %v2918_v28, %v796_v53 }
 0x2a3   :  { %v2964_v19 = vpop.f32.mrf.mxu1  ;;  %v2944_v52 = vpop.f32.mrf.mxu0  ;;  %v3101_v24 = vpack.c.bf16 %v3086_v26, %v3086_v26  ;;  %v2942_v62 = vadd.f32 %v2941_v58, %v2919_v54 }
 0x2a5   :  { %v2965_v46 = vadd.f32 %v2964_v19, %v2942_v62 }
 0x2a6   :  { %v2900_v9 = vpop.f32.mrf.mxu2 }
 0x2a8   :  { %v2921_v42 = vpop.f32.mrf.mxu3 }
 0x2a9   :  { %v2922_v59 = vadd.f32 %v2921_v42, %v796_v53 }
 0x2ab   :  { %v2967_v56 = vpop.f32.mrf.mxu1  ;;  %v2946_v31 = vpop.f32.mrf.mxu0  ;;  %v2945_v21 = vadd.f32 %v2944_v52, %v2922_v59 }
 0x2ad   :  { %3514 = vmatmul.bf16.gmra.mxu1 %v3101_v24  ;;  %v2968_v10 = vadd.f32 %v2967_v56, %v2945_v21 }
 0x2ae   :  { %v2980_v2 = vpop.f32.mrf.mxu2 }
 0x2af   :  { %v2981_v11 = vadd.f32 %v2980_v2, %v2958_v57 }
 0x2b0   :  { %v2923_v7 = vpop.f32.mrf.mxu3 }
 0x2b3   :  { %v2969_v51 = vpop.f32.mrf.mxu1  ;;  %v3026_v4 = vpop.f32.mrf.mxu0 }
 0x2b6   :  { %v2982_v27 = vpop.f32.mrf.mxu2 }
 0x2b7   :  { %v2983_v25 = vadd.f32 %v2982_v27, %v2960_v63 }
 0x2b8   :  { %v3003_v15 = vpop.f32.mrf.mxu3 }
 0x2b9   :  { %v3004_v34 = vadd.f32 %v3003_v15, %v2981_v11 }
 0x2bb   :  { %v3049_v44 = vpop.f32.mrf.mxu1  ;;  %v3028_v36 = vpop.f32.mrf.mxu0  ;;  %v3027_v50 = vadd.f32 %v3026_v4, %v3004_v34  ;;  %v5230_v4 = vld [vmem:[#allocation10] ss:$0 sm:$0xff] }
 0x2bd   :  { %v3050_v22 = vadd.f32 %v3049_v44, %v3027_v50 }
 0x2be   :  { %v2985_v49 = vpop.f32.mrf.mxu2 }
 0x2bf   :  { %v3067_v48 = vmax.f32 %v3050_v22, 0.0  ;;  %v2986_v41 = vadd.f32 %v2985_v49, %v2963_v3 }
 0x2c0   :  { %v3005_v30 = vpop.f32.mrf.mxu3 }
 0x2c1   :  { %v3006_v47 = vadd.f32 %v3005_v30, %v2983_v25 }
 0x2c3   :  { %v3051_v23 = vpop.f32.mrf.mxu1  ;;  %v3029_v43 = vadd.f32 %v3028_v36, %v3006_v47  ;;  %v3031_v40 = vpop.f32.mrf.mxu0 }
 0x2c5   :  { %v3052_v20 = vadd.f32 %v3051_v23, %v3029_v43 }
 0x2c6   :  { %v2987_v13 = vpop.f32.mrf.mxu2 }
 0x2c7   :  { %v3072_v32 = vmax.f32 %v3052_v20, 0.0  ;;  %v2988_v17 = vadd.f32 %v2987_v13, %v2965_v46 }
 0x2c8   :  { %v3008_v5 = vpop.f32.mrf.mxu3 }
 0x2c9   :  { %v3092_v29 = vpack.c.bf16 %v3072_v32, %v3067_v48  ;;  %v3009_v8 = vadd.f32 %v3008_v5, %v2986_v41 }
 0x2cb   :  { %v3054_v16 = vpop.f32.mrf.mxu1  ;;  %v3033_v12 = vpop.f32.mrf.mxu0  ;;  %3527 = vmatmul.bf16.vlgmr.msrb.gmra.mxu2 %v3092_v29  ;;  %v3032_v1 = vadd.f32 %v3031_v40, %v3009_v8 }
 0x2cd   :  { %v3055_v61 = vadd.f32 %v3054_v16, %v3032_v1 }
 0x2ce   :  { %v2990_v55 = vpop.f32.mrf.mxu2 }
 0x2cf   :  { %v3077_v26 = vmax.f32 %v3055_v61, 0.0  ;;  %v2991_v18 = vadd.f32 %v2990_v55, %v2968_v10 }
 0x2d0   :  { %v3010_v60 = vpop.f32.mrf.mxu3 }
 0x2d1   :  { %v3011_v0 = vadd.f32 %v3010_v60, %v2988_v17 }
 0x2d3   :  { %v3056_v28 = vpop.f32.mrf.mxu1  ;;  %v3034_v38 = vadd.f32 %v3033_v12, %v3011_v0  ;;  %v3036_v45 = vpop.f32.mrf.mxu0 }
 0x2d5   :  { %v3057_v58 = vadd.f32 %v3056_v28, %v3034_v38 }
 0x2d6   :  { %v2992_v9 = vpop.f32.mrf.mxu2 }
 0x2d7   :  { %v3082_v24 = vmax.f32 %v3057_v58, 0.0 }
 0x2d8   :  { %v3013_v31 = vpop.f32.mrf.mxu3 }
 0x2d9   :  { %v3097_v2 = vpack.c.bf16 %v3082_v24, %v3077_v26  ;;  %v3014_v19 = vadd.f32 %v3013_v31, %v2991_v18 }
 0x2db   :  { %v3059_v42 = vpop.f32.mrf.mxu1  ;;  %v3038_v53 = vpop.f32.mrf.mxu0  ;;  %3532 = vmatmul.bf16.gmra.mxu2 %v3097_v2  ;;  %v3037_v6 = vadd.f32 %v3036_v45, %v3014_v19 }
 0x2dd   :  { %v3060_v51 = vadd.f32 %v3059_v42, %v3037_v6 }
 0x2de   :  { %v3436_v7 = vpop.f32.mrf.mxu2 }
 0x2df   :  { %v3087_v27 = vmax.f32 %v3060_v51, 0.0  ;;  %v3437_v57 = vadd.f32 %v5230_v4, %v3436_v7 }
 0x2e0   :  { %v3015_v52 = vpop.f32.mrf.mxu3 }
 0x2e1   :  { %v3102_v14 = vpack.c.bf16 %v3087_v27, %v3087_v27 }
 0x2e3   :  { %v3061_v35 = vpop.f32.mrf.mxu1  ;;  %v3482_v39 = vpop.f32.mrf.mxu0 }
 0x2e6   :  { %v3438_v56 = vpop.f32.mrf.mxu2 }
 0x2e7   :  { %v3439_v63 = vadd.f32 %v5230_v4, %v3438_v56 }
 0x2e8   :  { %v3459_v15 = vpop.f32.mrf.mxu3 }
 0x2e9   :  { %v3460_v11 = vadd.f32 %v3459_v15, %v3437_v57 }
 0x2eb   :  { %v3484_v44 = vpop.f32.mrf.mxu0  ;;  %3537 = vmatmul.bf16.gmra.mxu2 %v3102_v14  ;;  %v3483_v34 = vadd.f32 %v3482_v39, %v3460_v11 }
 0x2ee   :  { %v3441_v36 = vpop.f32.mrf.mxu2 }
 0x2ef   :  { %v3442_v47 = vadd.f32 %v5230_v4, %v3441_v36 }
 0x2f0   :  { %v3461_v49 = vpop.f32.mrf.mxu3 }
 0x2f1   :  { %v3462_v37 = vadd.f32 %v3461_v49, %v3439_v63 }
 0x2f3   :  { %v3487_v25 = vpop.f32.mrf.mxu0  ;;  %v3485_v50 = vadd.f32 %v3484_v44, %v3462_v37 }
 0x2f6   :  { %v3443_v30 = vpop.f32.mrf.mxu2 }
 0x2f7   :  { %v3444_v54 = vadd.f32 %v5230_v4, %v3443_v30 }
 0x2f8   :  { %v3464_v23 = vpop.f32.mrf.mxu3 }
 0x2f9   :  { %v3465_v33 = vadd.f32 %v3464_v23, %v3442_v47 }
 0x2fb   :  { %v3489_v22 = vpop.f32.mrf.mxu0  ;;  %v3488_v43 = vadd.f32 %v3487_v25, %v3465_v33 }
 0x2fe   :  { %v3446_v40 = vpop.f32.mrf.mxu2 }
 0x2ff   :  { %v3447_v5 = vadd.f32 %v5230_v4, %v3446_v40 }
 0x300   :  { %v3466_v20 = vpop.f32.mrf.mxu3 }
 0x301   :  { %v3467_v13 = vadd.f32 %v3466_v20, %v3444_v54 }
 0x303   :  { %v3492_v3 = vpop.f32.mrf.mxu0  ;;  %v3490_v48 = vadd.f32 %v3489_v22, %v3467_v13 }
 0x306   :  { %v3448_v32 = vpop.f32.mrf.mxu2 }
 0x308   :  { %v3469_v62 = vpop.f32.mrf.mxu3 }
 0x309   :  { %v3470_v41 = vadd.f32 %v3469_v62, %v3447_v5 }
 0x30a   :  { %v3505_v29 = vpop.f32.mrf.mxu1 }
 0x30b   :  { %v3494_v16 = vpop.f32.mrf.mxu0  ;;  %v3506_v8 = vadd.f32 %v3505_v29, %v3483_v34  ;;  %v3493_v12 = vadd.f32 %v3492_v3, %v3470_v41 }
 0x310   :  { %v3471_v46 = vpop.f32.mrf.mxu3 }
 0x312   :  { %v3507_v59 = vpop.f32.mrf.mxu1 }
 0x313   :  { %v3508_v55 = vadd.f32 %v3507_v59, %v3485_v50 }
 0x31a   :  { %v3510_v17 = vpop.f32.mrf.mxu1 }
 0x31b   :  { %v3511_v1 = vadd.f32 %v3510_v17, %v3488_v43 }
 0x322   :  { %v3512_v60 = vpop.f32.mrf.mxu1 }
 0x323   :  { %v3513_v21 = vadd.f32 %v3512_v60, %v3490_v48 }
 0x32a   :  { %v3515_v0 = vpop.f32.mrf.mxu1 }
 0x32b   :  { %v3516_v28 = vadd.f32 %v3515_v0, %v3493_v12 }
 0x332   :  { %v3517_v61 = vpop.f32.mrf.mxu1 }
 0x34e   :  { %v3528_v38 = vpop.f32.mrf.mxu2 }
 0x34f   :  { %v3529_v45 = vadd.f32 %v3528_v38, %v3506_v8 }
 0x351   :  { %5231 = vtanh.f32 %v3529_v45 }
 0x356   :  { %v3530_v10 = vpop.f32.mrf.mxu2 }
 0x357   :  { %v5232_v58 = vpop.eup %5231  ;;  %v3531_v9 = vadd.f32 %v3530_v10, %v3508_v55 }
 0x358   :  { %3547 = vst [vmem:[%s5945_s7] sm:$0xff] %v5232_v58 }
 0x359   :  { %5233 = vtanh.f32 %v3531_v9 }
 0x35e   :  { %v3533_v26 = vpop.f32.mrf.mxu2 }
 0x35f   :  { %v5234_v18 = vpop.eup %5233  ;;  %v3534_v24 = vadd.f32 %v3533_v26, %v3511_v1 }
 0x360   :  { %3548 = vst [vmem:[%s5945_s7 + $0x8] sm:$0xff] %v5234_v18 }
 0x361   :  { %5235 = vtanh.f32 %v3534_v24 }
 0x366   :  { %v3535_v31 = vpop.f32.mrf.mxu2 }
 0x367   :  { %v5236_v2 = vpop.eup %5235  ;;  %v3536_v19 = vadd.f32 %v3535_v31, %v3513_v21 }
 0x368   :  { %3549 = vst [vmem:[%s5945_s7 + $0x10] sm:$0xff] %v5236_v2 }
 0x369   :  { %5237 = vtanh.f32 %v3536_v19 }
 0x36e   :  { %v3538_v42 = vpop.f32.mrf.mxu2 }
 0x36f   :  { %v5238_v53 = vpop.eup %5237  ;;  %v3539_v6 = vadd.f32 %v3538_v42, %v3516_v28 }
 0x370   :  { %3550 = vst [vmem:[%s5945_s7 + $0x18] sm:$0xff] %v5238_v53 }
 0x371   :  { %5239 = vtanh.f32 %v3539_v6 }
 0x376   :  { %v3540_v7 = vpop.f32.mrf.mxu2 }
 0x377   :  { %v5240_v52 = vpop.eup %5239 }
 0x378   :  { %3551 = vst [vmem:[%s5945_s7 + $0x20] sm:$0xff] %v5240_v52 }
 0x379   :  { %3556 = vsyncpa [#allocation3], 1 }
 0x37a   :  { %3557 = vsyncpa [#allocation5], 1 }
 0x37b   :  { %3558 = vsyncpa [#allocation8], 1 }
 0x37c   :  { %3559 = vsyncpa [#allocation11], 1 }

</bundles_post_ra>
